<compile_context>
chip_gen: v6e
topology: v6e:2x2x1
jax: 0.10.0
libtpu: 0.0.40
codegen_flags: <defaults>
</compile_context>

<pallas_src>
import jax
import jax.numpy as jnp
from jax.experimental import pallas as pl
from jax.experimental.pallas import tpu as pltpu


# ----------------------------- Pallas kernels ------------------------------ #

def _make_conv_kernel(taps, Ho, Wo, relu, mode):
    """Build a fused conv + folded-BN affine (+residual / +fused 1x1 projection
    shortcut) (+ReLU) kernel.

    taps: list of (phase, row_offset, col_offset), one per 3x3 tap.
    mode: "plain" | "residual" | "project"
    """

    def _conv_acc(x_ref, w_ref):
        # Statically unrolled 9-tap accumulation; first tap initializes the
        # f32 accumulator, remaining taps accumulate on the MXU.
        def tap(t):
            ph, oh, ow = taps[t]
            xt = x_ref[ph, oh:oh + Ho, ow:ow + Wo, :]       # (Ho, Wo, Cin) bf16
            xt = xt.reshape(Ho * Wo, xt.shape[-1])
            return jnp.dot(xt, w_ref[t], preferred_element_type=jnp.float32)

        acc = tap(0)
        for t in range(1, len(taps)):
            acc = acc + tap(t)
        return acc

    if mode == "plain":
        def kernel(x_ref, w_ref, bn_ref, o_ref):
            tn = o_ref.shape[-1]
            y = _conv_acc(x_ref, w_ref) * bn_ref[0:1, :] + bn_ref[1:2, :]
            if relu:
                y = jnp.maximum(y, 0.0)
            o_ref[0] = y.reshape(Ho, Wo, tn).astype(o_ref.dtype)

    elif mode == "residual":
        def kernel(x_ref, w_ref, bn_ref, r_ref, o_ref):
            tn = o_ref.shape[-1]
            y = _conv_acc(x_ref, w_ref) * bn_ref[0:1, :] + bn_ref[1:2, :]
            y = y + r_ref[0].reshape(Ho * Wo, tn).astype(jnp.float32)
            if relu:
                y = jnp.maximum(y, 0.0)
            o_ref[0] = y.reshape(Ho, Wo, tn).astype(o_ref.dtype)

    else:  # "project": fused 1x1 projection shortcut conv + its BN affine
        def kernel(x_ref, w_ref, bn_ref, xs_ref, scw_ref, scbn_ref, o_ref):
            tn = o_ref.shape[-1]
            y = _conv_acc(x_ref, w_ref) * bn_ref[0:1, :] + bn_ref[1:2, :]
            xs = xs_ref[0].reshape(Ho * Wo, xs_ref.shape[-1])
            sc = jnp.dot(xs, scw_ref[...], preferred_element_type=jnp.float32)
            y = y + sc * scbn_ref[0:1, :] + scbn_ref[1:2, :]
            if relu:
                y = jnp.maximum(y, 0.0)
            o_ref[0] = y.reshape(Ho, Wo, tn).astype(o_ref.dtype)

    return kernel


# ---------------------------- Fused conv wrapper ---------------------------- #

def conv3x3_bn_act(x, w, bn, *, stride, relu, residual=None, shortcut=None,
                   out_dtype=jnp.float32):
    """Fused 3x3 conv (bias-free) + folded-BN affine + optional residual add or
    fused 1x1 projection shortcut + optional ReLU.

    x:        (N, H, W, Cin) NHWC (f32 or bf16).
    w:        (3, 3, Cin, Cout) float32.
    bn:       (scale, shift) per output channel (folded BatchNorm).
    residual: optional (N, Ho, Wo, Cout) tensor added before the ReLU.
    shortcut: optional (xs, sc_w, (sc_scale, sc_shift)) fused 1x1 projection:
              xs is the already-strided block input (N, Ho, Wo, Cin_sc),
              sc_w is (Cin_sc, Cout).
    """
    N, H, W, Cin = x.shape
    Cout = w.shape[-1]
    pad = 1
    Ho = (H + 2 * pad - 3) // stride + 1
    Wo = (W + 2 * pad - 3) // stride + 1

    # Pad once (cheap, no 9x im2col inflation) and cast matmul operand to bf16.
    xp = jnp.pad(x, ((0, 0), (pad, pad), (pad, pad), (0, 0))).astype(jnp.bfloat16)
    Hp, Wp = H + 2 * pad, W + 2 * pad

    if stride == 1:
        xph = xp                                             # (N, Hp, Wp, Cin)
        P, Hph, Wph = 1, Hp, Wp
        taps = [(0, dh, dw) for dh in range(3) for dw in range(3)]
    elif stride == 2:
        # Polyphase split: every tap of the strided conv becomes a contiguous
        # stride-1 window of one of 4 equally shaped planes.
        Hp2, Wp2 = Hp + (Hp & 1), Wp + (Wp & 1)
        xp = jnp.pad(xp, ((0, 0), (0, Hp2 - Hp), (0, Wp2 - Wp), (0, 0)))
        planes = [xp[:, i::2, j::2, :] for i in range(2) for j in range(2)]
        P, Hph, Wph = 4, Hp2 // 2, Wp2 // 2
        xph = jnp.stack(planes, axis=1).reshape(N * P, Hph, Wph, Cin)
        taps = [((dh % 2) * 2 + (dw % 2), dh // 2, dw // 2)
                for dh in range(3) for dw in range(3)]
    else:
        raise ValueError("only stride 1 or 2 supported")

    wT = w.reshape(9, Cin, Cout).astype(jnp.bfloat16)
    # Packed folded-BN affine: row 0 = scale, row 1 = shift  -> one operand.
    bn_packed = jnp.stack([bn[0].astype(jnp.float32),
                           bn[1].astype(jnp.float32)], axis=0)   # (2, Cout)

    tn = Cout if Cout <= 256 else 256          # lane-dense Cout tile (>=128 here)
    assert Cout % tn == 0, (Cout, tn)
    grid = (N, Cout // tn)                     # both axes independent ("parallel")

    in_specs = [
        pl.BlockSpec((P, Hph, Wph, Cin), lambda i, j: (i, 0, 0, 0)),
        pl.BlockSpec((9, Cin, tn), lambda i, j: (0, 0, j)),
        pl.BlockSpec((2, tn), lambda i, j: (0, j)),
    ]
    args = [xph, wT, bn_packed]
    flops = 2 * N * Ho * Wo * Cout * 9 * Cin

    if residual is not None:
        mode = "residual"
        in_specs.append(pl.BlockSpec((1, Ho, Wo, tn), lambda i, j: (i, 0, 0, j)))
        args.append(residual.astype(jnp.float32))
    elif shortcut is not None:
        mode = "project"
        xs, sc_w, sc_bn = shortcut
        Cin_sc = xs.shape[-1]
        sc_bn_packed = jnp.stack([sc_bn[0].astype(jnp.float32),
                                  sc_bn[1].astype(jnp.float32)], axis=0)
        in_specs += [
            pl.BlockSpec((1, Ho, Wo, Cin_sc), lambda i, j: (i, 0, 0, 0)),
            pl.BlockSpec((Cin_sc, tn), lambda i, j: (0, j)),
            pl.BlockSpec((2, tn), lambda i, j: (0, j)),
        ]
        args += [xs.astype(jnp.bfloat16), sc_w.astype(jnp.bfloat16),
                 sc_bn_packed]
        flops += 2 * N * Ho * Wo * Cout * Cin_sc
    else:
        mode = "plain"

    out_itemsize = jnp.dtype(out_dtype).itemsize
    bytes_accessed = sum(int(a.size) * a.dtype.itemsize for a in args)
    bytes_accessed += N * Ho * Wo * Cout * out_itemsize

    kernel = _make_conv_kernel(taps, Ho, Wo, relu, mode)
    return pl.pallas_call(
        kernel,
        out_shape=jax.ShapeDtypeStruct((N, Ho, Wo, Cout), out_dtype),
        grid=grid,
        in_specs=in_specs,
        out_specs=pl.BlockSpec((1, Ho, Wo, tn), lambda i, j: (i, 0, 0, j)),
        compiler_params=pltpu.CompilerParams(
            dimension_semantics=("parallel", "parallel")),
        cost_estimate=pl.CostEstimate(
            flops=int(flops), transcendentals=0,
            bytes_accessed=int(bytes_accessed)),
    )(*args)


# ------------------------------ BasicBlock ---------------------------------- #

def basic_block_forward(x_nchw, blk):
    """out = relu2(bn2(conv2(relu1(bn1(conv1(x))))) + shortcut(x)); NCHW in/out."""
    x = jnp.transpose(x_nchw, (0, 2, 3, 1))                  # NCHW -> NHWC
    s = blk['stride']
    # Intermediate stays bf16: conv2 casts to bf16 for the MXU anyway, so this
    # only halves the out1 HBM round trip without changing numerics.
    out1 = conv3x3_bn_act(x, blk['conv1_w'], blk['bn1'], stride=s, relu=True,
                          out_dtype=jnp.bfloat16)
    if 'sc_w' in blk:
        # 1x1 stride-s projection == channel matmul on the strided input;
        # fused into the conv2 kernel (no extra pallas_call, no HBM round trip).
        xs = x[:, ::s, ::s, :]
        out2 = conv3x3_bn_act(out1, blk['conv2_w'], blk['bn2'], stride=1,
                              relu=True,
                              shortcut=(xs, blk['sc_w'], blk['sc_bn']),
                              out_dtype=jnp.float32)
    else:
        out2 = conv3x3_bn_act(out1, blk['conv2_w'], blk['bn2'], stride=1,
                              relu=True, residual=x, out_dtype=jnp.float32)
    return jnp.transpose(out2, (0, 3, 1, 2))                 # NHWC -> NCHW


# --------------------------- Parameter generation --------------------------- #

def _he_conv(key, kh, kw, cin, cout):
    fan_in = kh * kw * cin
    return (jax.random.normal(key, (kh, kw, cin, cout), jnp.float32)
            * jnp.sqrt(2.0 / fan_in))


def _folded_bn(key, c, eps=1e-5):
    k1, k2, k3, k4 = jax.random.split(key, 4)
    gamma = 1.0 + 0.1 * jax.random.normal(k1, (c,), jnp.float32)
    beta = 0.1 * jax.random.normal(k2, (c,), jnp.float32)
    mean = 0.1 * jax.random.normal(k3, (c,), jnp.float32)
    var = 0.5 + jax.random.uniform(k4, (c,), jnp.float32)
    scale = gamma / jnp.sqrt(var + eps)
    shift = beta - mean * scale
    return scale, shift


def init_basic_block(key, in_planes, planes, stride):
    ks = jax.random.split(key, 6)
    blk = {
        'stride': stride,
        'conv1_w': _he_conv(ks[0], 3, 3, in_planes, planes),
        'bn1': _folded_bn(ks[1], planes),
        'conv2_w': _he_conv(ks[2], 3, 3, planes, planes),
        'bn2': _folded_bn(ks[3], planes),
    }
    if stride != 1 or in_planes != planes:                    # projection shortcut
        blk['sc_w'] = _he_conv(ks[4], 1, 1, in_planes, planes).reshape(
            in_planes, planes)
        blk['sc_bn'] = _folded_bn(ks[5], planes)
    return blk


# ---------------------------------- Main ------------------------------------ #

if __name__ == "__main__":
    key = jax.random.PRNGKey(0)
    kx, ka, kb = jax.random.split(key, 3)

    # BasicBlock(in_planes=64, planes=128, stride=2): projection-shortcut path,
    # followed by BasicBlock(128, 128, stride=1): identity-shortcut path.
    x = jax.random.normal(kx, (2, 64, 16, 16), jnp.float32)   # NCHW, like PyTorch
    blk_a = init_basic_block(ka, 64, 128, stride=2)
    blk_b = init_basic_block(kb, 128, 128, stride=1)

    fwd = jax.jit(
        lambda inp: basic_block_forward(basic_block_forward(inp, blk_a), blk_b))
    out = fwd(x)
    jax.block_until_ready(out)

    assert out.shape == (2, 128, 8, 8), out.shape
    assert bool(jnp.all(jnp.isfinite(out)))
    assert bool(jnp.all(out >= 0.0))                          # final ReLU
    print("KERNEL_OK")
</pallas_src>

<mosaic_0001>
module attributes {stable_mosaic.version = 11 : i64} {
  func.func @kernel(%arg0: i32, %arg1: i32, %arg2: memref<4x9x9x64xbf16, #tpu.memory_space<vmem>>, %arg3: memref<9x64x128xbf16, #tpu.memory_space<vmem>>, %arg4: memref<2x128xf32, #tpu.memory_space<vmem>>, %arg5: memref<1x8x8x128xbf16, #tpu.memory_space<vmem>>) attributes {dimension_semantics = [#tpu.dimension_semantics<parallel>, #tpu.dimension_semantics<parallel>], iteration_bounds = array<i64: 2, 1>, scalar_prefetch = 0 : i64, scratch_operands = 0 : i64, tpu.core_type = #tpu.core_type<tc>, window_params = [{transform_indices = @transform_0, window_bounds = array<i64: 4, 9, 9, 64>}, {transform_indices = @transform_1, window_bounds = array<i64: 9, 64, 128>}, {transform_indices = @transform_2, window_bounds = array<i64: 2, 128>}, {transform_indices = @transform_3, window_bounds = array<i64: 1, 8, 8, 128>}]} {
    %c0 = arith.constant 0 : index
    %c0_0 = arith.constant 0 : index
    %c0_1 = arith.constant 0 : index
    %c0_2 = arith.constant 0 : index
    %0 = vector.load %arg2[%c0, %c0_0, %c0_1, %c0_2] : memref<4x9x9x64xbf16, #tpu.memory_space<vmem>>, vector<1x8x8x64xbf16>
    %1 = vector.shape_cast %0 : vector<1x8x8x64xbf16> to vector<8x8x64xbf16>
    %2 = vector.shape_cast %1 : vector<8x8x64xbf16> to vector<64x64xbf16>
    %c0_3 = arith.constant 0 : index
    %c0_4 = arith.constant 0 : index
    %c0_5 = arith.constant 0 : index
    %3 = vector.load %arg3[%c0_3, %c0_4, %c0_5] : memref<9x64x128xbf16, #tpu.memory_space<vmem>>, vector<1x64x128xbf16>
    %4 = vector.shape_cast %3 : vector<1x64x128xbf16> to vector<64x128xbf16>
    %cst = arith.constant dense<0.000000e+00> : vector<64x128xf32>
    %5 = tpu.matmul %2, %4, %cst {dimension_numbers = #tpu.dot_dimension_numbers<[1], [0], [0], [1], [0, 0, 1, 1], [], []>} : vector<64x64xbf16>, vector<64x128xbf16>, vector<64x128xf32> -> vector<64x128xf32>
    %c1 = arith.constant 1 : index
    %c0_6 = arith.constant 0 : index
    %c0_7 = arith.constant 0 : index
    %c0_8 = arith.constant 0 : index
    %6 = vector.load %arg2[%c1, %c0_6, %c0_7, %c0_8] : memref<4x9x9x64xbf16, #tpu.memory_space<vmem>>, vector<1x8x8x64xbf16>
    %7 = vector.shape_cast %6 : vector<1x8x8x64xbf16> to vector<8x8x64xbf16>
    %8 = vector.shape_cast %7 : vector<8x8x64xbf16> to vector<64x64xbf16>
    %c1_9 = arith.constant 1 : index
    %c0_10 = arith.constant 0 : index
    %c0_11 = arith.constant 0 : index
    %9 = vector.load %arg3[%c1_9, %c0_10, %c0_11] : memref<9x64x128xbf16, #tpu.memory_space<vmem>>, vector<1x64x128xbf16>
    %10 = vector.shape_cast %9 : vector<1x64x128xbf16> to vector<64x128xbf16>
    %cst_12 = arith.constant dense<0.000000e+00> : vector<64x128xf32>
    %11 = tpu.matmul %8, %10, %cst_12 {dimension_numbers = #tpu.dot_dimension_numbers<[1], [0], [0], [1], [0, 0, 1, 1], [], []>} : vector<64x64xbf16>, vector<64x128xbf16>, vector<64x128xf32> -> vector<64x128xf32>
    %12 = arith.addf %5, %11 : vector<64x128xf32>
    %c0_13 = arith.constant 0 : index
    %c0_14 = arith.constant 0 : index
    %c1_15 = arith.constant 1 : index
    %c0_16 = arith.constant 0 : index
    %13 = vector.load %arg2[%c0_13, %c0_14, %c1_15, %c0_16] : memref<4x9x9x64xbf16, #tpu.memory_space<vmem>>, vector<1x8x8x64xbf16>
    %14 = vector.shape_cast %13 : vector<1x8x8x64xbf16> to vector<8x8x64xbf16>
    %15 = vector.shape_cast %14 : vector<8x8x64xbf16> to vector<64x64xbf16>
    %c2 = arith.constant 2 : index
    %c0_17 = arith.constant 0 : index
    %c0_18 = arith.constant 0 : index
    %16 = vector.load %arg3[%c2, %c0_17, %c0_18] : memref<9x64x128xbf16, #tpu.memory_space<vmem>>, vector<1x64x128xbf16>
    %17 = vector.shape_cast %16 : vector<1x64x128xbf16> to vector<64x128xbf16>
    %cst_19 = arith.constant dense<0.000000e+00> : vector<64x128xf32>
    %18 = tpu.matmul %15, %17, %cst_19 {dimension_numbers = #tpu.dot_dimension_numbers<[1], [0], [0], [1], [0, 0, 1, 1], [], []>} : vector<64x64xbf16>, vector<64x128xbf16>, vector<64x128xf32> -> vector<64x128xf32>
    %19 = arith.addf %12, %18 : vector<64x128xf32>
    %c2_20 = arith.constant 2 : index
    %c0_21 = arith.constant 0 : index
    %c0_22 = arith.constant 0 : index
    %c0_23 = arith.constant 0 : index
    %20 = vector.load %arg2[%c2_20, %c0_21, %c0_22, %c0_23] : memref<4x9x9x64xbf16, #tpu.memory_space<vmem>>, vector<1x8x8x64xbf16>
    %21 = vector.shape_cast %20 : vector<1x8x8x64xbf16> to vector<8x8x64xbf16>
    %22 = vector.shape_cast %21 : vector<8x8x64xbf16> to vector<64x64xbf16>
    %c3 = arith.constant 3 : index
    %c0_24 = arith.constant 0 : index
    %c0_25 = arith.constant 0 : index
    %23 = vector.load %arg3[%c3, %c0_24, %c0_25] : memref<9x64x128xbf16, #tpu.memory_space<vmem>>, vector<1x64x128xbf16>
    %24 = vector.shape_cast %23 : vector<1x64x128xbf16> to vector<64x128xbf16>
    %cst_26 = arith.constant dense<0.000000e+00> : vector<64x128xf32>
    %25 = tpu.matmul %22, %24, %cst_26 {dimension_numbers = #tpu.dot_dimension_numbers<[1], [0], [0], [1], [0, 0, 1, 1], [], []>} : vector<64x64xbf16>, vector<64x128xbf16>, vector<64x128xf32> -> vector<64x128xf32>
    %26 = arith.addf %19, %25 : vector<64x128xf32>
    %c3_27 = arith.constant 3 : index
    %c0_28 = arith.constant 0 : index
    %c0_29 = arith.constant 0 : index
    %c0_30 = arith.constant 0 : index
    %27 = vector.load %arg2[%c3_27, %c0_28, %c0_29, %c0_30] : memref<4x9x9x64xbf16, #tpu.memory_space<vmem>>, vector<1x8x8x64xbf16>
    %28 = vector.shape_cast %27 : vector<1x8x8x64xbf16> to vector<8x8x64xbf16>
    %29 = vector.shape_cast %28 : vector<8x8x64xbf16> to vector<64x64xbf16>
    %c4 = arith.constant 4 : index
    %c0_31 = arith.constant 0 : index
    %c0_32 = arith.constant 0 : index
    %30 = vector.load %arg3[%c4, %c0_31, %c0_32] : memref<9x64x128xbf16, #tpu.memory_space<vmem>>, vector<1x64x128xbf16>
    %31 = vector.shape_cast %30 : vector<1x64x128xbf16> to vector<64x128xbf16>
    %cst_33 = arith.constant dense<0.000000e+00> : vector<64x128xf32>
    %32 = tpu.matmul %29, %31, %cst_33 {dimension_numbers = #tpu.dot_dimension_numbers<[1], [0], [0], [1], [0, 0, 1, 1], [], []>} : vector<64x64xbf16>, vector<64x128xbf16>, vector<64x128xf32> -> vector<64x128xf32>
    %33 = arith.addf %26, %32 : vector<64x128xf32>
    %c2_34 = arith.constant 2 : index
    %c0_35 = arith.constant 0 : index
    %c1_36 = arith.constant 1 : index
    %c0_37 = arith.constant 0 : index
    %34 = vector.load %arg2[%c2_34, %c0_35, %c1_36, %c0_37] : memref<4x9x9x64xbf16, #tpu.memory_space<vmem>>, vector<1x8x8x64xbf16>
    %35 = vector.shape_cast %34 : vector<1x8x8x64xbf16> to vector<8x8x64xbf16>
    %36 = vector.shape_cast %35 : vector<8x8x64xbf16> to vector<64x64xbf16>
    %c5 = arith.constant 5 : index
    %c0_38 = arith.constant 0 : index
    %c0_39 = arith.constant 0 : index
    %37 = vector.load %arg3[%c5, %c0_38, %c0_39] : memref<9x64x128xbf16, #tpu.memory_space<vmem>>, vector<1x64x128xbf16>
    %38 = vector.shape_cast %37 : vector<1x64x128xbf16> to vector<64x128xbf16>
    %cst_40 = arith.constant dense<0.000000e+00> : vector<64x128xf32>
    %39 = tpu.matmul %36, %38, %cst_40 {dimension_numbers = #tpu.dot_dimension_numbers<[1], [0], [0], [1], [0, 0, 1, 1], [], []>} : vector<64x64xbf16>, vector<64x128xbf16>, vector<64x128xf32> -> vector<64x128xf32>
    %40 = arith.addf %33, %39 : vector<64x128xf32>
    %c0_41 = arith.constant 0 : index
    %c1_42 = arith.constant 1 : index
    %c0_43 = arith.constant 0 : index
    %c0_44 = arith.constant 0 : index
    %41 = vector.load %arg2[%c0_41, %c1_42, %c0_43, %c0_44] : memref<4x9x9x64xbf16, #tpu.memory_space<vmem>>, vector<1x8x8x64xbf16>
    %42 = vector.shape_cast %41 : vector<1x8x8x64xbf16> to vector<8x8x64xbf16>
    %43 = vector.shape_cast %42 : vector<8x8x64xbf16> to vector<64x64xbf16>
    %c6 = arith.constant 6 : index
    %c0_45 = arith.constant 0 : index
    %c0_46 = arith.constant 0 : index
    %44 = vector.load %arg3[%c6, %c0_45, %c0_46] : memref<9x64x128xbf16, #tpu.memory_space<vmem>>, vector<1x64x128xbf16>
    %45 = vector.shape_cast %44 : vector<1x64x128xbf16> to vector<64x128xbf16>
    %cst_47 = arith.constant dense<0.000000e+00> : vector<64x128xf32>
    %46 = tpu.matmul %43, %45, %cst_47 {dimension_numbers = #tpu.dot_dimension_numbers<[1], [0], [0], [1], [0, 0, 1, 1], [], []>} : vector<64x64xbf16>, vector<64x128xbf16>, vector<64x128xf32> -> vector<64x128xf32>
    %47 = arith.addf %40, %46 : vector<64x128xf32>
    %c1_48 = arith.constant 1 : index
    %c1_49 = arith.constant 1 : index
    %c0_50 = arith.constant 0 : index
    %c0_51 = arith.constant 0 : index
    %48 = vector.load %arg2[%c1_48, %c1_49, %c0_50, %c0_51] : memref<4x9x9x64xbf16, #tpu.memory_space<vmem>>, vector<1x8x8x64xbf16>
    %49 = vector.shape_cast %48 : vector<1x8x8x64xbf16> to vector<8x8x64xbf16>
    %50 = vector.shape_cast %49 : vector<8x8x64xbf16> to vector<64x64xbf16>
    %c7 = arith.constant 7 : index
    %c0_52 = arith.constant 0 : index
    %c0_53 = arith.constant 0 : index
    %51 = vector.load %arg3[%c7, %c0_52, %c0_53] : memref<9x64x128xbf16, #tpu.memory_space<vmem>>, vector<1x64x128xbf16>
    %52 = vector.shape_cast %51 : vector<1x64x128xbf16> to vector<64x128xbf16>
    %cst_54 = arith.constant dense<0.000000e+00> : vector<64x128xf32>
    %53 = tpu.matmul %50, %52, %cst_54 {dimension_numbers = #tpu.dot_dimension_numbers<[1], [0], [0], [1], [0, 0, 1, 1], [], []>} : vector<64x64xbf16>, vector<64x128xbf16>, vector<64x128xf32> -> vector<64x128xf32>
    %54 = arith.addf %47, %53 : vector<64x128xf32>
    %c0_55 = arith.constant 0 : index
    %c1_56 = arith.constant 1 : index
    %c1_57 = arith.constant 1 : index
    %c0_58 = arith.constant 0 : index
    %55 = vector.load %arg2[%c0_55, %c1_56, %c1_57, %c0_58] : memref<4x9x9x64xbf16, #tpu.memory_space<vmem>>, vector<1x8x8x64xbf16>
    %56 = vector.shape_cast %55 : vector<1x8x8x64xbf16> to vector<8x8x64xbf16>
    %57 = vector.shape_cast %56 : vector<8x8x64xbf16> to vector<64x64xbf16>
    %c8 = arith.constant 8 : index
    %c0_59 = arith.constant 0 : index
    %c0_60 = arith.constant 0 : index
    %58 = vector.load %arg3[%c8, %c0_59, %c0_60] : memref<9x64x128xbf16, #tpu.memory_space<vmem>>, vector<1x64x128xbf16>
    %59 = vector.shape_cast %58 : vector<1x64x128xbf16> to vector<64x128xbf16>
    %cst_61 = arith.constant dense<0.000000e+00> : vector<64x128xf32>
    %60 = tpu.matmul %57, %59, %cst_61 {dimension_numbers = #tpu.dot_dimension_numbers<[1], [0], [0], [1], [0, 0, 1, 1], [], []>} : vector<64x64xbf16>, vector<64x128xbf16>, vector<64x128xf32> -> vector<64x128xf32>
    %61 = arith.addf %54, %60 : vector<64x128xf32>
    %c0_62 = arith.constant 0 : index
    %c0_63 = arith.constant 0 : index
    %62 = vector.load %arg4[%c0_62, %c0_63] : memref<2x128xf32, #tpu.memory_space<vmem>>, vector<1x128xf32>
    %63 = vector.broadcast %62 : vector<1x128xf32> to vector<64x128xf32>
    %64 = arith.mulf %61, %63 : vector<64x128xf32>
    %c1_64 = arith.constant 1 : index
    %c0_65 = arith.constant 0 : index
    %65 = vector.load %arg4[%c1_64, %c0_65] : memref<2x128xf32, #tpu.memory_space<vmem>>, vector<1x128xf32>
    %66 = vector.broadcast %65 : vector<1x128xf32> to vector<64x128xf32>
    %67 = arith.addf %64, %66 : vector<64x128xf32>
    %cst_66 = arith.constant 0.000000e+00 : f32
    %68 = vector.broadcast %cst_66 : f32 to vector<64x128xf32>
    %69 = arith.maximumf %67, %68 : vector<64x128xf32>
    %70 = vector.shape_cast %69 : vector<64x128xf32> to vector<8x8x128xf32>
    %71 = arith.truncf %70 : vector<8x8x128xf32> to vector<8x8x128xbf16>
    %c0_67 = arith.constant 0 : index
    %c0_68 = arith.constant 0 : index
    %c0_69 = arith.constant 0 : index
    %c0_70 = arith.constant 0 : index
    %72 = vector.load %arg5[%c0_67, %c0_68, %c0_69, %c0_70] : memref<1x8x8x128xbf16, #tpu.memory_space<vmem>>, vector<1x8x8x128xbf16>
    %73 = vector.shape_cast %72 : vector<1x8x8x128xbf16> to vector<8x8x128xbf16>
    %74 = vector.shape_cast %71 : vector<8x8x128xbf16> to vector<1x8x8x128xbf16>
    tpu.vector_store %arg5[%c0_67, %c0_68, %c0_69, %c0_70], %74 {strides = array<i32>} : memref<1x8x8x128xbf16, #tpu.memory_space<vmem>>, vector<1x8x8x128xbf16>,
    return
  }
  func.func @transform_0(%arg0: i32, %arg1: i32) -> (i32, i32, i32, i32) {
    %c0_i32 = arith.constant 0 : i32
    %c0_i32_0 = arith.constant 0 : i32
    %c0_i32_1 = arith.constant 0 : i32
    %c0_i32_2 = arith.constant 0 : i32
    return %arg0, %c0_i32, %c0_i32_0, %c0_i32_1 : i32, i32, i32, i32
  }
  func.func @transform_1(%arg0: i32, %arg1: i32) -> (i32, i32, i32) {
    %c0_i32 = arith.constant 0 : i32
    %c0_i32_0 = arith.constant 0 : i32
    %c0_i32_1 = arith.constant 0 : i32
    return %c0_i32, %c0_i32_0, %arg1 : i32, i32, i32
  }
  func.func @transform_2(%arg0: i32, %arg1: i32) -> (i32, i32) {
    %c0_i32 = arith.constant 0 : i32
    %c0_i32_0 = arith.constant 0 : i32
    return %c0_i32, %arg1 : i32, i32
  }
  func.func @transform_3(%arg0: i32, %arg1: i32) -> (i32, i32, i32, i32) {
    %c0_i32 = arith.constant 0 : i32
    %c0_i32_0 = arith.constant 0 : i32
    %c0_i32_1 = arith.constant 0 : i32
    return %arg0, %c0_i32, %c0_i32_0, %arg1 : i32, i32, i32, i32
  }
}

module attributes {stable_mosaic.version = 11 : i64} {
  func.func @kernel(%arg0: i32, %arg1: i32, %arg2: memref<1x10x10x128xbf16, #tpu.memory_space<vmem>>, %arg3: memref<9x128x128xbf16, #tpu.memory_space<vmem>>, %arg4: memref<2x128xf32, #tpu.memory_space<vmem>>, %arg5: memref<1x8x8x64xbf16, #tpu.memory_space<vmem>>, %arg6: memref<64x128xbf16, #tpu.memory_space<vmem>>, %arg7: memref<2x128xf32, #tpu.memory_space<vmem>>, %arg8: memref<1x8x8x128xf32, #tpu.memory_space<vmem>>) attributes {dimension_semantics = [#tpu.dimension_semantics<parallel>, #tpu.dimension_semantics<parallel>], iteration_bounds = array<i64: 2, 1>, scalar_prefetch = 0 : i64, scratch_operands = 0 : i64, tpu.core_type = #tpu.core_type<tc>, window_params = [{transform_indices = @transform_0, window_bounds = array<i64: 1, 10, 10, 128>}, {transform_indices = @transform_1, window_bounds = array<i64: 9, 128, 128>}, {transform_indices = @transform_2, window_bounds = array<i64: 2, 128>}, {transform_indices = @transform_3, window_bounds = array<i64: 1, 8, 8, 64>}, {transform_indices = @transform_4, window_bounds = array<i64: 64, 128>}, {transform_indices = @transform_5, window_bounds = array<i64: 2, 128>}, {transform_indices = @transform_6, window_bounds = array<i64: 1, 8, 8, 128>}]} {
    %c0 = arith.constant 0 : index
    %c0_0 = arith.constant 0 : index
    %c0_1 = arith.constant 0 : index
    %c0_2 = arith.constant 0 : index
    %0 = vector.load %arg2[%c0, %c0_0, %c0_1, %c0_2] : memref<1x10x10x128xbf16, #tpu.memory_space<vmem>>, vector<1x8x8x128xbf16>
    %1 = vector.shape_cast %0 : vector<1x8x8x128xbf16> to vector<8x8x128xbf16>
    %2 = vector.shape_cast %1 : vector<8x8x128xbf16> to vector<64x128xbf16>
    %c0_3 = arith.constant 0 : index
    %c0_4 = arith.constant 0 : index
    %c0_5 = arith.constant 0 : index
    %3 = vector.load %arg3[%c0_3, %c0_4, %c0_5] : memref<9x128x128xbf16, #tpu.memory_space<vmem>>, vector<1x128x128xbf16>
    %4 = vector.shape_cast %3 : vector<1x128x128xbf16> to vector<128x128xbf16>
    %cst = arith.constant dense<0.000000e+00> : vector<64x128xf32>
    %5 = tpu.matmul %2, %4, %cst {dimension_numbers = #tpu.dot_dimension_numbers<[1], [0], [0], [1], [0, 0, 1, 1], [], []>} : vector<64x128xbf16>, vector<128x128xbf16>, vector<64x128xf32> -> vector<64x128xf32>
    %c0_6 = arith.constant 0 : index
    %c0_7 = arith.constant 0 : index
    %c1 = arith.constant 1 : index
    %c0_8 = arith.constant 0 : index
    %6 = vector.load %arg2[%c0_6, %c0_7, %c1, %c0_8] : memref<1x10x10x128xbf16, #tpu.memory_space<vmem>>, vector<1x8x8x128xbf16>
    %7 = vector.shape_cast %6 : vector<1x8x8x128xbf16> to vector<8x8x128xbf16>
    %8 = vector.shape_cast %7 : vector<8x8x128xbf16> to vector<64x128xbf16>
    %c1_9 = arith.constant 1 : index
    %c0_10 = arith.constant 0 : index
    %c0_11 = arith.constant 0 : index
    %9 = vector.load %arg3[%c1_9, %c0_10, %c0_11] : memref<9x128x128xbf16, #tpu.memory_space<vmem>>, vector<1x128x128xbf16>
    %10 = vector.shape_cast %9 : vector<1x128x128xbf16> to vector<128x128xbf16>
    %cst_12 = arith.constant dense<0.000000e+00> : vector<64x128xf32>
    %11 = tpu.matmul %8, %10, %cst_12 {dimension_numbers = #tpu.dot_dimension_numbers<[1], [0], [0], [1], [0, 0, 1, 1], [], []>} : vector<64x128xbf16>, vector<128x128xbf16>, vector<64x128xf32> -> vector<64x128xf32>
    %12 = arith.addf %5, %11 : vector<64x128xf32>
    %c0_13 = arith.constant 0 : index
    %c0_14 = arith.constant 0 : index
    %c2 = arith.constant 2 : index
    %c0_15 = arith.constant 0 : index
    %13 = vector.load %arg2[%c0_13, %c0_14, %c2, %c0_15] : memref<1x10x10x128xbf16, #tpu.memory_space<vmem>>, vector<1x8x8x128xbf16>
    %14 = vector.shape_cast %13 : vector<1x8x8x128xbf16> to vector<8x8x128xbf16>
    %15 = vector.shape_cast %14 : vector<8x8x128xbf16> to vector<64x128xbf16>
    %c2_16 = arith.constant 2 : index
    %c0_17 = arith.constant 0 : index
    %c0_18 = arith.constant 0 : index
    %16 = vector.load %arg3[%c2_16, %c0_17, %c0_18] : memref<9x128x128xbf16, #tpu.memory_space<vmem>>, vector<1x128x128xbf16>
    %17 = vector.shape_cast %16 : vector<1x128x128xbf16> to vector<128x128xbf16>
    %cst_19 = arith.constant dense<0.000000e+00> : vector<64x128xf32>
    %18 = tpu.matmul %15, %17, %cst_19 {dimension_numbers = #tpu.dot_dimension_numbers<[1], [0], [0], [1], [0, 0, 1, 1], [], []>} : vector<64x128xbf16>, vector<128x128xbf16>, vector<64x128xf32> -> vector<64x128xf32>
    %19 = arith.addf %12, %18 : vector<64x128xf32>
    %c0_20 = arith.constant 0 : index
    %c1_21 = arith.constant 1 : index
    %c0_22 = arith.constant 0 : index
    %c0_23 = arith.constant 0 : index
    %20 = vector.load %arg2[%c0_20, %c1_21, %c0_22, %c0_23] : memref<1x10x10x128xbf16, #tpu.memory_space<vmem>>, vector<1x8x8x128xbf16>
    %21 = vector.shape_cast %20 : vector<1x8x8x128xbf16> to vector<8x8x128xbf16>
    %22 = vector.shape_cast %21 : vector<8x8x128xbf16> to vector<64x128xbf16>
    %c3 = arith.constant 3 : index
    %c0_24 = arith.constant 0 : index
    %c0_25 = arith.constant 0 : index
    %23 = vector.load %arg3[%c3, %c0_24, %c0_25] : memref<9x128x128xbf16, #tpu.memory_space<vmem>>, vector<1x128x128xbf16>
    %24 = vector.shape_cast %23 : vector<1x128x128xbf16> to vector<128x128xbf16>
    %cst_26 = arith.constant dense<0.000000e+00> : vector<64x128xf32>
    %25 = tpu.matmul %22, %24, %cst_26 {dimension_numbers = #tpu.dot_dimension_numbers<[1], [0], [0], [1], [0, 0, 1, 1], [], []>} : vector<64x128xbf16>, vector<128x128xbf16>, vector<64x128xf32> -> vector<64x128xf32>
    %26 = arith.addf %19, %25 : vector<64x128xf32>
    %c0_27 = arith.constant 0 : index
    %c1_28 = arith.constant 1 : index
    %c1_29 = arith.constant 1 : index
    %c0_30 = arith.constant 0 : index
    %27 = vector.load %arg2[%c0_27, %c1_28, %c1_29, %c0_30] : memref<1x10x10x128xbf16, #tpu.memory_space<vmem>>, vector<1x8x8x128xbf16>
    %28 = vector.shape_cast %27 : vector<1x8x8x128xbf16> to vector<8x8x128xbf16>
    %29 = vector.shape_cast %28 : vector<8x8x128xbf16> to vector<64x128xbf16>
    %c4 = arith.constant 4 : index
    %c0_31 = arith.constant 0 : index
    %c0_32 = arith.constant 0 : index
    %30 = vector.load %arg3[%c4, %c0_31, %c0_32] : memref<9x128x128xbf16, #tpu.memory_space<vmem>>, vector<1x128x128xbf16>
    %31 = vector.shape_cast %30 : vector<1x128x128xbf16> to vector<128x128xbf16>
    %cst_33 = arith.constant dense<0.000000e+00> : vector<64x128xf32>
    %32 = tpu.matmul %29, %31, %cst_33 {dimension_numbers = #tpu.dot_dimension_numbers<[1], [0], [0], [1], [0, 0, 1, 1], [], []>} : vector<64x128xbf16>, vector<128x128xbf16>, vector<64x128xf32> -> vector<64x128xf32>
    %33 = arith.addf %26, %32 : vector<64x128xf32>
    %c0_34 = arith.constant 0 : index
    %c1_35 = arith.constant 1 : index
    %c2_36 = arith.constant 2 : index
    %c0_37 = arith.constant 0 : index
    %34 = vector.load %arg2[%c0_34, %c1_35, %c2_36, %c0_37] : memref<1x10x10x128xbf16, #tpu.memory_space<vmem>>, vector<1x8x8x128xbf16>
    %35 = vector.shape_cast %34 : vector<1x8x8x128xbf16> to vector<8x8x128xbf16>
    %36 = vector.shape_cast %35 : vector<8x8x128xbf16> to vector<64x128xbf16>
    %c5 = arith.constant 5 : index
    %c0_38 = arith.constant 0 : index
    %c0_39 = arith.constant 0 : index
    %37 = vector.load %arg3[%c5, %c0_38, %c0_39] : memref<9x128x128xbf16, #tpu.memory_space<vmem>>, vector<1x128x128xbf16>
    %38 = vector.shape_cast %37 : vector<1x128x128xbf16> to vector<128x128xbf16>
    %cst_40 = arith.constant dense<0.000000e+00> : vector<64x128xf32>
    %39 = tpu.matmul %36, %38, %cst_40 {dimension_numbers = #tpu.dot_dimension_numbers<[1], [0], [0], [1], [0, 0, 1, 1], [], []>} : vector<64x128xbf16>, vector<128x128xbf16>, vector<64x128xf32> -> vector<64x128xf32>
    %40 = arith.addf %33, %39 : vector<64x128xf32>
    %c0_41 = arith.constant 0 : index
    %c2_42 = arith.constant 2 : index
    %c0_43 = arith.constant 0 : index
    %c0_44 = arith.constant 0 : index
    %41 = vector.load %arg2[%c0_41, %c2_42, %c0_43, %c0_44] : memref<1x10x10x128xbf16, #tpu.memory_space<vmem>>, vector<1x8x8x128xbf16>
    %42 = vector.shape_cast %41 : vector<1x8x8x128xbf16> to vector<8x8x128xbf16>
    %43 = vector.shape_cast %42 : vector<8x8x128xbf16> to vector<64x128xbf16>
    %c6 = arith.constant 6 : index
    %c0_45 = arith.constant 0 : index
    %c0_46 = arith.constant 0 : index
    %44 = vector.load %arg3[%c6, %c0_45, %c0_46] : memref<9x128x128xbf16, #tpu.memory_space<vmem>>, vector<1x128x128xbf16>
    %45 = vector.shape_cast %44 : vector<1x128x128xbf16> to vector<128x128xbf16>
    %cst_47 = arith.constant dense<0.000000e+00> : vector<64x128xf32>
    %46 = tpu.matmul %43, %45, %cst_47 {dimension_numbers = #tpu.dot_dimension_numbers<[1], [0], [0], [1], [0, 0, 1, 1], [], []>} : vector<64x128xbf16>, vector<128x128xbf16>, vector<64x128xf32> -> vector<64x128xf32>
    %47 = arith.addf %40, %46 : vector<64x128xf32>
    %c0_48 = arith.constant 0 : index
    %c2_49 = arith.constant 2 : index
    %c1_50 = arith.constant 1 : index
    %c0_51 = arith.constant 0 : index
    %48 = vector.load %arg2[%c0_48, %c2_49, %c1_50, %c0_51] : memref<1x10x10x128xbf16, #tpu.memory_space<vmem>>, vector<1x8x8x128xbf16>
    %49 = vector.shape_cast %48 : vector<1x8x8x128xbf16> to vector<8x8x128xbf16>
    %50 = vector.shape_cast %49 : vector<8x8x128xbf16> to vector<64x128xbf16>
    %c7 = arith.constant 7 : index
    %c0_52 = arith.constant 0 : index
    %c0_53 = arith.constant 0 : index
    %51 = vector.load %arg3[%c7, %c0_52, %c0_53] : memref<9x128x128xbf16, #tpu.memory_space<vmem>>, vector<1x128x128xbf16>
    %52 = vector.shape_cast %51 : vector<1x128x128xbf16> to vector<128x128xbf16>
    %cst_54 = arith.constant dense<0.000000e+00> : vector<64x128xf32>
    %53 = tpu.matmul %50, %52, %cst_54 {dimension_numbers = #tpu.dot_dimension_numbers<[1], [0], [0], [1], [0, 0, 1, 1], [], []>} : vector<64x128xbf16>, vector<128x128xbf16>, vector<64x128xf32> -> vector<64x128xf32>
    %54 = arith.addf %47, %53 : vector<64x128xf32>
    %c0_55 = arith.constant 0 : index
    %c2_56 = arith.constant 2 : index
    %c2_57 = arith.constant 2 : index
    %c0_58 = arith.constant 0 : index
    %55 = vector.load %arg2[%c0_55, %c2_56, %c2_57, %c0_58] : memref<1x10x10x128xbf16, #tpu.memory_space<vmem>>, vector<1x8x8x128xbf16>
    %56 = vector.shape_cast %55 : vector<1x8x8x128xbf16> to vector<8x8x128xbf16>
    %57 = vector.shape_cast %56 : vector<8x8x128xbf16> to vector<64x128xbf16>
    %c8 = arith.constant 8 : index
    %c0_59 = arith.constant 0 : index
    %c0_60 = arith.constant 0 : index
    %58 = vector.load %arg3[%c8, %c0_59, %c0_60] : memref<9x128x128xbf16, #tpu.memory_space<vmem>>, vector<1x128x128xbf16>
    %59 = vector.shape_cast %58 : vector<1x128x128xbf16> to vector<128x128xbf16>
    %cst_61 = arith.constant dense<0.000000e+00> : vector<64x128xf32>
    %60 = tpu.matmul %57, %59, %cst_61 {dimension_numbers = #tpu.dot_dimension_numbers<[1], [0], [0], [1], [0, 0, 1, 1], [], []>} : vector<64x128xbf16>, vector<128x128xbf16>, vector<64x128xf32> -> vector<64x128xf32>
    %61 = arith.addf %54, %60 : vector<64x128xf32>
    %c0_62 = arith.constant 0 : index
    %c0_63 = arith.constant 0 : index
    %62 = vector.load %arg4[%c0_62, %c0_63] : memref<2x128xf32, #tpu.memory_space<vmem>>, vector<1x128xf32>
    %63 = vector.broadcast %62 : vector<1x128xf32> to vector<64x128xf32>
    %64 = arith.mulf %61, %63 : vector<64x128xf32>
    %c1_64 = arith.constant 1 : index
    %c0_65 = arith.constant 0 : index
    %65 = vector.load %arg4[%c1_64, %c0_65] : memref<2x128xf32, #tpu.memory_space<vmem>>, vector<1x128xf32>
    %66 = vector.broadcast %65 : vector<1x128xf32> to vector<64x128xf32>
    %67 = arith.addf %64, %66 : vector<64x128xf32>
    %c0_66 = arith.constant 0 : index
    %c0_67 = arith.constant 0 : index
    %c0_68 = arith.constant 0 : index
    %c0_69 = arith.constant 0 : index
    %68 = vector.load %arg5[%c0_66, %c0_67, %c0_68, %c0_69] : memref<1x8x8x64xbf16, #tpu.memory_space<vmem>>, vector<1x8x8x64xbf16>
    %69 = vector.shape_cast %68 : vector<1x8x8x64xbf16> to vector<8x8x64xbf16>
    %70 = vector.shape_cast %69 : vector<8x8x64xbf16> to vector<64x64xbf16>
    %c0_70 = arith.constant 0 : index
    %c0_71 = arith.constant 0 : index
    %71 = vector.load %arg6[%c0_70, %c0_71] : memref<64x128xbf16, #tpu.memory_space<vmem>>, vector<64x128xbf16>
    %cst_72 = arith.constant dense<0.000000e+00> : vector<64x128xf32>
    %72 = tpu.matmul %70, %71, %cst_72 {dimension_numbers = #tpu.dot_dimension_numbers<[1], [0], [0], [1], [0, 0, 1, 1], [], []>} : vector<64x64xbf16>, vector<64x128xbf16>, vector<64x128xf32> -> vector<64x128xf32>
    %c0_73 = arith.constant 0 : index
    %c0_74 = arith.constant 0 : index
    %73 = vector.load %arg7[%c0_73, %c0_74] : memref<2x128xf32, #tpu.memory_space<vmem>>, vector<1x128xf32>
    %74 = vector.broadcast %73 : vector<1x128xf32> to vector<64x128xf32>
    %75 = arith.mulf %72, %74 : vector<64x128xf32>
    %76 = arith.addf %67, %75 : vector<64x128xf32>
    %c1_75 = arith.constant 1 : index
    %c0_76 = arith.constant 0 : index
    %77 = vector.load %arg7[%c1_75, %c0_76] : memref<2x128xf32, #tpu.memory_space<vmem>>, vector<1x128xf32>
    %78 = vector.broadcast %77 : vector<1x128xf32> to vector<64x128xf32>
    %79 = arith.addf %76, %78 : vector<64x128xf32>
    %cst_77 = arith.constant 0.000000e+00 : f32
    %80 = vector.broadcast %cst_77 : f32 to vector<64x128xf32>
    %81 = arith.maximumf %79, %80 : vector<64x128xf32>
    %82 = vector.shape_cast %81 : vector<64x128xf32> to vector<8x8x128xf32>
    %c0_78 = arith.constant 0 : index
    %c0_79 = arith.constant 0 : index
    %c0_80 = arith.constant 0 : index
    %c0_81 = arith.constant 0 : index
    %83 = vector.load %arg8[%c0_78, %c0_79, %c0_80, %c0_81] : memref<1x8x8x128xf32, #tpu.memory_space<vmem>>, vector<1x8x8x128xf32>
    %84 = vector.shape_cast %83 : vector<1x8x8x128xf32> to vector<8x8x128xf32>
    %85 = vector.shape_cast %82 : vector<8x8x128xf32> to vector<1x8x8x128xf32>
    tpu.vector_store %arg8[%c0_78, %c0_79, %c0_80, %c0_81], %85 {strides = array<i32>} : memref<1x8x8x128xf32, #tpu.memory_space<vmem>>, vector<1x8x8x128xf32>,
    return
  }
  func.func @transform_0(%arg0: i32, %arg1: i32) -> (i32, i32, i32, i32) {
    %c0_i32 = arith.constant 0 : i32
    %c0_i32_0 = arith.constant 0 : i32
    %c0_i32_1 = arith.constant 0 : i32
    %c0_i32_2 = arith.constant 0 : i32
    return %arg0, %c0_i32, %c0_i32_0, %c0_i32_1 : i32, i32, i32, i32
  }
  func.func @transform_1(%arg0: i32, %arg1: i32) -> (i32, i32, i32) {
    %c0_i32 = arith.constant 0 : i32
    %c0_i32_0 = arith.constant 0 : i32
    %c0_i32_1 = arith.constant 0 : i32
    return %c0_i32, %c0_i32_0, %arg1 : i32, i32, i32
  }
  func.func @transform_2(%arg0: i32, %arg1: i32) -> (i32, i32) {
    %c0_i32 = arith.constant 0 : i32
    %c0_i32_0 = arith.constant 0 : i32
    return %c0_i32, %arg1 : i32, i32
  }
  func.func @transform_3(%arg0: i32, %arg1: i32) -> (i32, i32, i32, i32) {
    %c0_i32 = arith.constant 0 : i32
    %c0_i32_0 = arith.constant 0 : i32
    %c0_i32_1 = arith.constant 0 : i32
    %c0_i32_2 = arith.constant 0 : i32
    return %arg0, %c0_i32, %c0_i32_0, %c0_i32_1 : i32, i32, i32, i32
  }
  func.func @transform_4(%arg0: i32, %arg1: i32) -> (i32, i32) {
    %c0_i32 = arith.constant 0 : i32
    %c0_i32_0 = arith.constant 0 : i32
    return %c0_i32, %arg1 : i32, i32
  }
  func.func @transform_5(%arg0: i32, %arg1: i32) -> (i32, i32) {
    %c0_i32 = arith.constant 0 : i32
    %c0_i32_0 = arith.constant 0 : i32
    return %c0_i32, %arg1 : i32, i32
  }
  func.func @transform_6(%arg0: i32, %arg1: i32) -> (i32, i32, i32, i32) {
    %c0_i32 = arith.constant 0 : i32
    %c0_i32_0 = arith.constant 0 : i32
    %c0_i32_1 = arith.constant 0 : i32
    return %arg0, %c0_i32, %c0_i32_0, %arg1 : i32, i32, i32, i32
  }
}

module attributes {stable_mosaic.version = 11 : i64} {
  func.func @kernel(%arg0: i32, %arg1: i32, %arg2: memref<1x10x10x128xbf16, #tpu.memory_space<vmem>>, %arg3: memref<9x128x128xbf16, #tpu.memory_space<vmem>>, %arg4: memref<2x128xf32, #tpu.memory_space<vmem>>, %arg5: memref<1x8x8x128xbf16, #tpu.memory_space<vmem>>) attributes {dimension_semantics = [#tpu.dimension_semantics<parallel>, #tpu.dimension_semantics<parallel>], iteration_bounds = array<i64: 2, 1>, scalar_prefetch = 0 : i64, scratch_operands = 0 : i64, tpu.core_type = #tpu.core_type<tc>, window_params = [{transform_indices = @transform_0, window_bounds = array<i64: 1, 10, 10, 128>}, {transform_indices = @transform_1, window_bounds = array<i64: 9, 128, 128>}, {transform_indices = @transform_2, window_bounds = array<i64: 2, 128>}, {transform_indices = @transform_3, window_bounds = array<i64: 1, 8, 8, 128>}]} {
    %c0 = arith.constant 0 : index
    %c0_0 = arith.constant 0 : index
    %c0_1 = arith.constant 0 : index
    %c0_2 = arith.constant 0 : index
    %0 = vector.load %arg2[%c0, %c0_0, %c0_1, %c0_2] : memref<1x10x10x128xbf16, #tpu.memory_space<vmem>>, vector<1x8x8x128xbf16>
    %1 = vector.shape_cast %0 : vector<1x8x8x128xbf16> to vector<8x8x128xbf16>
    %2 = vector.shape_cast %1 : vector<8x8x128xbf16> to vector<64x128xbf16>
    %c0_3 = arith.constant 0 : index
    %c0_4 = arith.constant 0 : index
    %c0_5 = arith.constant 0 : index
    %3 = vector.load %arg3[%c0_3, %c0_4, %c0_5] : memref<9x128x128xbf16, #tpu.memory_space<vmem>>, vector<1x128x128xbf16>
    %4 = vector.shape_cast %3 : vector<1x128x128xbf16> to vector<128x128xbf16>
    %cst = arith.constant dense<0.000000e+00> : vector<64x128xf32>
    %5 = tpu.matmul %2, %4, %cst {dimension_numbers = #tpu.dot_dimension_numbers<[1], [0], [0], [1], [0, 0, 1, 1], [], []>} : vector<64x128xbf16>, vector<128x128xbf16>, vector<64x128xf32> -> vector<64x128xf32>
    %c0_6 = arith.constant 0 : index
    %c0_7 = arith.constant 0 : index
    %c1 = arith.constant 1 : index
    %c0_8 = arith.constant 0 : index
    %6 = vector.load %arg2[%c0_6, %c0_7, %c1, %c0_8] : memref<1x10x10x128xbf16, #tpu.memory_space<vmem>>, vector<1x8x8x128xbf16>
    %7 = vector.shape_cast %6 : vector<1x8x8x128xbf16> to vector<8x8x128xbf16>
    %8 = vector.shape_cast %7 : vector<8x8x128xbf16> to vector<64x128xbf16>
    %c1_9 = arith.constant 1 : index
    %c0_10 = arith.constant 0 : index
    %c0_11 = arith.constant 0 : index
    %9 = vector.load %arg3[%c1_9, %c0_10, %c0_11] : memref<9x128x128xbf16, #tpu.memory_space<vmem>>, vector<1x128x128xbf16>
    %10 = vector.shape_cast %9 : vector<1x128x128xbf16> to vector<128x128xbf16>
    %cst_12 = arith.constant dense<0.000000e+00> : vector<64x128xf32>
    %11 = tpu.matmul %8, %10, %cst_12 {dimension_numbers = #tpu.dot_dimension_numbers<[1], [0], [0], [1], [0, 0, 1, 1], [], []>} : vector<64x128xbf16>, vector<128x128xbf16>, vector<64x128xf32> -> vector<64x128xf32>
    %12 = arith.addf %5, %11 : vector<64x128xf32>
    %c0_13 = arith.constant 0 : index
    %c0_14 = arith.constant 0 : index
    %c2 = arith.constant 2 : index
    %c0_15 = arith.constant 0 : index
    %13 = vector.load %arg2[%c0_13, %c0_14, %c2, %c0_15] : memref<1x10x10x128xbf16, #tpu.memory_space<vmem>>, vector<1x8x8x128xbf16>
    %14 = vector.shape_cast %13 : vector<1x8x8x128xbf16> to vector<8x8x128xbf16>
    %15 = vector.shape_cast %14 : vector<8x8x128xbf16> to vector<64x128xbf16>
    %c2_16 = arith.constant 2 : index
    %c0_17 = arith.constant 0 : index
    %c0_18 = arith.constant 0 : index
    %16 = vector.load %arg3[%c2_16, %c0_17, %c0_18] : memref<9x128x128xbf16, #tpu.memory_space<vmem>>, vector<1x128x128xbf16>
    %17 = vector.shape_cast %16 : vector<1x128x128xbf16> to vector<128x128xbf16>
    %cst_19 = arith.constant dense<0.000000e+00> : vector<64x128xf32>
    %18 = tpu.matmul %15, %17, %cst_19 {dimension_numbers = #tpu.dot_dimension_numbers<[1], [0], [0], [1], [0, 0, 1, 1], [], []>} : vector<64x128xbf16>, vector<128x128xbf16>, vector<64x128xf32> -> vector<64x128xf32>
    %19 = arith.addf %12, %18 : vector<64x128xf32>
    %c0_20 = arith.constant 0 : index
    %c1_21 = arith.constant 1 : index
    %c0_22 = arith.constant 0 : index
    %c0_23 = arith.constant 0 : index
    %20 = vector.load %arg2[%c0_20, %c1_21, %c0_22, %c0_23] : memref<1x10x10x128xbf16, #tpu.memory_space<vmem>>, vector<1x8x8x128xbf16>
    %21 = vector.shape_cast %20 : vector<1x8x8x128xbf16> to vector<8x8x128xbf16>
    %22 = vector.shape_cast %21 : vector<8x8x128xbf16> to vector<64x128xbf16>
    %c3 = arith.constant 3 : index
    %c0_24 = arith.constant 0 : index
    %c0_25 = arith.constant 0 : index
    %23 = vector.load %arg3[%c3, %c0_24, %c0_25] : memref<9x128x128xbf16, #tpu.memory_space<vmem>>, vector<1x128x128xbf16>
    %24 = vector.shape_cast %23 : vector<1x128x128xbf16> to vector<128x128xbf16>
    %cst_26 = arith.constant dense<0.000000e+00> : vector<64x128xf32>
    %25 = tpu.matmul %22, %24, %cst_26 {dimension_numbers = #tpu.dot_dimension_numbers<[1], [0], [0], [1], [0, 0, 1, 1], [], []>} : vector<64x128xbf16>, vector<128x128xbf16>, vector<64x128xf32> -> vector<64x128xf32>
    %26 = arith.addf %19, %25 : vector<64x128xf32>
    %c0_27 = arith.constant 0 : index
    %c1_28 = arith.constant 1 : index
    %c1_29 = arith.constant 1 : index
    %c0_30 = arith.constant 0 : index
    %27 = vector.load %arg2[%c0_27, %c1_28, %c1_29, %c0_30] : memref<1x10x10x128xbf16, #tpu.memory_space<vmem>>, vector<1x8x8x128xbf16>
    %28 = vector.shape_cast %27 : vector<1x8x8x128xbf16> to vector<8x8x128xbf16>
    %29 = vector.shape_cast %28 : vector<8x8x128xbf16> to vector<64x128xbf16>
    %c4 = arith.constant 4 : index
    %c0_31 = arith.constant 0 : index
    %c0_32 = arith.constant 0 : index
    %30 = vector.load %arg3[%c4, %c0_31, %c0_32] : memref<9x128x128xbf16, #tpu.memory_space<vmem>>, vector<1x128x128xbf16>
    %31 = vector.shape_cast %30 : vector<1x128x128xbf16> to vector<128x128xbf16>
    %cst_33 = arith.constant dense<0.000000e+00> : vector<64x128xf32>
    %32 = tpu.matmul %29, %31, %cst_33 {dimension_numbers = #tpu.dot_dimension_numbers<[1], [0], [0], [1], [0, 0, 1, 1], [], []>} : vector<64x128xbf16>, vector<128x128xbf16>, vector<64x128xf32> -> vector<64x128xf32>
    %33 = arith.addf %26, %32 : vector<64x128xf32>
    %c0_34 = arith.constant 0 : index
    %c1_35 = arith.constant 1 : index
    %c2_36 = arith.constant 2 : index
    %c0_37 = arith.constant 0 : index
    %34 = vector.load %arg2[%c0_34, %c1_35, %c2_36, %c0_37] : memref<1x10x10x128xbf16, #tpu.memory_space<vmem>>, vector<1x8x8x128xbf16>
    %35 = vector.shape_cast %34 : vector<1x8x8x128xbf16> to vector<8x8x128xbf16>
    %36 = vector.shape_cast %35 : vector<8x8x128xbf16> to vector<64x128xbf16>
    %c5 = arith.constant 5 : index
    %c0_38 = arith.constant 0 : index
    %c0_39 = arith.constant 0 : index
    %37 = vector.load %arg3[%c5, %c0_38, %c0_39] : memref<9x128x128xbf16, #tpu.memory_space<vmem>>, vector<1x128x128xbf16>
    %38 = vector.shape_cast %37 : vector<1x128x128xbf16> to vector<128x128xbf16>
    %cst_40 = arith.constant dense<0.000000e+00> : vector<64x128xf32>
    %39 = tpu.matmul %36, %38, %cst_40 {dimension_numbers = #tpu.dot_dimension_numbers<[1], [0], [0], [1], [0, 0, 1, 1], [], []>} : vector<64x128xbf16>, vector<128x128xbf16>, vector<64x128xf32> -> vector<64x128xf32>
    %40 = arith.addf %33, %39 : vector<64x128xf32>
    %c0_41 = arith.constant 0 : index
    %c2_42 = arith.constant 2 : index
    %c0_43 = arith.constant 0 : index
    %c0_44 = arith.constant 0 : index
    %41 = vector.load %arg2[%c0_41, %c2_42, %c0_43, %c0_44] : memref<1x10x10x128xbf16, #tpu.memory_space<vmem>>, vector<1x8x8x128xbf16>
    %42 = vector.shape_cast %41 : vector<1x8x8x128xbf16> to vector<8x8x128xbf16>
    %43 = vector.shape_cast %42 : vector<8x8x128xbf16> to vector<64x128xbf16>
    %c6 = arith.constant 6 : index
    %c0_45 = arith.constant 0 : index
    %c0_46 = arith.constant 0 : index
    %44 = vector.load %arg3[%c6, %c0_45, %c0_46] : memref<9x128x128xbf16, #tpu.memory_space<vmem>>, vector<1x128x128xbf16>
    %45 = vector.shape_cast %44 : vector<1x128x128xbf16> to vector<128x128xbf16>
    %cst_47 = arith.constant dense<0.000000e+00> : vector<64x128xf32>
    %46 = tpu.matmul %43, %45, %cst_47 {dimension_numbers = #tpu.dot_dimension_numbers<[1], [0], [0], [1], [0, 0, 1, 1], [], []>} : vector<64x128xbf16>, vector<128x128xbf16>, vector<64x128xf32> -> vector<64x128xf32>
    %47 = arith.addf %40, %46 : vector<64x128xf32>
    %c0_48 = arith.constant 0 : index
    %c2_49 = arith.constant 2 : index
    %c1_50 = arith.constant 1 : index
    %c0_51 = arith.constant 0 : index
    %48 = vector.load %arg2[%c0_48, %c2_49, %c1_50, %c0_51] : memref<1x10x10x128xbf16, #tpu.memory_space<vmem>>, vector<1x8x8x128xbf16>
    %49 = vector.shape_cast %48 : vector<1x8x8x128xbf16> to vector<8x8x128xbf16>
    %50 = vector.shape_cast %49 : vector<8x8x128xbf16> to vector<64x128xbf16>
    %c7 = arith.constant 7 : index
    %c0_52 = arith.constant 0 : index
    %c0_53 = arith.constant 0 : index
    %51 = vector.load %arg3[%c7, %c0_52, %c0_53] : memref<9x128x128xbf16, #tpu.memory_space<vmem>>, vector<1x128x128xbf16>
    %52 = vector.shape_cast %51 : vector<1x128x128xbf16> to vector<128x128xbf16>
    %cst_54 = arith.constant dense<0.000000e+00> : vector<64x128xf32>
    %53 = tpu.matmul %50, %52, %cst_54 {dimension_numbers = #tpu.dot_dimension_numbers<[1], [0], [0], [1], [0, 0, 1, 1], [], []>} : vector<64x128xbf16>, vector<128x128xbf16>, vector<64x128xf32> -> vector<64x128xf32>
    %54 = arith.addf %47, %53 : vector<64x128xf32>
    %c0_55 = arith.constant 0 : index
    %c2_56 = arith.constant 2 : index
    %c2_57 = arith.constant 2 : index
    %c0_58 = arith.constant 0 : index
    %55 = vector.load %arg2[%c0_55, %c2_56, %c2_57, %c0_58] : memref<1x10x10x128xbf16, #tpu.memory_space<vmem>>, vector<1x8x8x128xbf16>
    %56 = vector.shape_cast %55 : vector<1x8x8x128xbf16> to vector<8x8x128xbf16>
    %57 = vector.shape_cast %56 : vector<8x8x128xbf16> to vector<64x128xbf16>
    %c8 = arith.constant 8 : index
    %c0_59 = arith.constant 0 : index
    %c0_60 = arith.constant 0 : index
    %58 = vector.load %arg3[%c8, %c0_59, %c0_60] : memref<9x128x128xbf16, #tpu.memory_space<vmem>>, vector<1x128x128xbf16>
    %59 = vector.shape_cast %58 : vector<1x128x128xbf16> to vector<128x128xbf16>
    %cst_61 = arith.constant dense<0.000000e+00> : vector<64x128xf32>
    %60 = tpu.matmul %57, %59, %cst_61 {dimension_numbers = #tpu.dot_dimension_numbers<[1], [0], [0], [1], [0, 0, 1, 1], [], []>} : vector<64x128xbf16>, vector<128x128xbf16>, vector<64x128xf32> -> vector<64x128xf32>
    %61 = arith.addf %54, %60 : vector<64x128xf32>
    %c0_62 = arith.constant 0 : index
    %c0_63 = arith.constant 0 : index
    %62 = vector.load %arg4[%c0_62, %c0_63] : memref<2x128xf32, #tpu.memory_space<vmem>>, vector<1x128xf32>
    %63 = vector.broadcast %62 : vector<1x128xf32> to vector<64x128xf32>
    %64 = arith.mulf %61, %63 : vector<64x128xf32>
    %c1_64 = arith.constant 1 : index
    %c0_65 = arith.constant 0 : index
    %65 = vector.load %arg4[%c1_64, %c0_65] : memref<2x128xf32, #tpu.memory_space<vmem>>, vector<1x128xf32>
    %66 = vector.broadcast %65 : vector<1x128xf32> to vector<64x128xf32>
    %67 = arith.addf %64, %66 : vector<64x128xf32>
    %cst_66 = arith.constant 0.000000e+00 : f32
    %68 = vector.broadcast %cst_66 : f32 to vector<64x128xf32>
    %69 = arith.maximumf %67, %68 : vector<64x128xf32>
    %70 = vector.shape_cast %69 : vector<64x128xf32> to vector<8x8x128xf32>
    %71 = arith.truncf %70 : vector<8x8x128xf32> to vector<8x8x128xbf16>
    %c0_67 = arith.constant 0 : index
    %c0_68 = arith.constant 0 : index
    %c0_69 = arith.constant 0 : index
    %c0_70 = arith.constant 0 : index
    %72 = vector.load %arg5[%c0_67, %c0_68, %c0_69, %c0_70] : memref<1x8x8x128xbf16, #tpu.memory_space<vmem>>, vector<1x8x8x128xbf16>
    %73 = vector.shape_cast %72 : vector<1x8x8x128xbf16> to vector<8x8x128xbf16>
    %74 = vector.shape_cast %71 : vector<8x8x128xbf16> to vector<1x8x8x128xbf16>
    tpu.vector_store %arg5[%c0_67, %c0_68, %c0_69, %c0_70], %74 {strides = array<i32>} : memref<1x8x8x128xbf16, #tpu.memory_space<vmem>>, vector<1x8x8x128xbf16>,
    return
  }
  func.func @transform_0(%arg0: i32, %arg1: i32) -> (i32, i32, i32, i32) {
    %c0_i32 = arith.constant 0 : i32
    %c0_i32_0 = arith.constant 0 : i32
    %c0_i32_1 = arith.constant 0 : i32
    %c0_i32_2 = arith.constant 0 : i32
    return %arg0, %c0_i32, %c0_i32_0, %c0_i32_1 : i32, i32, i32, i32
  }
  func.func @transform_1(%arg0: i32, %arg1: i32) -> (i32, i32, i32) {
    %c0_i32 = arith.constant 0 : i32
    %c0_i32_0 = arith.constant 0 : i32
    %c0_i32_1 = arith.constant 0 : i32
    return %c0_i32, %c0_i32_0, %arg1 : i32, i32, i32
  }
  func.func @transform_2(%arg0: i32, %arg1: i32) -> (i32, i32) {
    %c0_i32 = arith.constant 0 : i32
    %c0_i32_0 = arith.constant 0 : i32
    return %c0_i32, %arg1 : i32, i32
  }
  func.func @transform_3(%arg0: i32, %arg1: i32) -> (i32, i32, i32, i32) {
    %c0_i32 = arith.constant 0 : i32
    %c0_i32_0 = arith.constant 0 : i32
    %c0_i32_1 = arith.constant 0 : i32
    return %arg0, %c0_i32, %c0_i32_0, %arg1 : i32, i32, i32, i32
  }
}

module attributes {stable_mosaic.version = 11 : i64} {
  func.func @kernel(%arg0: i32, %arg1: i32, %arg2: memref<1x10x10x128xbf16, #tpu.memory_space<vmem>>, %arg3: memref<9x128x128xbf16, #tpu.memory_space<vmem>>, %arg4: memref<2x128xf32, #tpu.memory_space<vmem>>, %arg5: memref<1x8x8x128xf32, #tpu.memory_space<vmem>>, %arg6: memref<1x8x8x128xf32, #tpu.memory_space<vmem>>) attributes {dimension_semantics = [#tpu.dimension_semantics<parallel>, #tpu.dimension_semantics<parallel>], iteration_bounds = array<i64: 2, 1>, scalar_prefetch = 0 : i64, scratch_operands = 0 : i64, tpu.core_type = #tpu.core_type<tc>, window_params = [{transform_indices = @transform_0, window_bounds = array<i64: 1, 10, 10, 128>}, {transform_indices = @transform_1, window_bounds = array<i64: 9, 128, 128>}, {transform_indices = @transform_2, window_bounds = array<i64: 2, 128>}, {transform_indices = @transform_3, window_bounds = array<i64: 1, 8, 8, 128>}, {transform_indices = @transform_4, window_bounds = array<i64: 1, 8, 8, 128>}]} {
    %c0 = arith.constant 0 : index
    %c0_0 = arith.constant 0 : index
    %c0_1 = arith.constant 0 : index
    %c0_2 = arith.constant 0 : index
    %0 = vector.load %arg2[%c0, %c0_0, %c0_1, %c0_2] : memref<1x10x10x128xbf16, #tpu.memory_space<vmem>>, vector<1x8x8x128xbf16>
    %1 = vector.shape_cast %0 : vector<1x8x8x128xbf16> to vector<8x8x128xbf16>
    %2 = vector.shape_cast %1 : vector<8x8x128xbf16> to vector<64x128xbf16>
    %c0_3 = arith.constant 0 : index
    %c0_4 = arith.constant 0 : index
    %c0_5 = arith.constant 0 : index
    %3 = vector.load %arg3[%c0_3, %c0_4, %c0_5] : memref<9x128x128xbf16, #tpu.memory_space<vmem>>, vector<1x128x128xbf16>
    %4 = vector.shape_cast %3 : vector<1x128x128xbf16> to vector<128x128xbf16>
    %cst = arith.constant dense<0.000000e+00> : vector<64x128xf32>
    %5 = tpu.matmul %2, %4, %cst {dimension_numbers = #tpu.dot_dimension_numbers<[1], [0], [0], [1], [0, 0, 1, 1], [], []>} : vector<64x128xbf16>, vector<128x128xbf16>, vector<64x128xf32> -> vector<64x128xf32>
    %c0_6 = arith.constant 0 : index
    %c0_7 = arith.constant 0 : index
    %c1 = arith.constant 1 : index
    %c0_8 = arith.constant 0 : index
    %6 = vector.load %arg2[%c0_6, %c0_7, %c1, %c0_8] : memref<1x10x10x128xbf16, #tpu.memory_space<vmem>>, vector<1x8x8x128xbf16>
    %7 = vector.shape_cast %6 : vector<1x8x8x128xbf16> to vector<8x8x128xbf16>
    %8 = vector.shape_cast %7 : vector<8x8x128xbf16> to vector<64x128xbf16>
    %c1_9 = arith.constant 1 : index
    %c0_10 = arith.constant 0 : index
    %c0_11 = arith.constant 0 : index
    %9 = vector.load %arg3[%c1_9, %c0_10, %c0_11] : memref<9x128x128xbf16, #tpu.memory_space<vmem>>, vector<1x128x128xbf16>
    %10 = vector.shape_cast %9 : vector<1x128x128xbf16> to vector<128x128xbf16>
    %cst_12 = arith.constant dense<0.000000e+00> : vector<64x128xf32>
    %11 = tpu.matmul %8, %10, %cst_12 {dimension_numbers = #tpu.dot_dimension_numbers<[1], [0], [0], [1], [0, 0, 1, 1], [], []>} : vector<64x128xbf16>, vector<128x128xbf16>, vector<64x128xf32> -> vector<64x128xf32>
    %12 = arith.addf %5, %11 : vector<64x128xf32>
    %c0_13 = arith.constant 0 : index
    %c0_14 = arith.constant 0 : index
    %c2 = arith.constant 2 : index
    %c0_15 = arith.constant 0 : index
    %13 = vector.load %arg2[%c0_13, %c0_14, %c2, %c0_15] : memref<1x10x10x128xbf16, #tpu.memory_space<vmem>>, vector<1x8x8x128xbf16>
    %14 = vector.shape_cast %13 : vector<1x8x8x128xbf16> to vector<8x8x128xbf16>
    %15 = vector.shape_cast %14 : vector<8x8x128xbf16> to vector<64x128xbf16>
    %c2_16 = arith.constant 2 : index
    %c0_17 = arith.constant 0 : index
    %c0_18 = arith.constant 0 : index
    %16 = vector.load %arg3[%c2_16, %c0_17, %c0_18] : memref<9x128x128xbf16, #tpu.memory_space<vmem>>, vector<1x128x128xbf16>
    %17 = vector.shape_cast %16 : vector<1x128x128xbf16> to vector<128x128xbf16>
    %cst_19 = arith.constant dense<0.000000e+00> : vector<64x128xf32>
    %18 = tpu.matmul %15, %17, %cst_19 {dimension_numbers = #tpu.dot_dimension_numbers<[1], [0], [0], [1], [0, 0, 1, 1], [], []>} : vector<64x128xbf16>, vector<128x128xbf16>, vector<64x128xf32> -> vector<64x128xf32>
    %19 = arith.addf %12, %18 : vector<64x128xf32>
    %c0_20 = arith.constant 0 : index
    %c1_21 = arith.constant 1 : index
    %c0_22 = arith.constant 0 : index
    %c0_23 = arith.constant 0 : index
    %20 = vector.load %arg2[%c0_20, %c1_21, %c0_22, %c0_23] : memref<1x10x10x128xbf16, #tpu.memory_space<vmem>>, vector<1x8x8x128xbf16>
    %21 = vector.shape_cast %20 : vector<1x8x8x128xbf16> to vector<8x8x128xbf16>
    %22 = vector.shape_cast %21 : vector<8x8x128xbf16> to vector<64x128xbf16>
    %c3 = arith.constant 3 : index
    %c0_24 = arith.constant 0 : index
    %c0_25 = arith.constant 0 : index
    %23 = vector.load %arg3[%c3, %c0_24, %c0_25] : memref<9x128x128xbf16, #tpu.memory_space<vmem>>, vector<1x128x128xbf16>
    %24 = vector.shape_cast %23 : vector<1x128x128xbf16> to vector<128x128xbf16>
    %cst_26 = arith.constant dense<0.000000e+00> : vector<64x128xf32>
    %25 = tpu.matmul %22, %24, %cst_26 {dimension_numbers = #tpu.dot_dimension_numbers<[1], [0], [0], [1], [0, 0, 1, 1], [], []>} : vector<64x128xbf16>, vector<128x128xbf16>, vector<64x128xf32> -> vector<64x128xf32>
    %26 = arith.addf %19, %25 : vector<64x128xf32>
    %c0_27 = arith.constant 0 : index
    %c1_28 = arith.constant 1 : index
    %c1_29 = arith.constant 1 : index
    %c0_30 = arith.constant 0 : index
    %27 = vector.load %arg2[%c0_27, %c1_28, %c1_29, %c0_30] : memref<1x10x10x128xbf16, #tpu.memory_space<vmem>>, vector<1x8x8x128xbf16>
    %28 = vector.shape_cast %27 : vector<1x8x8x128xbf16> to vector<8x8x128xbf16>
    %29 = vector.shape_cast %28 : vector<8x8x128xbf16> to vector<64x128xbf16>
    %c4 = arith.constant 4 : index
    %c0_31 = arith.constant 0 : index
    %c0_32 = arith.constant 0 : index
    %30 = vector.load %arg3[%c4, %c0_31, %c0_32] : memref<9x128x128xbf16, #tpu.memory_space<vmem>>, vector<1x128x128xbf16>
    %31 = vector.shape_cast %30 : vector<1x128x128xbf16> to vector<128x128xbf16>
    %cst_33 = arith.constant dense<0.000000e+00> : vector<64x128xf32>
    %32 = tpu.matmul %29, %31, %cst_33 {dimension_numbers = #tpu.dot_dimension_numbers<[1], [0], [0], [1], [0, 0, 1, 1], [], []>} : vector<64x128xbf16>, vector<128x128xbf16>, vector<64x128xf32> -> vector<64x128xf32>
    %33 = arith.addf %26, %32 : vector<64x128xf32>
    %c0_34 = arith.constant 0 : index
    %c1_35 = arith.constant 1 : index
    %c2_36 = arith.constant 2 : index
    %c0_37 = arith.constant 0 : index
    %34 = vector.load %arg2[%c0_34, %c1_35, %c2_36, %c0_37] : memref<1x10x10x128xbf16, #tpu.memory_space<vmem>>, vector<1x8x8x128xbf16>
    %35 = vector.shape_cast %34 : vector<1x8x8x128xbf16> to vector<8x8x128xbf16>
    %36 = vector.shape_cast %35 : vector<8x8x128xbf16> to vector<64x128xbf16>
    %c5 = arith.constant 5 : index
    %c0_38 = arith.constant 0 : index
    %c0_39 = arith.constant 0 : index
    %37 = vector.load %arg3[%c5, %c0_38, %c0_39] : memref<9x128x128xbf16, #tpu.memory_space<vmem>>, vector<1x128x128xbf16>
    %38 = vector.shape_cast %37 : vector<1x128x128xbf16> to vector<128x128xbf16>
    %cst_40 = arith.constant dense<0.000000e+00> : vector<64x128xf32>
    %39 = tpu.matmul %36, %38, %cst_40 {dimension_numbers = #tpu.dot_dimension_numbers<[1], [0], [0], [1], [0, 0, 1, 1], [], []>} : vector<64x128xbf16>, vector<128x128xbf16>, vector<64x128xf32> -> vector<64x128xf32>
    %40 = arith.addf %33, %39 : vector<64x128xf32>
    %c0_41 = arith.constant 0 : index
    %c2_42 = arith.constant 2 : index
    %c0_43 = arith.constant 0 : index
    %c0_44 = arith.constant 0 : index
    %41 = vector.load %arg2[%c0_41, %c2_42, %c0_43, %c0_44] : memref<1x10x10x128xbf16, #tpu.memory_space<vmem>>, vector<1x8x8x128xbf16>
    %42 = vector.shape_cast %41 : vector<1x8x8x128xbf16> to vector<8x8x128xbf16>
    %43 = vector.shape_cast %42 : vector<8x8x128xbf16> to vector<64x128xbf16>
    %c6 = arith.constant 6 : index
    %c0_45 = arith.constant 0 : index
    %c0_46 = arith.constant 0 : index
    %44 = vector.load %arg3[%c6, %c0_45, %c0_46] : memref<9x128x128xbf16, #tpu.memory_space<vmem>>, vector<1x128x128xbf16>
    %45 = vector.shape_cast %44 : vector<1x128x128xbf16> to vector<128x128xbf16>
    %cst_47 = arith.constant dense<0.000000e+00> : vector<64x128xf32>
    %46 = tpu.matmul %43, %45, %cst_47 {dimension_numbers = #tpu.dot_dimension_numbers<[1], [0], [0], [1], [0, 0, 1, 1], [], []>} : vector<64x128xbf16>, vector<128x128xbf16>, vector<64x128xf32> -> vector<64x128xf32>
    %47 = arith.addf %40, %46 : vector<64x128xf32>
    %c0_48 = arith.constant 0 : index
    %c2_49 = arith.constant 2 : index
    %c1_50 = arith.constant 1 : index
    %c0_51 = arith.constant 0 : index
    %48 = vector.load %arg2[%c0_48, %c2_49, %c1_50, %c0_51] : memref<1x10x10x128xbf16, #tpu.memory_space<vmem>>, vector<1x8x8x128xbf16>
    %49 = vector.shape_cast %48 : vector<1x8x8x128xbf16> to vector<8x8x128xbf16>
    %50 = vector.shape_cast %49 : vector<8x8x128xbf16> to vector<64x128xbf16>
    %c7 = arith.constant 7 : index
    %c0_52 = arith.constant 0 : index
    %c0_53 = arith.constant 0 : index
    %51 = vector.load %arg3[%c7, %c0_52, %c0_53] : memref<9x128x128xbf16, #tpu.memory_space<vmem>>, vector<1x128x128xbf16>
    %52 = vector.shape_cast %51 : vector<1x128x128xbf16> to vector<128x128xbf16>
    %cst_54 = arith.constant dense<0.000000e+00> : vector<64x128xf32>
    %53 = tpu.matmul %50, %52, %cst_54 {dimension_numbers = #tpu.dot_dimension_numbers<[1], [0], [0], [1], [0, 0, 1, 1], [], []>} : vector<64x128xbf16>, vector<128x128xbf16>, vector<64x128xf32> -> vector<64x128xf32>
    %54 = arith.addf %47, %53 : vector<64x128xf32>
    %c0_55 = arith.constant 0 : index
    %c2_56 = arith.constant 2 : index
    %c2_57 = arith.constant 2 : index
    %c0_58 = arith.constant 0 : index
    %55 = vector.load %arg2[%c0_55, %c2_56, %c2_57, %c0_58] : memref<1x10x10x128xbf16, #tpu.memory_space<vmem>>, vector<1x8x8x128xbf16>
    %56 = vector.shape_cast %55 : vector<1x8x8x128xbf16> to vector<8x8x128xbf16>
    %57 = vector.shape_cast %56 : vector<8x8x128xbf16> to vector<64x128xbf16>
    %c8 = arith.constant 8 : index
    %c0_59 = arith.constant 0 : index
    %c0_60 = arith.constant 0 : index
    %58 = vector.load %arg3[%c8, %c0_59, %c0_60] : memref<9x128x128xbf16, #tpu.memory_space<vmem>>, vector<1x128x128xbf16>
    %59 = vector.shape_cast %58 : vector<1x128x128xbf16> to vector<128x128xbf16>
    %cst_61 = arith.constant dense<0.000000e+00> : vector<64x128xf32>
    %60 = tpu.matmul %57, %59, %cst_61 {dimension_numbers = #tpu.dot_dimension_numbers<[1], [0], [0], [1], [0, 0, 1, 1], [], []>} : vector<64x128xbf16>, vector<128x128xbf16>, vector<64x128xf32> -> vector<64x128xf32>
    %61 = arith.addf %54, %60 : vector<64x128xf32>
    %c0_62 = arith.constant 0 : index
    %c0_63 = arith.constant 0 : index
    %62 = vector.load %arg4[%c0_62, %c0_63] : memref<2x128xf32, #tpu.memory_space<vmem>>, vector<1x128xf32>
    %63 = vector.broadcast %62 : vector<1x128xf32> to vector<64x128xf32>
    %64 = arith.mulf %61, %63 : vector<64x128xf32>
    %c1_64 = arith.constant 1 : index
    %c0_65 = arith.constant 0 : index
    %65 = vector.load %arg4[%c1_64, %c0_65] : memref<2x128xf32, #tpu.memory_space<vmem>>, vector<1x128xf32>
    %66 = vector.broadcast %65 : vector<1x128xf32> to vector<64x128xf32>
    %67 = arith.addf %64, %66 : vector<64x128xf32>
    %c0_66 = arith.constant 0 : index
    %c0_67 = arith.constant 0 : index
    %c0_68 = arith.constant 0 : index
    %c0_69 = arith.constant 0 : index
    %68 = vector.load %arg5[%c0_66, %c0_67, %c0_68, %c0_69] : memref<1x8x8x128xf32, #tpu.memory_space<vmem>>, vector<1x8x8x128xf32>
    %69 = vector.shape_cast %68 : vector<1x8x8x128xf32> to vector<8x8x128xf32>
    %70 = vector.shape_cast %69 : vector<8x8x128xf32> to vector<64x128xf32>
    %71 = arith.addf %67, %70 : vector<64x128xf32>
    %cst_70 = arith.constant 0.000000e+00 : f32
    %72 = vector.broadcast %cst_70 : f32 to vector<64x128xf32>
    %73 = arith.maximumf %71, %72 : vector<64x128xf32>
    %74 = vector.shape_cast %73 : vector<64x128xf32> to vector<8x8x128xf32>
    %c0_71 = arith.constant 0 : index
    %c0_72 = arith.constant 0 : index
    %c0_73 = arith.constant 0 : index
    %c0_74 = arith.constant 0 : index
    %75 = vector.load %arg6[%c0_71, %c0_72, %c0_73, %c0_74] : memref<1x8x8x128xf32, #tpu.memory_space<vmem>>, vector<1x8x8x128xf32>
    %76 = vector.shape_cast %75 : vector<1x8x8x128xf32> to vector<8x8x128xf32>
    %77 = vector.shape_cast %74 : vector<8x8x128xf32> to vector<1x8x8x128xf32>
    tpu.vector_store %arg6[%c0_71, %c0_72, %c0_73, %c0_74], %77 {strides = array<i32>} : memref<1x8x8x128xf32, #tpu.memory_space<vmem>>, vector<1x8x8x128xf32>,
    return
  }
  func.func @transform_0(%arg0: i32, %arg1: i32) -> (i32, i32, i32, i32) {
    %c0_i32 = arith.constant 0 : i32
    %c0_i32_0 = arith.constant 0 : i32
    %c0_i32_1 = arith.constant 0 : i32
    %c0_i32_2 = arith.constant 0 : i32
    return %arg0, %c0_i32, %c0_i32_0, %c0_i32_1 : i32, i32, i32, i32
  }
  func.func @transform_1(%arg0: i32, %arg1: i32) -> (i32, i32, i32) {
    %c0_i32 = arith.constant 0 : i32
    %c0_i32_0 = arith.constant 0 : i32
    %c0_i32_1 = arith.constant 0 : i32
    return %c0_i32, %c0_i32_0, %arg1 : i32, i32, i32
  }
  func.func @transform_2(%arg0: i32, %arg1: i32) -> (i32, i32) {
    %c0_i32 = arith.constant 0 : i32
    %c0_i32_0 = arith.constant 0 : i32
    return %c0_i32, %arg1 : i32, i32
  }
  func.func @transform_3(%arg0: i32, %arg1: i32) -> (i32, i32, i32, i32) {
    %c0_i32 = arith.constant 0 : i32
    %c0_i32_0 = arith.constant 0 : i32
    %c0_i32_1 = arith.constant 0 : i32
    return %arg0, %c0_i32, %c0_i32_0, %arg1 : i32, i32, i32, i32
  }
  func.func @transform_4(%arg0: i32, %arg1: i32) -> (i32, i32, i32, i32) {
    %c0_i32 = arith.constant 0 : i32
    %c0_i32_0 = arith.constant 0 : i32
    %c0_i32_1 = arith.constant 0 : i32
    return %arg0, %c0_i32, %c0_i32_0, %arg1 : i32, i32, i32, i32
  }
}

</mosaic_0001>

<bundles_post_ra>
// kernel: _lambda_.4
= control target key start
LH: loop header
LB: loop body
LE: loop exit
PB: predicated region body
PF: predicated region fallthrough
CT: control target
= control target key end

     0   :  { %s2667_s12 = smov 0   ;;  %s2669_s13 = smov 0   ;;  %s3022_s0 = inlined_call_operand.vmem [shape: bf16[8,9,9,64], index: 0, kind: input, shape index: {}]   ;;  %s3023_s1 = inlined_call_operand.vmem [shape: bf16[9,64,128], index: 1, kind: input, shape index: {}]   ;;  %s3024_s2 = inlined_call_operand.vmem [shape: f32[2,128], index: 2, kind: input, shape index: {}]   ;;  %s3025_s3 = inlined_call_operand.vmem [shape: bf16[2,8,8,128], index: 3, kind: output, shape index: {}]  }
   0x1   :  { %s2671_s14 = smov 0  }
   0x2 LB: > { %s25_s15 = sadd.s32 1, %s2641_s13  ;;  %p2037_p0 = scmp.ge.s32.totalorder %s2645_s14, 1  ;;  %s2645_s14 = sphi %s2671_s14, %s13_s14   ;;  %s2641_s13 = sphi %s2669_s13, %s3035_s13   ;;  %s2637_s12 = sphi %s2667_s12, %s3034_s12  }
   0x3   : > { %p27_p1 = scmp.ge.s32.totalorder %s25_s15, 2  ;;  %p171_p2 = scmp.lt.s32.totalorder %s2645_s14, 3 }
   0x5   : > { %s3037_s15 = smov (%p27_p1, %s25_s15), 0  ;;  %p172_p3 = pnand %p2037_p0, %p171_p2 }
   0x7   : > { %175 = sbr.rel (%p172_p3) target bundleno = 314 (0x13a), region = 32 }
   0xc   : > { %v2563_v0 = vld [vmem:[%s3023_s1 + $0x38] sm:$0xff]   ;;  %s2038_s18 = sshll.u32 %s2637_s12, 2  ;;  %v2565_v2 = vld [vmem:[%s3023_s1 + $0x30] sm:$0xff]   ;;  %v2567_v4 = vld [vmem:[%s3023_s1 + $0x28] sm:$0xff]   ;;  %vm309_vm0 = vcmask 523264   ;;  %p222_p5 = scmp.lt.s32.totalorder %s2637_s12, 1 }
   0xd   : > { %v2564_v1 = vld [vmem:[%s3023_s1 + $0x18] sm:$0xff]   ;;  %p208_p4 = scmp.lt.s32.totalorder %s2038_s18, 7  ;;  %2386 = vmatprep.subr.bf16.mxu0 %v2563_v0  ;;  %v2566_v3 = vld [vmem:[%s3023_s1 + $0x10] sm:$0xff]   ;;  %v2568_v5 = vld [vmem:[%s3023_s1 + $0x8] sm:$0xff]   ;;  %vm524_vm1 = vsmask.f32 3328 }
   0xe   : > { %2402 = vmatprep.subr.bf16.mxu1 %v2564_v1  ;;  %2387 = vmatpush3.bf16.msra.mxu0 %v2563_v0  ;;  %v2569_v6 = vld [vmem:[%s3023_s1 + $0x20] sm:$0xff]   ;;  %v2575_v11 = vld [vmem:[%s3023_s1 + $0x58] sm:$0xff]   ;;  %v2577_v14 = vld [vmem:[%s3023_s1 + $0x50] sm:$0xff]   ;;  %vm525_vm2 = vsmask.f32 7440  ;;  %s3041_s12 = smov (!%p222_p5, %s2637_s12), 1 }
   0xf   : > { %s3039_s18 = smov (!%p208_p4, %s2038_s18), 7  ;;  %2403 = vmatpush3.bf16.msra.mxu1 %v2564_v1  ;;  %2388 = vmatprep.subr.bf16.mxu0 %v2565_v2  ;;  %v2570_v7 = vld [vmem:[%s3023_s1] sm:$0xff]   ;;  %v2576_v12 = vld [vmem:[%s3023_s1 + $0x78] sm:$0xff]   ;;  %v2578_v15 = vld [vmem:[%s3023_s1 + $0x70] sm:$0xff]  }
  0x10   : > { %2404 = vmatprep.subr.bf16.mxu1 %v2566_v3  ;;  %s2538_s29 = smul.u32 72, %s3039_s18  ;;  %v2583_v19 = vld [vmem:[%s3023_s1 + $0x48] sm:$0xff]   ;;  %v2585_v22 = vld [vmem:[%s3023_s1 + $0x40] sm:$0xff]   ;;  %v2589_v49 = vld [vmem:[%s3023_s1 + $0x98] sm:$0xff]  }
  0x11   : > { %v2584_v21 = vld [vmem:[%s3023_s1 + $0x68] sm:$0xff]   ;;  %v2586_v23 = vld [vmem:[%s3023_s1 + $0x60] sm:$0xff]   ;;  %vm2772_vm3 = vmor %vm524_vm1, %vm525_vm2 }
  0x12   : > { %2389 = vmatpush3.bf16.msra.mxu0 %v2565_v2  ;;  %s2715_s9 = scalar_lea.vmem %s3022_s0, %s2538_s29  ;;  %v2590_v55 = vld [vmem:[%s3023_s1 + $0xb8] sm:$0xff]   ;;  %s2290_s29 = sshll.u32 %s3041_s12, 5 }
  0x13   : > { %2405 = vmatpush3.bf16.msra.mxu1 %v2566_v3  ;;  %2390 = vmatprep.subr.bf16.mxu0 %v2567_v4  ;;  %v2571_v8 = vld [vmem:[%s2715_s9 + $0x48] ss:$8 sps:$4 sm:$0xff]   ;;  %v2573_v10 = vld [vmem:[%s2715_s9 + $0x58] ss:$8 sps:$4 sm:$0xff]   ;;  %v509_v25 = vld [vmem:[%s2715_s9 + $0x4] sm:$0x1]  ;;  %s229_s5 = scalar_lea.vmem %s3025_s3, %s2290_s29 }
  0x14   : > { %2406 = vmatprep.subr.bf16.mxu1 %v2568_v5  ;;  %v2572_v9 = vld [vmem:[%s2715_s9] ss:$8 sps:$4 sm:$0xff]   ;;  %2394 = vmatprep.mubr.msk.bf16.mxu0 %vm309_vm0, %v2571_v8  ;;  %v2574_v13 = vld [vmem:[%s2715_s9 + $0x10] ss:$8 sps:$4 sm:$0xff]   ;;  %v511_v27 = vld [vmem:[%s2715_s9 + $0xc] sm:$0x1] }
  0x15   : > { %2410 = vmatprep.mubr.msk.bf16.mxu1 %vm309_vm0, %v2572_v9  ;;  %v2579_v16 = vld [vmem:[%s2715_s9 + $0x68] ss:$8 sps:$4 sm:$0xff]   ;;  %v2581_v18 = vld [vmem:[%s2715_s9 + $0x78] ss:$8 sps:$4 sm:$0xff]   ;;  %v537_v30 = vshll.u32 %v509_v25, 16  ;;  %v551_v33 = vshll.u32 %v511_v27, 16 }
  0x16   : > { %2391 = vmatpush3.bf16.msra.mxu0 %v2567_v4  ;;  %v2580_v17 = vld [vmem:[%s2715_s9 + $0x20] ss:$8 sps:$4 sm:$0xff]   ;;  %v2582_v20 = vld [vmem:[%s2715_s9 + $0x30] ss:$8 sps:$4 sm:$0xff]   ;;  %v513_v42 = vld [vmem:[%s2715_s9 + $0x14] sm:$0x1] }
  0x17   : > { %2407 = vmatpush3.bf16.msra.mxu1 %v2568_v5  ;;  %2392 = vmatprep.subr.bf16.mxu0 %v2569_v6  ;;  %v508_v24 = vld [vmem:[%s2715_s9] sm:$0xf]  ;;  %v510_v26 = vld [vmem:[%s2715_s9 + $0x8] sm:$0xf]  ;;  %v2587_v34 = vld [vmem:[%s2715_s9 + $0x90] ss:$8 sps:$4 sm:$0xff]  }
  0x18   : > { %2408 = vmatprep.subr.bf16.mxu1 %v2570_v7  ;;  %v528_v28 = vshrl.u32 %v508_v24, 16  ;;  %v531_v29 = vshll.u32 %v508_v24, 16  ;;  %v542_v31 = vshrl.u32 %v510_v26, 16  ;;  %v545_v32 = vshll.u32 %v510_v26, 16  ;;  %v512_v39 = vld [vmem:[%s2715_s9 + $0x10] sm:$0xf] }
  0x19   : > { %v539_v37 = vrot.slane %v537_v30, 5  ;;  %v553_v41 = vrot.slane %v551_v33, 5  ;;  %v514_v43 = vld [vmem:[%s2715_s9 + $0x18] sm:$0xf]  ;;  %v515_v45 = vld [vmem:[%s2715_s9 + $0x1c] sm:$0x1] }
  0x1a   : > { %2393 = vmatpush3.bf16.msra.mxu0 %v2569_v6  ;;  %v530_v35 = vrot.slane %v528_v28, 4  ;;  %v533_v36 = vrot.slane %v531_v29, 5  ;;  %v544_v38 = vrot.slane %v542_v31, 4  ;;  %v547_v40 = vrot.slane %v545_v32, 5  ;;  %v2588_v0 = vld [vmem:[%s2715_s9 + $0xa0] ss:$8 sps:$4 sm:$0xff]  }
  0x1b   : > { %2409 = vmatpush3.bf16.msra.mxu1 %v2570_v7  ;;  %2418 = vmatprep.subr.bf16.mxu0 %v2575_v11  ;;  %v556_v46 = vshrl.u32 %v512_v39, 16  ;;  %v559_v47 = vshll.u32 %v512_v39, 16  ;;  %v565_v48 = vshll.u32 %v513_v42, 16  ;;  %v570_v52 = vshrl.u32 %v514_v43, 16  ;;  %v2592_v8 = vld [vmem:[%s3023_s1 + $0xb0] sm:$0xff]   ;;  %v2596_v25 = vld [vmem:[%s3023_s1 + $0xa8] sm:$0xff]  }
  0x1c   : > { %2434 = vmatprep.subr.bf16.mxu1 %v2576_v12  ;;  %v534_v44 = vor.u32 %v533_v36, %v530_v35  ;;  %v548_v51 = vor.u32 %v547_v40, %v544_v38  ;;  %v573_v53 = vshll.u32 %v514_v43, 16  ;;  %v579_v54 = vshll.u32 %v515_v45, 16  ;;  %v516_v9 = vld [vmem:[%s2715_s9 + $0x20] sm:$0xf]  ;;  %v2593_v29 = vld [vmem:[%s2715_s9 + $0xb0] ss:$8 sps:$4 sm:$0xff]  }
  0x1d   : > { %2395 = vmatmul.mubr.msk.bf16.vlgmr.msra.gmra.mxu0 %vm309_vm0, %v2573_v10  ;;  %v558_v57 = vrot.slane %v556_v46, 4  ;;  %v561_v58 = vrot.slane %v559_v47, 5  ;;  %v567_v59 = vrot.slane %v565_v48, 5  ;;  %v572_v61 = vrot.slane %v570_v52, 4  ;;  %v517_v10 = vld [vmem:[%s2715_s9 + $0x24] sm:$0x1] }
  0x1e   : > { %2411 = vmatmul.mubr.msk.bf16.vlgmr.msra.gmra.mxu1 %vm309_vm0, %v2574_v13  ;;  %2419 = vmatpush3.bf16.msra.mxu0 %v2575_v11  ;;  %v535_v56 = vrot.slane %v534_v44, 4  ;;  %v549_v60 = vrot.slane %v548_v51, 4  ;;  %v575_v62 = vrot.slane %v573_v53, 5  ;;  %v581_v63 = vrot.slane %v579_v54, 5  ;;  %v519_v13 = vld [vmem:[%s2715_s9 + $0x2c] sm:$0x1] }
  0x1f   : > { %2435 = vmatpush3.bf16.msra.mxu1 %v2576_v12  ;;  %2420 = vmatprep.subr.bf16.mxu0 %v2577_v14  ;;  %v562_v2 = vor.u32 %v561_v58, %v558_v57  ;;  %v518_v12 = vld [vmem:[%s2715_s9 + $0x28] sm:$0xf]  ;;  %v607_v24 = vshll.u32 %v519_v13, 16  ;;  %v520_v32 = vld [vmem:[%s2715_s9 + $0x30] sm:$0xf]  ;;  %v2598_v35 = vld [vmem:[%s3023_s1 + $0xa0] sm:$0xff]  }
  0x20   : > { %2436 = vmatprep.subr.bf16.mxu1 %v2578_v15  ;;  %2398 = vmatprep.mubr.msk.bf16.mxu0 %vm309_vm0, %v2579_v16  ;;  %v540_v1 = vsel %vm2772_vm3, %v535_v56, %v539_v37  ;;  %v554_v3 = vsel %vm2772_vm3, %v549_v60, %v553_v41  ;;  %v576_v4 = vor.u32 %v575_v62, %v572_v61  ;;  %v521_v33 = vld [vmem:[%s2715_s9 + $0x34] sm:$0x1]  ;;  %v522_v37 = vld [vmem:[%s2715_s9 + $0x38] sm:$0xf]  ;;  %v523_v38 = vld [vmem:[%s2715_s9 + $0x3c] sm:$0x1] }
  0x21   : > { %2414 = vmatprep.mubr.msk.bf16.mxu1 %vm309_vm0, %v2580_v17  ;;  %v2090_v5 = vcombine.low %v540_v1, %v554_v3  ;;  %v563_v6 = vrot.slane %v562_v2, 4  ;;  %v2591_v17 = vld [vmem:[%s3023_s1 + $0x90] sm:$0xff]   ;;  %v609_v31 = vrot.slane %v607_v24, 5  ;;  %v612_v39 = vshrl.u32 %v520_v32, 16  ;;  %v2594_v54 = vld [vmem:[%s2715_s9 + $0xc0] ss:$8 sps:$4 sm:$0xff]  }
  0x22   : > { %2421 = vmatpush3.bf16.msra.mxu0 %v2577_v14  ;;  %v577_v7 = vrot.slane %v576_v4, 4  ;;  %v584_v14 = vshrl.u32 %v516_v9, 16  ;;  %v615_v40 = vshll.u32 %v520_v32, 16  ;;  %v621_v42 = vshll.u32 %v521_v33, 16  ;;  %v2599_v1 = vld [vmem:[%s2715_s9 + $0xd8] ss:$8 sps:$4 sm:$0xff]  }
  0x23   : > { %2437 = vmatpush3.bf16.msra.mxu1 %v2578_v15  ;;  %2422 = vmatprep.subr.bf16.mxu0 %v2583_v19  ;;  %v568_v11 = vsel %vm2772_vm3, %v563_v6, %v567_v59  ;;  %v587_v15 = vshll.u32 %v516_v9, 16  ;;  %v626_v43 = vshrl.u32 %v522_v37, 16  ;;  %v629_v44 = vshll.u32 %v522_v37, 16  ;;  %v2827_v59 = vld [vmem:[%s3023_s1 + $0xf8] sm:$0xff]   ;;  %v2158_v2 = vld [vmem:[%s2715_s9 + $0x90] sm:$0xf] }
  0x24   : > { %2438 = vmatprep.subr.bf16.mxu1 %v2584_v21  ;;  %v582_v16 = vsel %vm2772_vm3, %v577_v7, %v581_v63  ;;  %v614_v46 = vrot.slane %v612_v39, 4  ;;  %v617_v47 = vrot.slane %v615_v40, 5  ;;  %v635_v48 = vshll.u32 %v523_v38, 16  ;;  %v2159_v4 = vld [vmem:[%s2715_s9 + $0x94] sm:$0x1] }
  0x25   : > { %2399 = vmatmul.mubr.msk.bf16.gmra.mxu0 %vm309_vm0, %v2581_v18  ;;  %v593_v18 = vshll.u32 %v517_v10, 16  ;;  %v623_v51 = vrot.slane %v621_v42, 5  ;;  %v628_v52 = vrot.slane %v626_v43, 4  ;;  %v631_v53 = vrot.slane %v629_v44, 5  ;;  %v2161_v6 = vld [vmem:[%s2715_s9 + $0x9c] sm:$0x1] }
  0x26   : > { %2415 = vmatmul.mubr.msk.bf16.gmra.mxu1 %vm309_vm0, %v2582_v20  ;;  %2423 = vmatpush3.bf16.msra.mxu0 %v2583_v19  ;;  %v598_v19 = vshrl.u32 %v518_v12, 16  ;;  %v601_v20 = vshll.u32 %v518_v12, 16  ;;  %v618_v57 = vor.u32 %v617_v47, %v614_v46  ;;  %v637_v58 = vrot.slane %v635_v48, 5  ;;  %v2163_v24 = vld [vmem:[%s2715_s9 + $0xa4] sm:$0x1]  ;;  %v2603_v43 = vld [vmem:[%s3023_s1 + $0xd0] sm:$0xff]  }
  0x27   : > { %2439 = vmatpush3.bf16.msra.mxu1 %v2584_v21  ;;  %2424 = vmatprep.subr.bf16.mxu0 %v2585_v22  ;;  %v2091_v21 = vcombine.low %v568_v11, %v582_v16  ;;  %v595_v26 = vrot.slane %v593_v18, 5  ;;  %v632_v61 = vor.u32 %v631_v53, %v628_v52  ;;  %v1083_v9 = vshll.u32 %v2158_v2, 16  ;;  %v2601_v11 = vld [vmem:[%s3023_s1 + $0xd8] sm:$0xff]   ;;  %v2607_v52 = vld [vmem:[%s3023_s1 + $0xc8] sm:$0xff]  }
  0x28   : > { %2440 = vmatprep.subr.bf16.mxu1 %v2586_v23  ;;  %2442 = vmatprep.mubr.msk.bf16.mxu1 %vm309_vm0, %v2587_v34  ;;  %v600_v27 = vrot.slane %v598_v19, 4  ;;  %v603_v28 = vrot.slane %v601_v20, 5  ;;  %v2595_v34 = vld [vmem:[%s3023_s1 + $0x88] sm:$0xff]   ;;  %v619_v62 = vrot.slane %v618_v57, 4  ;;  %v1089_v10 = vshll.u32 %v2159_v4, 16 }
  0x29   : > { %2426 = vmatprep.mubr.msk.bf16.mxu0 %vm309_vm0, %v2090_v5  ;;  %v633_v63 = vrot.slane %v632_v61, 4  ;;  %v2160_v5 = vld [vmem:[%s2715_s9 + $0x98] sm:$0xf]  ;;  %v1085_v16 = vrot.slane %v1083_v9, 5 }
  0x2a   : > { %2425 = vmatpush3.bf16.msra.mxu0 %v2585_v22  ;;  %v586_v22 = vrot.slane %v584_v14, 4  ;;  %v604_v36 = vor.u32 %v603_v28, %v600_v27  ;;  %v1094_v12 = vshrl.u32 %v2160_v5, 16  ;;  %v1097_v13 = vshll.u32 %v2160_v5, 16 }
  0x2b   : > { %2441 = vmatpush3.bf16.msra.mxu1 %v2586_v23  ;;  %2450 = vmatprep.subr.bf16.mxu0 %v2589_v49  ;;  %v589_v23 = vrot.slane %v587_v15, 5  ;;  %v638_v3 = vsel %vm2772_vm3, %v633_v63, %v637_v58  ;;  %v1103_v14 = vshll.u32 %v2161_v6, 16  ;;  %v2169_v58 = vld [vmem:[%s2715_s9 + $0xbc] sm:$0x1] }
  0x2c   : > { %2466 = vmatprep.subr.bf16.mxu1 %v2590_v55  ;;  %v605_v45 = vrot.slane %v604_v36, 4  ;;  %v1096_v18 = vrot.slane %v1094_v12, 4  ;;  %v1099_v19 = vrot.slane %v1097_v13, 5  ;;  %v2170_v12 = vld [vmem:[%s2715_s9 + $0xc0] sm:$0xf] }
  0x2d   : > { %2427 = vmatmul.mubr.msk.bf16.vlgmr.msra.gmra.mxu0 %vm309_vm0, %v2091_v21  ;;  %v590_v30 = vor.u32 %v589_v23, %v586_v22  ;;  %v1105_v20 = vrot.slane %v1103_v14, 5  ;;  %v2162_v21 = vld [vmem:[%s2715_s9 + $0xa0] sm:$0xf]  ;;  %v2600_v23 = vld [vmem:[%s2715_s9 + $0xe8] ss:$8 sps:$4 sm:$0xff]  }
  0x2e   : > { %2443 = vmatmul.mubr.msk.bf16.vlgmr.msra.gmra.mxu1 %vm309_vm0, %v2588_v0  ;;  %2451 = vmatpush3.bf16.msra.mxu0 %v2589_v49  ;;  %v610_v56 = vsel %vm2772_vm3, %v605_v45, %v609_v31  ;;  %v624_v0 = vsel %vm2772_vm3, %v619_v62, %v623_v51  ;;  %v1100_v27 = vor.u32 %v1099_v19, %v1096_v18  ;;  %v1108_v28 = vshrl.u32 %v2162_v21, 16  ;;  %v2166_v51 = vld [vmem:[%s2715_s9 + $0xb0] sm:$0xf]  ;;  %v2171_v14 = vld [vmem:[%s2715_s9 + $0xc4] sm:$0x1] }
  0x2f   : > { %2467 = vmatpush3.bf16.msra.mxu1 %v2590_v55  ;;  %2446 = vmatprep.mubr.msk.bf16.mxu1 %vm309_vm0, %v2593_v29  ;;  %v591_v41 = vrot.slane %v590_v30, 4  ;;  %v2597_v55 = vld [vmem:[%s3023_s1 + $0x80] sm:$0xff]   ;;  %v2093_v7 = vcombine.low %v624_v0, %v638_v3  ;;  %v1111_v29 = vshll.u32 %v2162_v21, 16  ;;  %v1117_v30 = vshll.u32 %v2163_v24, 16  ;;  %v2604_v0 = vld [vmem:[%s3023_s1 + $0xf0] sm:$0xff]  }
  0x30   : > { %2468 = vmatprep.subr.bf16.mxu1 %v2592_v8  ;;  %2452 = vmatprep.subr.bf16.mxu0 %v2591_v17  ;;  %v1110_v36 = vrot.slane %v1108_v28, 4  ;;  %v1159_v3 = vshll.u32 %v2169_v58, 16  ;;  %v1164_v19 = vshrl.u32 %v2170_v12, 16  ;;  %v1173_v21 = vshll.u32 %v2171_v14, 16  ;;  %v2253_v58 = vld [vmem:[%s2715_s9 + $0x14] sm:$0x1] }
  0x31   : > { %v596_v49 = vsel %vm2772_vm3, %v591_v41, %v595_v26  ;;  %v2165_v26 = vld [vmem:[%s2715_s9 + $0xac] sm:$0x1]  ;;  %v1113_v37 = vrot.slane %v1111_v29, 5  ;;  %v1119_v38 = vrot.slane %v1117_v30, 5  ;;  %v2620_v14 = vld [vmem:[%s2715_s9 + $0x80] ss:$8 sps:$4 sm:$0xff]  }
  0x32   : > { %2453 = vmatpush3.bf16.msra.mxu0 %v2591_v17  ;;  %v2092_v60 = vcombine.low %v596_v49, %v610_v56  ;;  %v1091_v17 = vrot.slane %v1089_v10, 5  ;;  %v2605_v49 = vld [vmem:[%s2715_s9 + $0xf8] ss:$8 sps:$4 sm:$0xff]   ;;  %v1136_v56 = vshrl.u32 %v2166_v51, 16  ;;  %v1161_v10 = vrot.slane %v1159_v3, 5 }
  0x33   : > { %2469 = vmatpush3.bf16.msra.mxu1 %v2592_v8  ;;  %2454 = vmatprep.subr.bf16.mxu0 %v2595_v34  ;;  %v1080_v8 = vshrl.u32 %v2158_v2, 16  ;;  %v1114_v45 = vor.u32 %v1113_v37, %v1110_v36  ;;  %v1166_v28 = vrot.slane %v1164_v19, 4  ;;  %v1175_v29 = vrot.slane %v1173_v21, 5  ;;  %v2259_v3 = vld [vmem:[%s2715_s9 + $0x2c] sm:$0x1] }
  0x34   : > { %2470 = vmatprep.subr.bf16.mxu1 %v2596_v25  ;;  %2430 = vmatprep.mubr.msk.bf16.mxu0 %vm309_vm0, %v2092_v60  ;;  %v1139_v60 = vshll.u32 %v2166_v51, 16  ;;  %v2614_v51 = vld [vmem:[%s2715_s9 + $0x60] ss:$8 sps:$4 sm:$0xff]   ;;  %v2254_v19 = vld [vmem:[%s2715_s9 + $0x18] sm:$0xf] }
  0x35   : > { %2431 = vmatmul.mubr.msk.bf16.gmra.mxu0 %vm309_vm0, %v2093_v7  ;;  %v1082_v15 = vrot.slane %v1080_v8, 4  ;;  %v1115_v48 = vrot.slane %v1114_v45, 4  ;;  %v2609_v8 = vld [vmem:[%s3023_s1 + $0xc0] sm:$0xff]  }
  0x36   : > { %2447 = vmatmul.mubr.msk.bf16.gmra.mxu1 %vm309_vm0, %v2594_v54  ;;  %2455 = vmatpush3.bf16.msra.mxu0 %v2595_v34  ;;  %v1131_v34 = vshll.u32 %v2165_v26, 16  ;;  %v2167_v54 = vld [vmem:[%s2715_s9 + $0xb4] sm:$0x1]  ;;  %v1141_v5 = vrot.slane %v1139_v60, 5 }
  0x37   : > { %2471 = vmatpush3.bf16.msra.mxu1 %v2596_v25  ;;  %2456 = vmatprep.subr.bf16.mxu0 %v2597_v55  ;;  %v1086_v22 = vor.u32 %v1085_v16, %v1082_v15  ;;  %v2164_v25 = vld [vmem:[%s2715_s9 + $0xa8] sm:$0xf]  ;;  %v1120_v57 = vsel %vm2772_vm3, %v1115_v48, %v1119_v38  ;;  %v1145_v61 = vshll.u32 %v2167_v54, 16  ;;  %v2173_v16 = vld [vmem:[%s2715_s9 + $0xcc] sm:$0x1] }
  0x38   : > { %2472 = vmatprep.subr.bf16.mxu1 %v2598_v35  ;;  %2458 = vmatprep.mubr.msk.bf16.mxu0 %vm309_vm0, %v2599_v1  ;;  %v1122_v32 = vshrl.u32 %v2164_v25, 16  ;;  %v1125_v33 = vshll.u32 %v2164_v25, 16  ;;  %v1133_v42 = vrot.slane %v1131_v34, 5  ;;  %v1138_v1 = vrot.slane %v1136_v56, 4  ;;  %v2172_v15 = vld [vmem:[%s2715_s9 + $0xc8] sm:$0xf] }
  0x39   : > { %v1087_v31 = vrot.slane %v1086_v22, 4  ;;  %v1147_v6 = vrot.slane %v1145_v61, 5  ;;  %v2893_v22 = vld [vmem:[%s3023_s1 + $0x118] sm:$0xff]   ;;  %v1178_v24 = vshrl.u32 %v2172_v15, 16  ;;  %v1181_v25 = vshll.u32 %v2172_v15, 16  ;;  %v2610_v34 = vld [vmem:[%s3023_s1 + $0xe0] sm:$0xff]  }
  0x3a   : > { %2457 = vmatpush3.bf16.msra.mxu0 %v2597_v55  ;;  %v1124_v40 = vrot.slane %v1122_v32, 4  ;;  %v1127_v41 = vrot.slane %v1125_v33, 5  ;;  %v2168_v55 = vld [vmem:[%s2715_s9 + $0xb8] sm:$0xf]  ;;  %v1142_v13 = vor.u32 %v1141_v5, %v1138_v1  ;;  %v1187_v26 = vshll.u32 %v2173_v16, 16  ;;  %v2921_v48 = vld [vmem:[%s3023_s1 + $0x108] sm:$0xff]  }
  0x3b   : > { %2473 = vmatpush3.bf16.msra.mxu1 %v2598_v35  ;;  %2482 = vmatprep.subr.bf16.mxu0 %v2601_v11  ;;  %v1101_v35 = vrot.slane %v1100_v27, 4  ;;  %v1092_v39 = vsel %vm2772_vm3, %v1087_v31, %v1091_v17  ;;  %v1150_v62 = vshrl.u32 %v2168_v55, 16  ;;  %v1153_v2 = vshll.u32 %v2168_v55, 16  ;;  %v2608_v17 = vld [vmem:[%s3023_s1 + $0xe8] sm:$0xff]   ;;  %v2618_v54 = vld [vmem:[%s2715_s9 + $0x70] ss:$8 sps:$4 sm:$0xff]  }
  0x3c   : > { %2498 = vmatprep.subr.bf16.mxu1 %v2827_v59  ;;  %v1128_v47 = vor.u32 %v1127_v41, %v1124_v40  ;;  %v1180_v31 = vrot.slane %v1178_v24, 4  ;;  %v1183_v32 = vrot.slane %v1181_v25, 5  ;;  %v1189_v33 = vrot.slane %v1187_v26, 5  ;;  %v2611_v40 = vld [vmem:[%s2715_s9 + $0x8] ss:$8 sps:$4 sm:$0xff]  }
  0x3d   : > { %v1106_v44 = vsel %vm2772_vm3, %v1101_v35, %v1105_v20  ;;  %2459 = vmatmul.mubr.msk.bf16.vlgmr.msra.gmra.mxu0 %vm309_vm0, %v2600_v23  ;;  %v1152_v7 = vrot.slane %v1150_v62, 4  ;;  %v1155_v9 = vrot.slane %v1153_v2, 5  ;;  %v1167_v20 = vshll.u32 %v2170_v12, 16  ;;  %v2250_v55 = vld [vmem:[%s2715_s9 + $0x8] sm:$0xf] }
  0x3e   : > { %v2182_v46 = vcombine.low %v1092_v39, %v1106_v44  ;;  %2483 = vmatpush3.bf16.msra.mxu0 %v2601_v11  ;;  %v1129_v53 = vrot.slane %v1128_v47, 4  ;;  %2462 = vmatprep.mubr.msk.bf16.mxu0 %vm309_vm0, %v2605_v49  ;;  %v2606_v11 = vld [vmem:[%s2715_s9 + $0x108] ss:$8 sps:$4 sm:$0xff]   ;;  %v1143_v23 = vrot.slane %v1142_v13, 4  ;;  %v1184_v38 = vor.u32 %v1183_v32, %v1180_v31  ;;  %v2613_v44 = vld [vmem:[%s2715_s9 + $0x18] ss:$8 sps:$4 sm:$0xff]  }
  0x3f   : > { %2484 = vmatprep.subr.bf16.mxu0 %v2603_v43  ;;  %v1156_v18 = vor.u32 %v1155_v9, %v1152_v7  ;;  %v2617_v49 = vld [vmem:[%s2715_s9 + $0x28] ss:$8 sps:$4 sm:$0xff]   ;;  %v2251_v56 = vld [vmem:[%s2715_s9 + $0xc] sm:$0x1]  ;;  %v1632_v60 = vshrl.u32 %v2250_v55, 16  ;;  %v1635_v61 = vshll.u32 %v2250_v55, 16 }
  0x40   : > { %2474 = vmatprep.mubr.msk.bf16.mxu1 %vm309_vm0, %v2182_v46  ;;  %v1134_v63 = vsel %vm2772_vm3, %v1129_v53, %v1133_v42  ;;  %v1148_v30 = vsel %vm2772_vm3, %v1143_v23, %v1147_v6  ;;  %v1185_v41 = vrot.slane %v1184_v38, 4  ;;  %v2908_v42 = vld [vmem:[%s3023_s1 + $0x110] sm:$0xff]   ;;  %v2935_v53 = vld [vmem:[%s3023_s1 + $0x100] sm:$0xff]   ;;  %v1641_v62 = vshll.u32 %v2251_v56, 16  ;;  %v2255_v24 = vld [vmem:[%s2715_s9 + $0x1c] sm:$0x1] }
  0x41   : > { %v2183_v4 = vcombine.low %v1120_v57, %v1134_v63  ;;  %v1157_v27 = vrot.slane %v1156_v18, 4  ;;  %v2612_v46 = vld [vmem:[%s2715_s9 + $0x50] ss:$8 sps:$4 sm:$0xff]   ;;  %v1655_v2 = vshll.u32 %v2253_v58, 16  ;;  %v1634_v5 = vrot.slane %v1632_v60, 4 }
  0x42   : > { %2485 = vmatpush3.bf16.msra.mxu0 %v2603_v43  ;;  %v1190_v45 = vsel %vm2772_vm3, %v1185_v41, %v1189_v33  ;;  %v2252_v57 = vld [vmem:[%s2715_s9 + $0x10] sm:$0xf]  ;;  %v1637_v6 = vrot.slane %v1635_v61, 5  ;;  %v1643_v7 = vrot.slane %v1641_v62, 5  ;;  %v2261_v9 = vld [vmem:[%s2715_s9 + $0x34] sm:$0x1] }
  0x43   : > { %2486 = vmatprep.subr.bf16.mxu0 %v2607_v52  ;;  %2475 = vmatmul.mubr.msk.bf16.vlgmr.msra.gmra.mxu1 %vm309_vm0, %v2183_v4  ;;  %v1162_v35 = vsel %vm2772_vm3, %v1157_v27, %v1161_v10  ;;  %v1646_v63 = vshrl.u32 %v2252_v57, 16  ;;  %v1649_v1 = vshll.u32 %v2252_v57, 16  ;;  %v2260_v4 = vld [vmem:[%s2715_s9 + $0x30] sm:$0xf]  ;;  %v1697_v16 = vshll.u32 %v2259_v3, 16 }
  0x44   : > { %2499 = vmatpush3.bf16.msra.mxu1 %v2827_v59  ;;  %v1169_v59 = vrot.slane %v1167_v20, 5  ;;  %v2184_v37 = vcombine.low %v1148_v30, %v1162_v35  ;;  %v1638_v15 = vor.u32 %v1637_v6, %v1634_v5  ;;  %v1705_v18 = vshll.u32 %v2260_v4, 16  ;;  %v2257_v35 = vld [vmem:[%s2715_s9 + $0x24] sm:$0x1] }
  0x45   : > { %2463 = vmatmul.mubr.msk.bf16.gmra.mxu0 %vm309_vm0, %v2606_v11  ;;  %2500 = vmatprep.subr.bf16.mxu1 %v2604_v0  ;;  %v1651_v10 = vrot.slane %v1649_v1, 5  ;;  %v1657_v11 = vrot.slane %v1655_v2, 5  ;;  %v1711_v23 = vshll.u32 %v2261_v9, 16  ;;  %v1699_v26 = vrot.slane %v1697_v16, 5  ;;  %v2265_v57 = vld [vmem:[%s2715_s9 + $0x44] sm:$0x1] }
  0x46   : > { %2487 = vmatpush3.bf16.msra.mxu0 %v2607_v52  ;;  %v1170_v36 = vor.u32 %v1169_v59, %v1166_v28  ;;  %2478 = vmatprep.mubr.msk.bf16.mxu1 %vm309_vm0, %v2184_v37  ;;  %v2619_v52 = vld [vmem:[%s2715_s9 + $0x38] ss:$8 sps:$4 sm:$0xff]   ;;  %v1639_v25 = vrot.slane %v1638_v15, 4  ;;  %v1707_v28 = vrot.slane %v1705_v18, 5  ;;  %v1660_v32 = vshrl.u32 %v2254_v19, 16 }
  0x47   : > { %2488 = vmatprep.subr.bf16.mxu0 %v2609_v8  ;;  %2490 = vmatprep.mubr.msk.bf16.mxu0 %vm309_vm0, %v2611_v40  ;;  %v2256_v59 = vld [vmem:[%s2715_s9 + $0x20] sm:$0xf]  ;;  %v1713_v31 = vrot.slane %v1711_v23, 5  ;;  %v1669_v37 = vshll.u32 %v2255_v24, 16 }
  0x48   : > { %2501 = vmatpush3.bf16.msra.mxu1 %v2604_v0  ;;  %v1171_v39 = vrot.slane %v1170_v36, 4  ;;  %v2258_v0 = vld [vmem:[%s2715_s9 + $0x28] sm:$0xf]  ;;  %v1644_v33 = vsel %vm2772_vm3, %v1639_v25, %v1643_v7  ;;  %v1663_v36 = vshll.u32 %v2254_v19, 16  ;;  %v1662_v40 = vrot.slane %v1660_v32, 4 }
  0x49   : > { %2502 = vmatprep.subr.bf16.mxu1 %v2608_v17  ;;  %v1688_v12 = vshrl.u32 %v2258_v0, 16  ;;  %v1691_v13 = vshll.u32 %v2258_v0, 16  ;;  %v1674_v41 = vshrl.u32 %v2256_v59, 16  ;;  %v1739_v7 = vshll.u32 %v2265_v57, 16 }
  0x4a   : > { %2489 = vmatpush3.bf16.msra.mxu0 %v2609_v8  ;;  %v1176_v43 = vsel %vm2772_vm3, %v1171_v39, %v1175_v29  ;;  %v1648_v8 = vrot.slane %v1646_v63, 4 }
  0x4b   : > { %2514 = vmatprep.subr.bf16.mxu0 %v2893_v22  ;;  %v2185_v47 = vcombine.low %v1176_v43, %v1190_v45  ;;  %v1690_v21 = vrot.slane %v1688_v12, 4  ;;  %v1665_v45 = vrot.slane %v1663_v36, 5 }
  0x4c   : > { %2503 = vmatpush3.bf16.msra.mxu1 %v2608_v17  ;;  %v1702_v17 = vshrl.u32 %v2260_v4, 16  ;;  %v1652_v20 = vor.u32 %v1651_v10, %v1648_v8 }
  0x4d   : > { %2504 = vmatprep.subr.bf16.mxu1 %v2610_v34  ;;  %2491 = vmatmul.mubr.msk.bf16.vlgmr.msra.gmra.mxu0 %vm309_vm0, %v2613_v44  ;;  %v1666_v56 = vor.u32 %v1665_v45, %v1662_v40 }
  0x4e   : > { %2515 = vmatpush3.bf16.msra.mxu0 %v2893_v22  ;;  %2479 = vmatmul.mubr.msk.bf16.gmra.mxu1 %vm309_vm0, %v2185_v47  ;;  %v1704_v27 = vrot.slane %v1702_v17, 4  ;;  %v1653_v29 = vrot.slane %v1652_v20, 4 }
  0x4f   : > { %2516 = vmatprep.subr.bf16.mxu0 %v2908_v42  ;;  %2506 = vmatprep.mubr.msk.bf16.mxu1 %vm309_vm0, %v2612_v46  ;;  %v2263_v46 = vld [vmem:[%s2715_s9 + $0x3c] sm:$0x1]  ;;  %v1667_v0 = vrot.slane %v1666_v56, 4 }
  0x50   : > { %2505 = vmatpush3.bf16.msra.mxu1 %v2610_v34  ;;  %2494 = vmatprep.mubr.msk.bf16.mxu0 %vm309_vm0, %v2617_v49  ;;  %v1708_v34 = vor.u32 %v1707_v28, %v1704_v27  ;;  %v1658_v38 = vsel %vm2772_vm3, %v1653_v29, %v1657_v11  ;;  %v1676_v49 = vrot.slane %v1674_v41, 4  ;;  %v1725_v63 = vshll.u32 %v2263_v46, 16 }
  0x51   : > { %2530 = vmatprep.subr.bf16.mxu1 %v2893_v22  ;;  %v2274_v43 = vcombine.low %v1644_v33, %v1658_v38 }
  0x52   : > { %2517 = vmatpush3.bf16.msra.mxu0 %v2908_v42  ;;  %v1709_v44 = vrot.slane %v1708_v34, 4  ;;  %v1727_v12 = vrot.slane %v1725_v63, 5 }
  0x53   : > { %2518 = vmatprep.subr.bf16.mxu0 %v2921_v48 }
  0x54   : > { %v1714_v55 = vsel %vm2772_vm3, %v1709_v44, %v1713_v31 }
  0x55   : > { %2495 = vmatmul.mubr.msk.bf16.gmra.mxu0 %vm309_vm0, %v2619_v52  ;;  %v1683_v52 = vshll.u32 %v2257_v35, 16 }
  0x56   : > { %2519 = vmatpush3.bf16.msra.mxu0 %v2921_v48  ;;  %2507 = vmatmul.mubr.msk.bf16.vlgmr.msra.gmra.mxu1 %vm309_vm0, %v2614_v51  ;;  %v1677_v51 = vshll.u32 %v2256_v59, 16 }
  0x57   : > { %2520 = vmatprep.subr.bf16.mxu0 %v2935_v53  ;;  %2534 = vmatpush3.bf16.msra.mxu1 %v2893_v22  ;;  %v1693_v22 = vrot.slane %v1691_v13, 5  ;;  %v1685_v5 = vrot.slane %v1683_v52, 5 }
  0x58   : > { %2510 = vmatprep.mubr.msk.bf16.mxu1 %vm309_vm0, %v2618_v54  ;;  %2531 = vmatprep.subr.bf16.mxu1 %v2908_v42  ;;  %v2264_v54 = vld [vmem:[%s2715_s9 + $0x40] sm:$0xf]  ;;  %v1679_v62 = vrot.slane %v1677_v51, 5 }
  0x59   : > { %v1694_v30 = vor.u32 %v1693_v22, %v1690_v21  ;;  %2522 = vmatprep.mubr.msk.bf16.mxu0 %vm309_vm0, %v2274_v43  ;;  %v1730_v3 = vshrl.u32 %v2264_v54, 16  ;;  %v1733_v6 = vshll.u32 %v2264_v54, 16 }
  0x5a   : > { %2521 = vmatpush3.bf16.msra.mxu0 %v2935_v53  ;;  %v1680_v4 = vor.u32 %v1679_v62, %v1676_v49 }
  0x5b   : > { %2535 = vmatpush3.bf16.msra.mxu1 %v2908_v42  ;;  %v1695_v39 = vrot.slane %v1694_v30, 4  ;;  %v2262_v42 = vld [vmem:[%s2715_s9 + $0x38] sm:$0xf]  ;;  %v1732_v9 = vrot.slane %v1730_v3, 4  ;;  %v1735_v13 = vrot.slane %v1733_v6, 5 }
  0x5c   : > { %2532 = vmatprep.subr.bf16.mxu1 %v2921_v48  ;;  %v1716_v58 = vshrl.u32 %v2262_v42, 16  ;;  %v1719_v60 = vshll.u32 %v2262_v42, 16  ;;  %v1681_v11 = vrot.slane %v1680_v4, 4 }
  0x5d   : > { %v1700_v47 = vsel %vm2772_vm3, %v1695_v39, %v1699_v26  ;;  %v1736_v16 = vor.u32 %v1735_v13, %v1732_v9 }
  0x5e   : > { %2511 = vmatmul.mubr.msk.bf16.gmra.mxu1 %vm309_vm0, %v2620_v14  ;;  %v2276_v61 = vcombine.low %v1700_v47, %v1714_v55  ;;  %v1718_v1 = vrot.slane %v1716_v58, 4  ;;  %v1721_v2 = vrot.slane %v1719_v60, 5  ;;  %v1686_v15 = vsel %vm2772_vm3, %v1681_v11, %v1685_v5 }
  0x5f   : > { %2536 = vmatpush3.bf16.msra.mxu1 %v2921_v48  ;;  %v1671_v48 = vrot.slane %v1669_v37, 5  ;;  %v1737_v19 = vrot.slane %v1736_v16, 4 }
  0x60   : > { %2533 = vmatprep.subr.bf16.mxu1 %v2935_v53  ;;  %2526 = vmatprep.mubr.msk.bf16.mxu1 %vm309_vm0, %v2276_v61  ;;  %v1722_v8 = vor.u32 %v1721_v2, %v1718_v1 }
  0x61   : > { %v1672_v10 = vsel %vm2772_vm3, %v1667_v0, %v1671_v48 }
  0x62   : > { %v1723_v14 = vrot.slane %v1722_v8, 4  ;;  %v2275_v17 = vcombine.low %v1672_v10, %v1686_v15 }
  0x63   : > { %2537 = vmatpush3.bf16.msra.mxu1 %v2935_v53  ;;  %v1741_v53 = vrot.slane %v1739_v7, 5 }
  0x64   : > { %v1728_v18 = vsel %vm2772_vm3, %v1723_v14, %v1727_v12  ;;  %2523 = vmatmul.mubr.msk.bf16.vlgmr.msra.gmra.mxu0 %vm309_vm0, %v2275_v17 }
  0x65   : > { %v1742_v20 = vsel %vm2772_vm3, %v1737_v19, %v1741_v53 }
  0x66   : > { %v2277_v21 = vcombine.low %v1728_v18, %v1742_v20 }
  0x68   : > { %2527 = vmatmul.mubr.msk.bf16.vlgmr.msra.gmra.mxu1 %vm309_vm0, %v2277_v21 }
  0xdd   : > { %v2396_v22 = vpop.f32.mrf.mxu0 }
  0xde   : > { %v2412_v23 = vpop.f32.mrf.mxu1 }
  0xdf   : > { %v356_v24 = vpop.f32.mrf.mxu0  ;;  %v486_v12 = vadd.f32 %v2412_v23, %v2396_v22 }
  0xe0   : > { %v477_v25 = vpop.f32.mrf.mxu1 }
  0xe1   : > { %v2397_v26 = vpop.f32.mrf.mxu0  ;;  %v478_v14 = vadd.f32 %v477_v25, %v356_v24 }
  0xe2   : > { %v2413_v27 = vpop.f32.mrf.mxu1 }
  0xe3   : > { %v359_v28 = vpop.f32.mrf.mxu0  ;;  %v489_v17 = vadd.f32 %v2413_v27, %v2397_v26 }
  0xe4   : > { %v480_v59 = vpop.f32.mrf.mxu1 }
  0xe5   : > { %v2400_v29 = vpop.f32.mrf.mxu0  ;;  %v481_v23 = vadd.f32 %v480_v59, %v359_v28 }
  0xe6   : > { %v2416_v30 = vpop.f32.mrf.mxu1 }
  0xe7   : > { %v372_v32 = vpop.f32.mrf.mxu0  ;;  %v502_v18 = vadd.f32 %v2416_v30, %v2400_v29 }
  0xe8   : > { %v493_v31 = vpop.f32.mrf.mxu1 }
  0xe9   : > { %v2401_v34 = vpop.f32.mrf.mxu0  ;;  %v494_v21 = vadd.f32 %v493_v31, %v372_v32 }
  0xea   : > { %v2417_v33 = vpop.f32.mrf.mxu1 }
  0xeb   : > { %v375_v50 = vpop.f32.mrf.mxu0 }
  0xec   : > { %v496_v35 = vpop.f32.mrf.mxu1 }
  0xed   : > { %v2428_v37 = vpop.f32.mrf.mxu0  ;;  %v497_v29 = vadd.f32 %v496_v35, %v375_v50 }
  0xee   : > { %v2444_v36 = vpop.f32.mrf.mxu1  ;;  %v763_v15 = vadd.f32 %v2428_v37, %v486_v12  ;;  %v505_v12 = vadd.f32 %v2417_v33, %v2401_v34 }
  0xef   : > { %v730_v39 = vpop.f32.mrf.mxu0 }
  0xf0   : > { %v877_v38 = vpop.f32.mrf.mxu1  ;;  %v761_v19 = vadd.f32 %v730_v39, %v478_v14 }
  0xf1   : > { %v2429_v41 = vpop.f32.mrf.mxu0 }
  0xf2   : > { %v2445_v40 = vpop.f32.mrf.mxu1  ;;  %v908_v37 = vadd.f32 %v877_v38, %v761_v19 }
  0xf3   : > { %v733_v43 = vpop.f32.mrf.mxu0 }
  0xf4   : > { %v2991_v42 = vpop.f32.mrf.mxu1  ;;  %v762_v30 = vadd.f32 %v733_v43, %v481_v23 }
  0xf5   : > { %3028 = vst [vmem:[#allocation2_spill] sm:$0xff] %v2991_v42  ;;  %v2432_v45 = vpop.f32.mrf.mxu0  ;;  %v910_v42 = vadd.f32 %v2444_v36, %v763_v15 }
  0xf6   : > { %v2448_v44 = vpop.f32.mrf.mxu1  ;;  %v767_v22 = vadd.f32 %v2432_v45, %v502_v18 }
  0xf7   : > { %v746_v46 = vpop.f32.mrf.mxu0 }
  0xf8   : > { %v893_v47 = vpop.f32.mrf.mxu1  ;;  %v765_v26 = vadd.f32 %v746_v46, %v494_v21  ;;  %v914_v39 = vadd.f32 %v2448_v44, %v767_v22 }
  0xf9   : > { %v2433_v49 = vpop.f32.mrf.mxu0 }
  0xfa   : > { %v2449_v52 = vpop.f32.mrf.mxu1 }
  0xfb   : > { %v749_v51 = vpop.f32.mrf.mxu0 }
  0xfc   : > { %v896_v56 = vpop.f32.mrf.mxu1  ;;  %v766_v32 = vadd.f32 %v749_v51, %v497_v29  ;;  %v3031_v28 = vld [vmem:[#allocation2_spill] sm:$0xff] }
  0xfd   : > { %v2460_v54 = vpop.f32.mrf.mxu0  ;;  %v909_v59 = vadd.f32 %v3031_v28, %v762_v30 }
  0xfe   : > { %v1057_v27 = vadd.f32 %v2460_v54, %v910_v42  ;;  %v913_v42 = vadd.f32 %v896_v56, %v766_v32 }
  0xff   : > { %v1024_v55 = vpop.f32.mrf.mxu0 }
 0x100   : > { %v1055_v31 = vadd.f32 %v1024_v55, %v908_v37 }
 0x101   : > { %v2461_v57 = vpop.f32.mrf.mxu0 }
 0x103   : > { %v1027_v58 = vpop.f32.mrf.mxu0  ;;  %v2476_v60 = vpop.f32.mrf.mxu1 }
 0x104   : > { %v1056_v35 = vadd.f32 %v1027_v58, %v909_v59  ;;  %v2286_v58 = vld [vmem:[%s3024_s2] ss:$0 sm:$0xff] }
 0x105   : > { %v2464_v61 = vpop.f32.mrf.mxu0  ;;  %v1282_v48 = vpop.f32.mrf.mxu1 }
 0x106   : > { %v1061_v45 = vadd.f32 %v2464_v61, %v914_v39  ;;  %v1313_v34 = vadd.f32 %v1282_v48, %v1055_v31 }
 0x107   : > { %v1040_v62 = vpop.f32.mrf.mxu0  ;;  %v2477_v63 = vpop.f32.mrf.mxu1 }
 0x109   : > { %v2465_v0 = vpop.f32.mrf.mxu0  ;;  %v1285_v2 = vpop.f32.mrf.mxu1 }
 0x10a   : > { %v1314_v61 = vadd.f32 %v1285_v2, %v1056_v35 }
 0x10b   : > { %v1043_v1 = vpop.f32.mrf.mxu0 }
 0x10c   : > { %v1060_v54 = vadd.f32 %v1043_v1, %v913_v42 }
 0x10d   : > { %v2492_v3 = vpop.f32.mrf.mxu0 }
 0x10e   : > { %v2480_v4 = vpop.f32.mrf.mxu1 }
 0x10f   : > { %v1429_v5 = vpop.f32.mrf.mxu0  ;;  %v1319_v44 = vadd.f32 %v2480_v4, %v1061_v45 }
 0x110   : > { %v1298_v6 = vpop.f32.mrf.mxu1  ;;  %v1460_v51 = vadd.f32 %v1429_v5, %v1313_v34 }
 0x111   : > { %v2493_v8 = vpop.f32.mrf.mxu0 }
 0x112   : > { %v2481_v7 = vpop.f32.mrf.mxu1 }
 0x113   : > { %v1432_v11 = vpop.f32.mrf.mxu0 }
 0x114   : > { %v2993_v9 = vpop.f32.mrf.mxu1  ;;  %v1461_v4 = vadd.f32 %v1432_v11, %v1314_v61 }
 0x115   : > { %3029 = vst [vmem:[#allocation3_spill] sm:$0xff] %v2993_v9  ;;  %v2496_v53 = vpop.f32.mrf.mxu0  ;;  %v764_v9 = vadd.f32 %v2429_v41, %v489_v17  ;;  %v912_v17 = vadd.f32 %v893_v47, %v765_v26  ;;  %v1315_v41 = vadd.f32 %v2476_v60, %v1057_v27 }
 0x116   : > { %v2508_v10 = vpop.f32.mrf.mxu1  ;;  %v1466_v60 = vadd.f32 %v2496_v53, %v1319_v44 }
 0x117   : > { %v1445_v25 = vpop.f32.mrf.mxu0  ;;  %v911_v14 = vadd.f32 %v2445_v40, %v764_v9  ;;  %v1059_v38 = vadd.f32 %v1040_v62, %v912_v17  ;;  %v1462_v46 = vadd.f32 %v2492_v3, %v1315_v41 }
 0x118   : > { %v1576_v13 = vpop.f32.mrf.mxu1 }
 0x119   : > { %v2497_v36 = vpop.f32.mrf.mxu0  ;;  %v1058_v18 = vadd.f32 %v2461_v57, %v911_v14  ;;  %v1317_v47 = vadd.f32 %v1298_v6, %v1059_v38  ;;  %v1609_v55 = vadd.f32 %v2508_v10, %v1462_v46  ;;  %v1607_v62 = vadd.f32 %v1576_v13, %v1460_v51 }
 0x11a   : > { %v2509_v16 = vpop.f32.mrf.mxu1 }
 0x11b   : > { %v1448_v40 = vpop.f32.mrf.mxu0  ;;  %v1316_v43 = vadd.f32 %v2477_v63, %v1058_v18  ;;  %v1464_v3 = vadd.f32 %v1445_v25, %v1317_v47 }
 0x11c   : > { %v2995_v20 = vpop.f32.mrf.mxu1  ;;  %v3032_v63 = vld [vmem:[#allocation3_spill] sm:$0xff] }
 0x11d   : > { %3030 = vst [vmem:[#allocation4_spill] sm:$0xff] %v2995_v20  ;;  %v768_v20 = vadd.f32 %v2433_v49, %v505_v12  ;;  %v1463_v57 = vadd.f32 %v2493_v8, %v1316_v43 }
 0x11e   : > { %v2512_v24 = vpop.f32.mrf.mxu1 }
 0x11f   : > { %v915_v33 = vadd.f32 %v2449_v52, %v768_v20  ;;  %v1610_v5 = vadd.f32 %v2509_v16, %v1463_v57  ;;  %v1613_v6 = vadd.f32 %v2512_v24, %v1466_v60  ;;  %v2287_v20 = vld [vmem:[%s3024_s2 + $0x1] ss:$0 sm:$0xff] }
 0x120   : > { %v1592_v15 = vpop.f32.mrf.mxu1 }
 0x121   : > { %v1062_v49 = vadd.f32 %v2465_v0, %v915_v33  ;;  %v1318_v0 = vadd.f32 %v3032_v63, %v1060_v54  ;;  %v1611_v53 = vadd.f32 %v1592_v15, %v1464_v3 }
 0x122   : > { %v2513_v50 = vpop.f32.mrf.mxu1 }
 0x123   : > { %v1320_v48 = vadd.f32 %v2481_v7, %v1062_v49  ;;  %v1465_v19 = vadd.f32 %v1448_v40, %v1318_v0 }
 0x124   : > { %v1595_v9 = vpop.f32.mrf.mxu1  ;;  %v2524_v52 = vpop.f32.mrf.mxu0  ;;  %v3033_v11 = vld [vmem:[#allocation4_spill] sm:$0xff] }
 0x125   : > { %v1867_v56 = vadd.f32 %v2524_v52, %v1609_v55  ;;  %v1467_v2 = vadd.f32 %v2497_v36, %v1320_v48  ;;  %v1608_v23 = vadd.f32 %v3033_v11, %v1461_v4  ;;  %v1612_v39 = vadd.f32 %v1595_v9, %v1465_v19 }
 0x126   : > { %v1834_v1 = vpop.f32.mrf.mxu0 }
 0x127   : > { %v1865_v8 = vadd.f32 %v1834_v1, %v1607_v62  ;;  %v1880_v10 = vmul.f32 %v2286_v58, %v1867_v56  ;;  %v1614_v24 = vadd.f32 %v2513_v50, %v1467_v2 }
 0x128   : > { %v2528_v7 = vpop.f32.mrf.mxu1  ;;  %v2525_v13 = vpop.f32.mrf.mxu0 }
 0x129   : > { %v1871_v21 = vadd.f32 %v2528_v7, %v1613_v6  ;;  %v1868_v22 = vadd.f32 %v2525_v13, %v1610_v5  ;;  %v1878_v25 = vmul.f32 %v2286_v58, %v1865_v8  ;;  %v1893_v27 = vadd.f32 %v2287_v20, %v1880_v10 }
 0x12a   : > { %v1850_v12 = vpop.f32.mrf.mxu1  ;;  %v1837_v16 = vpop.f32.mrf.mxu0 }
 0x12b   : > { %v1884_v37 = vmul.f32 %v2286_v58, %v1871_v21  ;;  %v1869_v26 = vadd.f32 %v1850_v12, %v1611_v53  ;;  %v1881_v29 = vmul.f32 %v2286_v58, %v1868_v22  ;;  %v1866_v14 = vadd.f32 %v1837_v16, %v1608_v23 }
 0x12c   : > { %v2529_v30 = vpop.f32.mrf.mxu1  ;;  %v1891_v15 = vadd.f32 %v2287_v20, %v1878_v25  ;;  %v1901_v59 = vmax.f32 %v1893_v27, 0.0 }
 0x12d   : > { %v1882_v31 = vmul.f32 %v2286_v58, %v1869_v26  ;;  %v1872_v32 = vadd.f32 %v2529_v30, %v1614_v24  ;;  %v1894_v36 = vadd.f32 %v2287_v20, %v1881_v29  ;;  %v1879_v17 = vmul.f32 %v2286_v58, %v1866_v14 }
 0x12e   : > { %v1853_v41 = vpop.f32.mrf.mxu1  ;;  %v1897_v18 = vadd.f32 %v2287_v20, %v1884_v37  ;;  %v1899_v35 = vmax.f32 %v1891_v15, 0.0 }
 0x12f   : > { %v1885_v45 = vmul.f32 %v2286_v58, %v1872_v32  ;;  %v1870_v28 = vadd.f32 %v1853_v41, %v1612_v39  ;;  %v1902_v33 = vmax.f32 %v1894_v36, 0.0  ;;  %v1892_v34 = vadd.f32 %v2287_v20, %v1879_v17 }
 0x130   : > { %v1895_v38 = vadd.f32 %v2287_v20, %v1882_v31  ;;  %v1905_v43 = vmax.f32 %v1897_v18, 0.0 }
 0x131   : > { %v1898_v46 = vadd.f32 %v2287_v20, %v1885_v45  ;;  %v1883_v42 = vmul.f32 %v2286_v58, %v1870_v28  ;;  %v2299_v50 = vpack.c.bf16 %v1902_v33, %v1901_v59  ;;  %v1900_v40 = vmax.f32 %v1892_v34, 0.0 }
 0x132   : > { %v1903_v54 = vmax.f32 %v1895_v38, 0.0 }
 0x133   : > { %v1906_v44 = vmax.f32 %v1898_v46, 0.0  ;;  %v1896_v49 = vadd.f32 %v2287_v20, %v1883_v42  ;;  %2311 = vst [vmem:[%s229_s5 + $0x8] sm:$0xff] %v2299_v50   ;;  %v2294_v51 = vpack.c.bf16 %v1900_v40, %v1899_v35 }
 0x135   : > { %v2309_v47 = vpack.c.bf16 %v1906_v44, %v1905_v43  ;;  %v1904_v55 = vmax.f32 %v1896_v49, 0.0  ;;  %2295 = vst [vmem:[%s229_s5] sm:$0xff] %v2294_v51  }
 0x137   : > { %2313 = vst [vmem:[%s229_s5 + $0x18] sm:$0xff] %v2309_v47   ;;  %v2304_v57 = vpack.c.bf16 %v1904_v55, %v1903_v54 }
 0x139   : > { %2312 = vst [vmem:[%s229_s5 + $0x10] sm:$0xff] %v2304_v57  }
 0x13a PF: > { %s13_s14 = sadd.s32 1, %s2645_s14   ;;  %s3034_s12 = smov %s2641_s13 }
 0x13b   : > { %p10_p6 = scmp.ge.s32.totalorder %s13_s14, 4   ;;  %s3035_s13 = smov %s3037_s15 }
 0x13d   :  { %12 = sbr.rel (!%p10_p6) target bundleno = 2 (0x2), region = 81 }

// kernel: _lambda_.6
= control target key start
LH: loop header
LB: loop body
LE: loop exit
PB: predicated region body
PF: predicated region fallthrough
CT: control target
= control target key end

     0   :  { %s3208_s12 = smov 0   ;;  %s3210_s13 = smov 0   ;;  %s3776_s0 = inlined_call_operand.vmem [shape: bf16[2,10,10,128], index: 0, kind: input, shape index: {}]   ;;  %s3777_s1 = inlined_call_operand.vmem [shape: bf16[9,128,128], index: 1, kind: input, shape index: {}]   ;;  %s3778_s2 = inlined_call_operand.vmem [shape: f32[2,128], index: 2, kind: input, shape index: {}]   ;;  %s3779_s3 = inlined_call_operand.vmem [shape: bf16[2,8,8,128], index: 3, kind: output, shape index: {}]  }
   0x1   :  { %s3212_s14 = smov 0  }
   0x2 LB: > { %s25_s15 = sadd.s32 1, %s3182_s13  ;;  %p2359_p0 = scmp.ge.s32.totalorder %s3186_s14, 1  ;;  %s3186_s14 = sphi %s3212_s14, %s13_s14   ;;  %s3182_s13 = sphi %s3210_s13, %s3793_s13   ;;  %s3178_s12 = sphi %s3208_s12, %s3792_s12  }
   0x3   : > { %p27_p1 = scmp.ge.s32.totalorder %s25_s15, 2  ;;  %p169_p2 = scmp.lt.s32.totalorder %s3186_s14, 3 }
   0x5   : > { %s3795_s15 = smov (%p27_p1, %s25_s15), 0  ;;  %p170_p3 = pnand %p2359_p0, %p169_p2 }
   0x7   : > { %173 = sbr.rel (%p170_p3) target bundleno = 384 (0x180), region = 32 }
   0xc   : > { %v3080_v0 = vld [vmem:[%s3777_s1 + $0x78] sm:$0xff]   ;;  %p204_p4 = scmp.lt.s32.totalorder %s3178_s12, 1  ;;  %v3082_v2 = vld [vmem:[%s3777_s1 + $0x70] sm:$0xff]   ;;  %v3084_v4 = vld [vmem:[%s3777_s1 + $0x68] sm:$0xff]   ;;  %vm258_vm0 = vsmask.f32 3328 }
   0xd   : > { %v3081_v1 = vld [vmem:[%s3777_s1 + $0x38] sm:$0xff]   ;;  %2823 = vmatprep.subr.bf16.mxu0 %v3080_v0  ;;  %v3083_v3 = vld [vmem:[%s3777_s1 + $0x30] sm:$0xff]   ;;  %v3085_v5 = vld [vmem:[%s3777_s1 + $0x28] sm:$0xff]   ;;  %vm259_vm1 = vsmask.f32 7440  ;;  %vm680_vm3 = vcmask 1042432  }
   0xe   : > { %2847 = vmatprep.subr.bf16.mxu1 %v3081_v1  ;;  %2824 = vmatpush3.bf16.msra.mxu0 %v3080_v0  ;;  %s3797_s12 = smov (!%p204_p4, %s3178_s12), 1  ;;  %v3086_v6 = vld [vmem:[%s3777_s1 + $0x60] sm:$0xff]   ;;  %v3088_v8 = vld [vmem:[%s3777_s1 + $0x58] sm:$0xff]   ;;  %v3090_v10 = vld [vmem:[%s3777_s1 + $0x50] sm:$0xff]   ;;  %vm681_vm4 = vcmask 1046532  }
   0xf   : > { %2848 = vmatpush3.bf16.msra.mxu1 %v3081_v1  ;;  %2825 = vmatprep.subr.bf16.mxu0 %v3082_v2  ;;  %v3087_v7 = vld [vmem:[%s3777_s1 + $0x20] sm:$0xff]   ;;  %s3055_s5 = smul.u32 80, %s3797_s12  ;;  %v3089_v9 = vld [vmem:[%s3777_s1 + $0x18] sm:$0xff]   ;;  %v3091_v14 = vld [vmem:[%s3777_s1 + $0x10] sm:$0xff]   ;;  %s2691_s7 = sshll.u32 %s3797_s12, 5 }
  0x10   : > { %2849 = vmatprep.subr.bf16.mxu1 %v3083_v3  ;;  %v3092_v17 = vld [vmem:[%s3777_s1 + $0x48] sm:$0xff]   ;;  %vm3305_vm2 = vmor %vm258_vm0, %vm259_vm1  ;;  %v3094_v46 = vld [vmem:[%s3777_s1 + $0x40] sm:$0xff]   ;;  %s224_s10 = scalar_lea.vmem %s3779_s3, %s2691_s7 }
  0x11   : > { %s3262_s16 = scalar_lea.vmem %s3776_s0, %s3055_s5  ;;  %v3093_v23 = vld [vmem:[%s3777_s1 + $0x8] sm:$0xff]   ;;  %v3095_v50 = vld [vmem:[%s3777_s1] sm:$0xff]   ;;  %v3098_v59 = vld [vmem:[%s3777_s1 + $0xb8] sm:$0xff]  }
  0x12   : > { %2826 = vmatpush3.bf16.msra.mxu0 %v3082_v2  ;;  %v226_v11 = vld [vmem:[%s3262_s16] sm:$0xf]  ;;  %v227_v12 = vld [vmem:[%s3262_s16 + $0x8] sm:$0xf]  ;;  %v3270_v13 = vld [vmem:[%s3262_s16 + $0x4] sm:$0x1] }
  0x13   : > { %2850 = vmatpush3.bf16.msra.mxu1 %v3083_v3  ;;  %2827 = vmatprep.subr.bf16.mxu0 %v3084_v4  ;;  %v3276_v15 = vld [vmem:[%s3262_s16 + $0xc] sm:$0x1]  ;;  %v2391_v16 = vcombine.low %v226_v11, %v227_v12  ;;  %v262_v18 = vshrl.u32 %v226_v11, 16  ;;  %v265_v19 = vshll.u32 %v226_v11, 16  ;;  %v271_v20 = vshll.u32 %v3270_v13, 16  ;;  %v3099_v62 = vld [vmem:[%s3777_s1 + $0xf8] sm:$0xff]   ;;  %vm3388_vm5 = vmor %vm680_vm3, %vm681_vm4 }
  0x14   : > { %2851 = vmatprep.subr.bf16.mxu1 %v3085_v5  ;;  %v276_v21 = vshrl.u32 %v227_v12, 16  ;;  %v3283_v22 = vld [vmem:[%s3262_s16 + $0x10] sm:$0xf]  ;;  %v279_v24 = vshll.u32 %v227_v12, 16  ;;  %v285_v25 = vshll.u32 %v3276_v15, 16  ;;  %v3103_v11 = vld [vmem:[%s3777_s1 + $0xe8] sm:$0xff]  }
  0x15   : > { %2863 = vmatprep.mubr.bf16.mxu1 %v2391_v16  ;;  %v3290_v26 = vld [vmem:[%s3262_s16 + $0x18] sm:$0xf]  ;;  %v264_v27 = vrot.slane %v262_v18, 4  ;;  %v267_v28 = vrot.slane %v265_v19, 5  ;;  %v273_v29 = vrot.slane %v271_v20, 5  ;;  %v290_v35 = vshrl.u32 %v3283_v22, 16 }
  0x16   : > { %2828 = vmatpush3.bf16.msra.mxu0 %v3084_v4  ;;  %v278_v30 = vrot.slane %v276_v21, 4  ;;  %v3293_v31 = vld [vmem:[%s3262_s16 + $0x14] sm:$0x1]  ;;  %v281_v32 = vrot.slane %v279_v24, 5  ;;  %v287_v33 = vrot.slane %v285_v25, 5  ;;  %v293_v36 = vshll.u32 %v3283_v22, 16 }
  0x17   : > { %2852 = vmatpush3.bf16.msra.mxu1 %v3085_v5  ;;  %2829 = vmatprep.subr.bf16.mxu0 %v3086_v6  ;;  %v3296_v34 = vld [vmem:[%s3262_s16 + $0x1c] sm:$0x1]  ;;  %v268_v37 = vor.u32 %v267_v28, %v264_v27  ;;  %v299_v38 = vshll.u32 %v3293_v31, 16  ;;  %v304_v39 = vshrl.u32 %v3290_v26, 16  ;;  %v307_v40 = vshll.u32 %v3290_v26, 16  ;;  %v3100_v3 = vld [vmem:[%s3777_s1 + $0xb0] sm:$0xff]  }
  0x18   : > { %2853 = vmatprep.subr.bf16.mxu1 %v3087_v7  ;;  %v282_v42 = vor.u32 %v281_v32, %v278_v30  ;;  %v292_v43 = vrot.slane %v290_v35, 4  ;;  %v295_v44 = vrot.slane %v293_v36, 5  ;;  %v313_v45 = vshll.u32 %v3296_v34, 16  ;;  %v3101_v5 = vld [vmem:[%s3777_s1 + $0xf0] sm:$0xff]   ;;  %v3361_v28 = vld [vmem:[%s3262_s16 + $0x3c] sm:$0x1] }
  0x19   : > { %v269_v47 = vrot.slane %v268_v37, 4  ;;  %v306_v48 = vrot.slane %v304_v39, 4  ;;  %v309_v49 = vrot.slane %v307_v40, 5  ;;  %v301_v53 = vrot.slane %v299_v38, 5  ;;  %v232_v18 = vld [vmem:[%s3262_s16 + $0x30] sm:$0xf] }
  0x1a   : > { %2830 = vmatpush3.bf16.msra.mxu0 %v3086_v6  ;;  %v283_v51 = vrot.slane %v282_v42, 4  ;;  %v296_v52 = vor.u32 %v295_v44, %v292_v43  ;;  %v315_v56 = vrot.slane %v313_v45, 5  ;;  %v2392_v2 = vcombine.low %v3283_v22, %v3290_v26  ;;  %v230_v6 = vld [vmem:[%s3262_s16 + $0x20] sm:$0xf]  ;;  %v233_v22 = vld [vmem:[%s3262_s16 + $0x38] sm:$0xf] }
  0x1b   : > { %2854 = vmatpush3.bf16.msra.mxu1 %v3087_v7  ;;  %2831 = vmatprep.subr.bf16.mxu0 %v3088_v8  ;;  %v274_v54 = vsel %vm3305_vm2, %v269_v47, %v273_v29  ;;  %v310_v55 = vor.u32 %v309_v49, %v306_v48  ;;  %v685_v4 = vrot.slane %v3270_v13, 5  ;;  %v3102_v7 = vld [vmem:[%s3777_s1 + $0xa8] sm:$0xff]   ;;  %v318_v12 = vshrl.u32 %v230_v6, 16  ;;  %v3104_v39 = vld [vmem:[%s3777_s1 + $0xa0] sm:$0xff]   ;;  %v659_v13 = vld [vmem:[%s3262_s16 + $0x18] sm:$0xe] }
  0x1c   : > { %2855 = vmatprep.subr.bf16.mxu1 %v3089_v9  ;;  %v288_v57 = vsel %vm3305_vm2, %v283_v51, %v287_v33  ;;  %v297_v58 = vrot.slane %v296_v52, 4  ;;  %v346_v32 = vshrl.u32 %v232_v18, 16  ;;  %v349_v33 = vshll.u32 %v232_v18, 16  ;;  %v3105_v45 = vld [vmem:[%s3777_s1 + $0xe0] sm:$0xff]  }
  0x1d   : > { %v2379_v60 = vcombine.low %v274_v54, %v288_v57  ;;  %v311_v61 = vrot.slane %v310_v55, 4  ;;  %v320_v24 = vrot.slane %v318_v12, 4  ;;  %v360_v37 = vshrl.u32 %v233_v22, 16  ;;  %v3106_v57 = vld [vmem:[%s3777_s1 + $0x98] sm:$0xff]  }
  0x1e   : > { %2832 = vmatpush3.bf16.msra.mxu0 %v3088_v8  ;;  %v302_v63 = vsel %vm3305_vm2, %v297_v58, %v301_v53  ;;  %v231_v8 = vld [vmem:[%s3262_s16 + $0x28] sm:$0xf]  ;;  %v363_v38 = vshll.u32 %v233_v22, 16  ;;  %v348_v42 = vrot.slane %v346_v32, 4  ;;  %v351_v43 = vrot.slane %v349_v33, 5 }
  0x1f   : > { %2856 = vmatpush3.bf16.msra.mxu1 %v3089_v9  ;;  %2833 = vmatprep.subr.bf16.mxu0 %v3090_v10  ;;  %v316_v0 = vsel %vm3305_vm2, %v311_v61, %v315_v56  ;;  %v3345_v9 = vld [vmem:[%s3262_s16 + $0x24] sm:$0x1]  ;;  %v335_v19 = vshll.u32 %v231_v8, 16  ;;  %v2393_v21 = vcombine.low %v230_v6, %v231_v8  ;;  %v369_v44 = vshll.u32 %v3361_v28, 16 }
  0x20   : > { %2857 = vmatprep.subr.bf16.mxu1 %v3091_v14  ;;  %2839 = vmatprep.mubr.bf16.mxu0 %v2379_v60  ;;  %v2380_v1 = vcombine.low %v302_v63, %v316_v0  ;;  %v327_v16 = vshll.u32 %v3345_v9, 16  ;;  %v362_v47 = vrot.slane %v360_v37, 4  ;;  %v365_v48 = vrot.slane %v363_v38, 5  ;;  %v656_v63 = vld [vmem:[%s3262_s16] sm:$0xe] }
  0x21   : > { %v337_v29 = vrot.slane %v335_v19, 5  ;;  %v2394_v52 = vcombine.low %v232_v18, %v233_v22  ;;  %v689_v53 = vrot.slane %v3276_v15, 5  ;;  %v371_v56 = vrot.slane %v369_v44, 5  ;;  %v3107_v15 = vld [vmem:[%s3777_s1 + $0xd8] sm:$0xff]   ;;  %v657_v0 = vld [vmem:[%s3262_s16 + $0x8] sm:$0xe] }
  0x22   : > { %2834 = vmatpush3.bf16.msra.mxu0 %v3090_v10  ;;  %v3348_v10 = vld [vmem:[%s3262_s16 + $0x2c] sm:$0x1]  ;;  %v329_v26 = vrot.slane %v327_v16, 5  ;;  %v366_v55 = vor.u32 %v365_v48, %v362_v47  ;;  %v658_v18 = vld [vmem:[%s3262_s16 + $0x10] sm:$0xe]  ;;  %v693_v19 = vrot.slane %v3293_v31, 5 }
  0x23   : > { %2858 = vmatpush3.bf16.msra.mxu1 %v3091_v14  ;;  %2835 = vmatprep.subr.bf16.mxu0 %v3092_v17  ;;  %v321_v14 = vshll.u32 %v230_v6, 16  ;;  %v341_v20 = vshll.u32 %v3348_v10, 16  ;;  %v3112_v16 = vld [vmem:[%s3777_s1 + $0x88] sm:$0xff]   ;;  %v2406_v22 = vrot.slane %v659_v13, 9  ;;  %v3115_v31 = vld [vmem:[%s3777_s1 + $0xc0] sm:$0xff]  }
  0x24   : > { %2859 = vmatprep.subr.bf16.mxu1 %v3093_v23  ;;  %v367_v61 = vrot.slane %v366_v55, 4  ;;  %v3117_v37 = vld [vmem:[%s3262_s16 + $0x18] ss:$8 sps:$4 sm:$0xff]   ;;  %v3124_v48 = vld [vmem:[%s3262_s16 + $0x28] ss:$8 sps:$4 sm:$0xff]  }
  0x25   : > { %v323_v25 = vrot.slane %v321_v14, 5  ;;  %v343_v30 = vrot.slane %v341_v20, 5  ;;  %v697_v20 = vrot.slane %v3296_v34, 5  ;;  %v705_v34 = vrot.slane %v3348_v10, 5  ;;  %v3119_v10 = vld [vmem:[%s3777_s1 + $0x178] sm:$0xff]  }
  0x26   : > { %2836 = vmatpush3.bf16.msra.mxu0 %v3092_v17  ;;  %v332_v17 = vshrl.u32 %v231_v8, 16  ;;  %v3116_v8 = vld [vmem:[%s3262_s16 + $0x8] ss:$8 sps:$4 sm:$0xff]  }
  0x27   : > { %2860 = vmatpush3.bf16.msra.mxu1 %v3093_v23  ;;  %2837 = vmatprep.subr.bf16.mxu0 %v3094_v46  ;;  %v3358_v23 = vld [vmem:[%s3262_s16 + $0x34] sm:$0x1]  ;;  %v324_v35 = vor.u32 %v323_v25, %v320_v24  ;;  %v660_v24 = vld [vmem:[%s3262_s16 + $0x20] sm:$0xe]  ;;  %v661_v25 = vld [vmem:[%s3262_s16 + $0x28] sm:$0xe] }
  0x28   : > { %2861 = vmatprep.subr.bf16.mxu1 %v3095_v50  ;;  %v334_v27 = vrot.slane %v332_v17, 4  ;;  %v355_v36 = vshll.u32 %v3358_v23, 16  ;;  %v2408_v32 = vrot.slane %v661_v25, 9  ;;  %v709_v38 = vrot.slane %v3358_v23, 5  ;;  %v3121_v23 = vld [vmem:[%s3777_s1 + $0x170] sm:$0xff]  }
  0x29   : > { %v2475_v55 = vld [vmem:[%s3262_s16 + $0x8] sm:$0xf]  ;;  %v2482_v25 = vld [vmem:[%s3262_s16 + $0x24] sm:$0x1] }
  0x2a   : > { %2838 = vmatpush3.bf16.msra.mxu0 %v3094_v46  ;;  %v338_v40 = vor.u32 %v337_v29, %v334_v27  ;;  %v325_v46 = vrot.slane %v324_v35, 4  ;;  %v357_v51 = vrot.slane %v355_v36, 5  ;;  %v701_v27 = vrot.slane %v3345_v9, 5  ;;  %v3118_v29 = vld [vmem:[%s3777_s1 + $0x138] sm:$0xff]   ;;  %v662_v35 = vld [vmem:[%s3262_s16 + $0x30] sm:$0xe] }
  0x2b   : > { %2862 = vmatpush3.bf16.msra.mxu1 %v3095_v50  ;;  %2871 = vmatprep.subr.bf16.mxu0 %v3098_v59  ;;  %v352_v50 = vor.u32 %v351_v43, %v348_v42  ;;  %v698_v9 = vsel %vm3388_vm5, %v2406_v22, %v697_v20  ;;  %v663_v36 = vld [vmem:[%s3262_s16 + $0x38] sm:$0xe]  ;;  %v706_v42 = vsel %vm3388_vm5, %v2408_v32, %v705_v34  ;;  %v713_v43 = vrot.slane %v3361_v28, 5  ;;  %v2480_v20 = vld [vmem:[%s3262_s16 + $0x1c] sm:$0x1] }
  0x2c   : > { %2895 = vmatprep.subr.bf16.mxu1 %v3099_v62  ;;  %v339_v49 = vrot.slane %v338_v40, 4  ;;  %v330_v54 = vsel %vm3305_vm2, %v325_v46, %v329_v26  ;;  %v3114_v26 = vld [vmem:[%s3777_s1 + $0x80] sm:$0xff]   ;;  %v2409_v44 = vrot.slane %v662_v35, 9  ;;  %v3120_v46 = vld [vmem:[%s3777_s1 + $0x130] sm:$0xff]   ;;  %v3128_v22 = vld [vmem:[%s3777_s1 + $0x118] sm:$0xff]  }
  0x2d   : > { %2840 = vmatmul.mubr.bf16.vlgmr.msra.gmra.mxu0 %v2380_v1  ;;  %v3129_v34 = vld [vmem:[%s3777_s1 + $0x158] sm:$0xff]   ;;  %v3130_v35 = vld [vmem:[%s3777_s1 + $0x110] sm:$0xff]  }
  0x2e   : > { %2864 = vmatmul.mubr.bf16.vlgmr.msra.gmra.mxu1 %v2392_v2  ;;  %2872 = vmatpush3.bf16.msra.mxu0 %v3098_v59  ;;  %v344_v58 = vsel %vm3305_vm2, %v339_v49, %v343_v30  ;;  %v353_v59 = vrot.slane %v352_v50, 4  ;;  %v372_v2 = vsel %vm3305_vm2, %v367_v61, %v371_v56  ;;  %v2407_v30 = vrot.slane %v660_v24, 9  ;;  %v3122_v50 = vld [vmem:[%s3777_s1 + $0x128] sm:$0xff]  }
  0x2f   : > { %2896 = vmatpush3.bf16.msra.mxu1 %v3099_v62  ;;  %2873 = vmatprep.subr.bf16.mxu0 %v3100_v3  ;;  %v2381_v60 = vcombine.low %v330_v54, %v344_v58  ;;  %v710_v28 = vsel %vm3388_vm5, %v2409_v44, %v709_v38  ;;  %v3126_v54 = vld [vmem:[%s3777_s1 + $0x120] sm:$0xff]   ;;  %v2476_v56 = vld [vmem:[%s3262_s16 + $0xc] sm:$0x1]  ;;  %v2477_v58 = vld [vmem:[%s3262_s16 + $0x10] sm:$0xf] }
  0x30   : > { %2897 = vmatprep.subr.bf16.mxu1 %v3101_v5  ;;  %2867 = vmatprep.mubr.bf16.mxu1 %v2393_v21  ;;  %v358_v62 = vsel %vm3305_vm2, %v353_v59, %v357_v51  ;;  %v2405_v21 = vrot.slane %v658_v18, 9  ;;  %v702_v40 = vsel %vm3388_vm5, %v2407_v30, %v701_v27  ;;  %v3123_v51 = vld [vmem:[%s3777_s1 + $0x168] sm:$0xff]   ;;  %v2478_v59 = vld [vmem:[%s3262_s16 + $0x14] sm:$0x1]  ;;  %v1066_v61 = vshll.u32 %v2476_v56, 16 }
  0x31   : > { %2843 = vmatprep.mubr.bf16.mxu0 %v2381_v60  ;;  %v2382_v6 = vcombine.low %v358_v62, %v372_v2  ;;  %v2429_v47 = vcombine.low %v702_v40, %v706_v42  ;;  %v1060_v60 = vshll.u32 %v2475_v55, 16  ;;  %v1071_v62 = vshrl.u32 %v2477_v58, 16  ;;  %v2519_v2 = vld [vmem:[%s3262_s16 + $0x8] sm:$0xe]  ;;  %v3131_v40 = vld [vmem:[%s3777_s1 + $0x150] sm:$0xff]  }
  0x32   : > { %2874 = vmatpush3.bf16.msra.mxu0 %v3100_v3  ;;  %v2403_v3 = vrot.slane %v656_v63, 9  ;;  %v694_v33 = vsel %vm3388_vm5, %v2405_v21, %v693_v19  ;;  %v1074_v63 = vshll.u32 %v2477_v58, 16  ;;  %v1352_v19 = vrot.slane %v2478_v59, 5  ;;  %v2481_v21 = vld [vmem:[%s3262_s16 + $0x20] sm:$0xf] }
  0x33   : > { %2898 = vmatpush3.bf16.msra.mxu1 %v3101_v5  ;;  %2875 = vmatprep.subr.bf16.mxu0 %v3102_v7  ;;  %v2404_v5 = vrot.slane %v657_v0, 9  ;;  %v1080_v0 = vshll.u32 %v2478_v59, 16  ;;  %v1099_v32 = vshrl.u32 %v2481_v21, 16  ;;  %v2483_v59 = vld [vmem:[%s3262_s16 + $0x28] sm:$0xf] }
  0x34   : > { %2899 = vmatprep.subr.bf16.mxu1 %v3103_v11  ;;  %v686_v12 = vsel %vm3388_vm5, %v2403_v3, %v685_v4  ;;  %v3113_v4 = vld [vmem:[%s3777_s1 + $0xc8] sm:$0xff]  }
  0x35   : > { %v690_v14 = vsel %vm3388_vm5, %v2404_v5, %v689_v53  ;;  %2844 = vmatmul.mubr.bf16.gmra.mxu0 %v2382_v6  ;;  %v1062_v5 = vrot.slane %v1060_v60, 5  ;;  %v2520_v6 = vld [vmem:[%s3262_s16 + $0x10] sm:$0xe]  ;;  %v1101_v44 = vrot.slane %v1099_v32, 4 }
  0x36   : > { %2876 = vmatpush3.bf16.msra.mxu0 %v3102_v7  ;;  %2868 = vmatmul.mubr.bf16.gmra.mxu1 %v2394_v52  ;;  %v3110_v7 = vld [vmem:[%s3777_s1 + $0x90] sm:$0xff]   ;;  %v2427_v17 = vcombine.low %v686_v12, %v690_v14  ;;  %v3125_v52 = vld [vmem:[%s3262_s16 + $0x38] ss:$8 sps:$4 sm:$0xff]   ;;  %v1073_v12 = vrot.slane %v1071_v62, 4  ;;  %v1076_v14 = vrot.slane %v1074_v63, 5 }
  0x37   : > { %2900 = vmatpush3.bf16.msra.mxu1 %v3103_v11  ;;  %2877 = vmatprep.subr.bf16.mxu0 %v3104_v39  ;;  %v3111_v11 = vld [vmem:[%s3777_s1 + $0xd0] sm:$0xff]  }
  0x38   : > { %2901 = vmatprep.subr.bf16.mxu1 %v3105_v45  ;;  %2911 = vmatprep.mubr.bf16.mxu1 %v3116_v8  ;;  %v1348_v8 = vrot.slane %v2476_v56, 5  ;;  %v1077_v24 = vor.u32 %v1076_v14, %v1073_v12  ;;  %v3133_v56 = vld [vmem:[%s3777_s1 + $0x148] sm:$0xff]   ;;  %v2485_v60 = vld [vmem:[%s3262_s16 + $0x30] sm:$0xf]  ;;  %v3532_v63 = vld [vmem:[%s3262_s16 + $0x34] sm:$0x1] }
  0x39   : > { %2887 = vmatprep.mubr.bf16.mxu0 %v2427_v17  ;;  %v2479_v17 = vld [vmem:[%s3262_s16 + $0x18] sm:$0xf]  ;;  %v3543_v12 = vld [vmem:[%s3262_s16 + $0x3c] sm:$0x1] }
  0x3a   : > { %2878 = vmatpush3.bf16.msra.mxu0 %v3104_v39  ;;  %v2428_v39 = vcombine.low %v694_v33, %v698_v9  ;;  %v1088_v27 = vshll.u32 %v2479_v17, 16  ;;  %v1102_v33 = vshll.u32 %v2481_v21, 16  ;;  %v2521_v9 = vld [vmem:[%s3262_s16 + $0x18] sm:$0xe]  ;;  %v3548_v21 = vld [vmem:[%s3262_s16 + $0x44] sm:$0x1] }
  0x3b   : > { %2902 = vmatpush3.bf16.msra.mxu1 %v3105_v45  ;;  %2879 = vmatprep.subr.bf16.mxu0 %v3106_v57  ;;  %v2410_v45 = vrot.slane %v663_v36, 9  ;;  %v1078_v36 = vrot.slane %v1077_v24, 4  ;;  %v3135_v24 = vld [vmem:[%s3777_s1 + $0x140] sm:$0xff]  }
  0x3c   : > { %2903 = vmatprep.subr.bf16.mxu1 %v3107_v15  ;;  %v1090_v38 = vrot.slane %v1088_v27, 5 }
  0x3d   : > { %v714_v49 = vsel %vm3388_vm5, %v2410_v45, %v713_v43  ;;  %v1104_v45 = vrot.slane %v1102_v33, 5 }
  0x3e   : > { %2880 = vmatpush3.bf16.msra.mxu0 %v3106_v57  ;;  %v2430_v53 = vcombine.low %v710_v28, %v714_v49  ;;  %v3127_v57 = vld [vmem:[%s3777_s1 + $0x160] sm:$0xff]  }
  0x3f   : > { %2904 = vmatpush3.bf16.msra.mxu1 %v3107_v15  ;;  %2881 = vmatprep.subr.bf16.mxu0 %v3110_v7  ;;  %v1057_v15 = vshrl.u32 %v2475_v55, 16  ;;  %v1105_v49 = vor.u32 %v1104_v45, %v1101_v44  ;;  %v1360_v55 = vrot.slane %v2482_v25, 5 }
  0x40   : > { %2905 = vmatprep.subr.bf16.mxu1 %v3111_v11 }
  0x41   : > { %v1059_v3 = vrot.slane %v1057_v15, 4  ;;  %v3520_v15 = vld [vmem:[%s3262_s16 + $0x2c] sm:$0x1] }
  0x42   : > { %2882 = vmatpush3.bf16.msra.mxu0 %v3110_v7  ;;  %v2527_v7 = vrot.slane %v2519_v2, 9  ;;  %v1116_v2 = vshll.u32 %v2483_v59, 16 }
  0x43   : > { %2906 = vmatpush3.bf16.msra.mxu1 %v3111_v11  ;;  %2883 = vmatprep.subr.bf16.mxu0 %v3112_v16  ;;  %v1068_v11 = vrot.slane %v1066_v61, 5  ;;  %v1063_v18 = vor.u32 %v1062_v5, %v1059_v3  ;;  %v2487_v3 = vld [vmem:[%s3262_s16 + $0x38] sm:$0xf]  ;;  %v3134_v5 = vld [vmem:[%s3777_s1 + $0x100] sm:$0xff]  }
  0x44   : > { %2907 = vmatprep.subr.bf16.mxu1 %v3113_v4  ;;  %v1349_v13 = vsel %vm3388_vm5, %v2527_v7, %v1348_v8  ;;  %v1122_v7 = vshll.u32 %v3520_v15, 16  ;;  %v1127_v8 = vshrl.u32 %v2485_v60, 16 }
  0x46   : > { %2884 = vmatpush3.bf16.msra.mxu0 %v3112_v16  ;;  %v1082_v16 = vrot.slane %v1080_v0, 5  ;;  %v1113_v0 = vshrl.u32 %v2483_v59, 16 }
  0x47   : > { %2908 = vmatpush3.bf16.msra.mxu1 %v3113_v4  ;;  %2885 = vmatprep.subr.bf16.mxu0 %v3114_v26  ;;  %v2528_v4 = vrot.slane %v2520_v6, 9 }
  0x48   : > { %2909 = vmatprep.subr.bf16.mxu1 %v3115_v31  ;;  %v1115_v14 = vrot.slane %v1113_v0, 4  ;;  %v3140_v0 = vld [vmem:[%s3777_s1 + $0x1a8] sm:$0xff]  }
  0x49   : > { %v1353_v30 = vsel %vm3388_vm5, %v2528_v4, %v1352_v19  ;;  %v1124_v4 = vrot.slane %v1122_v7, 5  ;;  %v1129_v19 = vrot.slane %v1127_v8, 4  ;;  %v3141_v8 = vld [vmem:[%s3777_s1 + $0x1e8] sm:$0xff]  }
  0x4a   : > { %2886 = vmatpush3.bf16.msra.mxu0 %v3114_v26  ;;  %v1085_v26 = vshrl.u32 %v2479_v17, 16  ;;  %v1136_v17 = vshll.u32 %v3532_v63, 16 }
  0x4b   : > { %2910 = vmatpush3.bf16.msra.mxu1 %v3115_v31  ;;  %2919 = vmatprep.subr.bf16.mxu0 %v3118_v29  ;;  %v1094_v31 = vshll.u32 %v2480_v20, 16 }
  0x4c   : > { %2943 = vmatprep.subr.bf16.mxu1 %v3119_v10 }
  0x4d   : > { %2888 = vmatmul.mubr.bf16.vlgmr.msra.gmra.mxu0 %v2428_v39  ;;  %v2522_v39 = vld [vmem:[%s3262_s16 + $0x20] sm:$0xe]  ;;  %v3500_v43 = vrot.slane %v1094_v31, 5  ;;  %v1150_v31 = vshll.u32 %v3543_v12, 16 }
  0x4e   : > { %2912 = vmatmul.mubr.bf16.vlgmr.msra.gmra.mxu1 %v3117_v37  ;;  %2920 = vmatpush3.bf16.msra.mxu0 %v3118_v29  ;;  %v1064_v29 = vrot.slane %v1063_v18, 4  ;;  %v2551_v37 = vcombine.low %v1349_v13, %v1353_v30  ;;  %v2489_v18 = vld [vmem:[%s3262_s16 + $0x40] sm:$0xf]  ;;  %v1141_v13 = vshrl.u32 %v2487_v3, 16 }
  0x4f   : > { %2944 = vmatpush3.bf16.msra.mxu1 %v3119_v10  ;;  %2921 = vmatprep.subr.bf16.mxu0 %v3120_v46  ;;  %v1087_v10 = vrot.slane %v1085_v26, 4  ;;  %v1138_v26 = vrot.slane %v1136_v17, 5  ;;  %v1155_v30 = vshrl.u32 %v2489_v18, 16  ;;  %v1158_v32 = vshll.u32 %v2489_v18, 16  ;;  %v3152_v17 = vld [vmem:[%s3262_s16 + $0x10] ss:$8 sps:$4 sm:$0xff]  }
  0x50   : > { %2945 = vmatprep.subr.bf16.mxu1 %v3121_v23  ;;  %2891 = vmatprep.mubr.bf16.mxu0 %v2429_v47  ;;  %v1069_v42 = vsel %vm3305_vm2, %v1064_v29, %v1068_v11  ;;  %v1108_v47 = vshll.u32 %v2482_v25, 16  ;;  %v1130_v11 = vshll.u32 %v2485_v60, 16  ;;  %v1143_v27 = vrot.slane %v1141_v13, 4  ;;  %v3139_v60 = vld [vmem:[%s3777_s1 + $0x1f0] sm:$0xff]  }
  0x51   : > { %2915 = vmatprep.mubr.bf16.mxu1 %v3124_v48  ;;  %v2529_v48 = vrot.slane %v2521_v9, 9  ;;  %v3136_v9 = vld [vmem:[%s3777_s1 + $0x1b8] sm:$0xff]   ;;  %v1152_v45 = vrot.slane %v1150_v31, 5  ;;  %v2599_v18 = vld [vmem:[%s3262_s16 + $0x10] sm:$0xf] }
  0x52   : > { %2922 = vmatpush3.bf16.msra.mxu0 %v3120_v46  ;;  %v1083_v46 = vsel %vm3305_vm2, %v1078_v36, %v1082_v16  ;;  %v1118_v16 = vrot.slane %v1116_v2, 5  ;;  %v1164_v36 = vshll.u32 %v3548_v21, 16  ;;  %v3608_v13 = vld [vmem:[%s3262_s16 + $0x14] sm:$0x1] }
  0x53   : > { %2946 = vmatpush3.bf16.msra.mxu1 %v3121_v23  ;;  %2923 = vmatprep.subr.bf16.mxu0 %v3122_v50  ;;  %v1091_v23 = vor.u32 %v1090_v38, %v1087_v10  ;;  %v2507_v28 = vcombine.low %v1069_v42, %v1083_v46  ;;  %v3137_v10 = vld [vmem:[%s3777_s1 + $0x1f8] sm:$0xff]   ;;  %v1160_v42 = vrot.slane %v1158_v32, 5  ;;  %v2523_v46 = vld [vmem:[%s3262_s16 + $0x28] sm:$0xe] }
  0x54   : > { %2947 = vmatprep.subr.bf16.mxu1 %v3123_v51  ;;  %v1119_v25 = vor.u32 %v1118_v16, %v1115_v14  ;;  %v3142_v14 = vld [vmem:[%s3777_s1 + $0x1a0] sm:$0xff]  }
  0x55   : > { %2892 = vmatmul.mubr.bf16.gmra.mxu0 %v2430_v53  ;;  %v3507_v53 = vrot.slane %v1091_v23, 4  ;;  %v2524_v23 = vld [vmem:[%s3262_s16 + $0x30] sm:$0xe]  ;;  %v3143_v16 = vld [vmem:[%s3777_s1 + $0x1e0] sm:$0xff]  }
  0x56   : > { %2924 = vmatpush3.bf16.msra.mxu0 %v3122_v50  ;;  %2916 = vmatmul.mubr.bf16.gmra.mxu1 %v3125_v52  ;;  %v1356_v50 = vrot.slane %v2480_v20, 5  ;;  %v3132_v52 = vld [vmem:[%s3777_s1 + $0x108] sm:$0xff]   ;;  %v1132_v20 = vrot.slane %v1130_v11, 5 }
  0x57   : > { %2948 = vmatpush3.bf16.msra.mxu1 %v3123_v51  ;;  %2925 = vmatprep.subr.bf16.mxu0 %v3126_v54  ;;  %v2530_v51 = vrot.slane %v2522_v39, 9  ;;  %v1097_v61 = vsel %vm3305_vm2, %v3507_v53, %v3500_v43  ;;  %v2526_v53 = vld [vmem:[%s3262_s16 + $0x40] sm:$0xe] }
  0x58   : > { %2949 = vmatprep.subr.bf16.mxu1 %v3127_v57  ;;  %2959 = vmatprep.mubr.bf16.mxu1 %v2551_v37  ;;  %v3516_v58 = vsel %vm3388_vm5, %v2529_v48, %v1356_v50  ;;  %v1364_v37 = vrot.slane %v3520_v15, 5  ;;  %v3138_v48 = vld [vmem:[%s3777_s1 + $0x1b0] sm:$0xff]   ;;  %v1166_v50 = vrot.slane %v1164_v36, 5  ;;  %v2534_v15 = vrot.slane %v2526_v53, 9 }
  0x59   : > { %2935 = vmatprep.mubr.bf16.mxu0 %v2507_v28  ;;  %v3529_v62 = vsel %vm3388_vm5, %v2530_v51, %v1360_v55  ;;  %v2531_v51 = vrot.slane %v2523_v46, 9  ;;  %v2532_v55 = vrot.slane %v2524_v23, 9 }
  0x5a   : > { %2926 = vmatpush3.bf16.msra.mxu0 %v3126_v54  ;;  %v3509_v54 = vrot.slane %v1108_v47, 5  ;;  %v2552_v33 = vcombine.low %v3516_v58, %v3529_v62  ;;  %v1368_v47 = vrot.slane %v3532_v63, 5  ;;  %v1376_v63 = vrot.slane %v3548_v21, 5 }
  0x5b   : > { %2950 = vmatpush3.bf16.msra.mxu1 %v3127_v57  ;;  %2927 = vmatprep.subr.bf16.mxu0 %v3128_v22  ;;  %v1106_v57 = vrot.slane %v1105_v49, 4  ;;  %v1365_v59 = vsel %vm3388_vm5, %v2531_v51, %v1364_v37  ;;  %v1723_v21 = vshll.u32 %v2599_v18, 16  ;;  %v3627_v37 = vld [vmem:[%s3262_s16 + $0x24] sm:$0x1] }
  0x5c   : > { %2951 = vmatprep.subr.bf16.mxu1 %v3129_v34  ;;  %v1369_v62 = vsel %vm3388_vm5, %v2532_v55, %v1368_v47  ;;  %v1377_v7 = vsel %vm3388_vm5, %v2534_v15, %v1376_v63  ;;  %v1757_v46 = vshll.u32 %v3627_v37, 16  ;;  %v2607_v63 = vld [vmem:[%s3262_s16 + $0x30] sm:$0xf] }
  0x5d   : > { %v1111_v6 = vsel %vm3305_vm2, %v1106_v57, %v3509_v54  ;;  %v1372_v57 = vrot.slane %v3543_v12, 5  ;;  %v2553_v2 = vcombine.low %v1365_v59, %v1369_v62 }
  0x5e   : > { %2928 = vmatpush3.bf16.msra.mxu0 %v3128_v22  ;;  %v1144_v22 = vshll.u32 %v2487_v3, 16  ;;  %v2508_v43 = vcombine.low %v1097_v61, %v1111_v6  ;;  %v1759_v59 = vrot.slane %v1757_v46, 5  ;;  %v3155_v46 = vld [vmem:[%s3777_s1 + $0x230] sm:$0xff]  }
  0x5f   : > { %2952 = vmatpush3.bf16.msra.mxu1 %v3129_v34  ;;  %2929 = vmatprep.subr.bf16.mxu0 %v3130_v35  ;;  %v1133_v34 = vor.u32 %v1132_v20, %v1129_v19  ;;  %v3612_v19 = vld [vmem:[%s3262_s16 + $0x1c] sm:$0x1]  ;;  %v1720_v20 = vshrl.u32 %v2599_v18, 16 }
  0x60   : > { %2953 = vmatprep.subr.bf16.mxu1 %v3131_v40  ;;  %v1146_v29 = vrot.slane %v1144_v22, 5  ;;  %v1729_v22 = vshll.u32 %v3608_v13, 16 }
  0x61   : > { %v1134_v38 = vrot.slane %v1133_v34, 4  ;;  %v1722_v31 = vrot.slane %v1720_v20, 4  ;;  %v1725_v34 = vrot.slane %v1723_v21, 5 }
  0x62   : > { %2930 = vmatpush3.bf16.msra.mxu0 %v3130_v35  ;;  %v1120_v35 = vrot.slane %v1119_v25, 4  ;;  %v1147_v39 = vor.u32 %v1146_v29, %v1143_v27  ;;  %v3144_v27 = vld [vmem:[%s3777_s1 + $0x198] sm:$0xff]  }
  0x63   : > { %2954 = vmatpush3.bf16.msra.mxu1 %v3131_v40  ;;  %2931 = vmatprep.subr.bf16.mxu0 %v3132_v52  ;;  %v1157_v40 = vrot.slane %v1155_v30, 4  ;;  %v1139_v28 = vsel %vm3305_vm2, %v1134_v38, %v1138_v26  ;;  %v1743_v26 = vshll.u32 %v3612_v19, 16  ;;  %v3145_v29 = vld [vmem:[%s3777_s1 + $0x1d8] sm:$0xff]   ;;  %v1731_v30 = vrot.slane %v1729_v22, 5  ;;  %v3631_v38 = vld [vmem:[%s3262_s16 + $0x2c] sm:$0x1] }
  0x64   : > { %2955 = vmatprep.subr.bf16.mxu1 %v3133_v56  ;;  %v1125_v44 = vsel %vm3305_vm2, %v1120_v35, %v1124_v4  ;;  %v1148_v54 = vrot.slane %v1147_v39, 4  ;;  %v2601_v4 = vld [vmem:[%s3262_s16 + $0x18] sm:$0xf]  ;;  %v3146_v35 = vld [vmem:[%s3777_s1 + $0x190] sm:$0xff]   ;;  %v1726_v36 = vor.u32 %v1725_v34, %v1722_v31  ;;  %v3670_v22 = vld [vmem:[%s3262_s16 + $0x44] sm:$0x1] }
  0x65   : > { %v1161_v49 = vor.u32 %v1160_v42, %v1157_v40  ;;  %v2509_v61 = vcombine.low %v1125_v44, %v1139_v28  ;;  %v1737_v25 = vshll.u32 %v2601_v4, 16  ;;  %v3147_v39 = vld [vmem:[%s3777_s1 + $0x1d0] sm:$0xff]   ;;  %v1745_v42 = vrot.slane %v1743_v26, 5 }
  0x66   : > { %2932 = vmatpush3.bf16.msra.mxu0 %v3132_v52  ;;  %v2525_v52 = vld [vmem:[%s3262_s16 + $0x38] sm:$0xe]  ;;  %v1153_v3 = vsel %vm3305_vm2, %v1148_v54, %v1152_v45  ;;  %v1727_v45 = vrot.slane %v1726_v36, 4  ;;  %v3148_v54 = vld [vmem:[%s3777_s1 + $0x188] sm:$0xff]  }
  0x67   : > { %2956 = vmatpush3.bf16.msra.mxu1 %v3133_v56  ;;  %2933 = vmatprep.subr.bf16.mxu0 %v3134_v5  ;;  %v2533_v56 = vrot.slane %v2525_v52, 9  ;;  %v1162_v58 = vrot.slane %v1161_v49, 4 }
  0x68   : > { %2957 = vmatprep.subr.bf16.mxu1 %v3135_v24  ;;  %v1732_v51 = vsel %vm3305_vm2, %v1727_v45, %v1731_v30  ;;  %v3674_v30 = vld [vmem:[%s3262_s16 + $0x4c] sm:$0x1] }
  0x69   : > { %v1373_v6 = vsel %vm3388_vm5, %v2533_v56, %v1372_v57  ;;  %v3149_v57 = vld [vmem:[%s3777_s1 + $0x1c8] sm:$0xff]  }
  0x6a   : > { %2934 = vmatpush3.bf16.msra.mxu0 %v3134_v5  ;;  %v1167_v5 = vsel %vm3305_vm2, %v1162_v58, %v1166_v50  ;;  %v2554_v12 = vcombine.low %v1373_v6, %v1377_v7  ;;  %v1771_v50 = vshll.u32 %v3631_v38, 16  ;;  %v1779_v6 = vshll.u32 %v2607_v63, 16  ;;  %v3150_v7 = vld [vmem:[%s3777_s1 + $0x180] sm:$0xff]  }
  0x6b   : > { %2958 = vmatpush3.bf16.msra.mxu1 %v3135_v24  ;;  %2967 = vmatprep.subr.bf16.mxu0 %v3136_v9  ;;  %v2510_v11 = vcombine.low %v1153_v3, %v1167_v5  ;;  %v1734_v24 = vshrl.u32 %v2601_v4, 16  ;;  %v3654_v3 = vld [vmem:[%s3262_s16 + $0x3c] sm:$0x1]  ;;  %v1776_v5 = vshrl.u32 %v2607_v63, 16 }
  0x6c   : > { %2991 = vmatprep.subr.bf16.mxu1 %v3137_v10  ;;  %v1781_v20 = vrot.slane %v1779_v6, 5  ;;  %v1799_v21 = vshll.u32 %v3654_v3, 16 }
  0x6d   : > { %2936 = vmatmul.mubr.bf16.vlgmr.msra.gmra.mxu0 %v2508_v43  ;;  %v1736_v32 = vrot.slane %v1734_v24, 4  ;;  %v1778_v4 = vrot.slane %v1776_v5, 4  ;;  %v2648_v5 = vld [vmem:[%s3262_s16 + $0x38] sm:$0xe] }
  0x6e   : > { %2960 = vmatmul.mubr.bf16.vlgmr.msra.gmra.mxu1 %v2552_v33  ;;  %2968 = vmatpush3.bf16.msra.mxu0 %v3136_v9  ;;  %v1739_v33 = vrot.slane %v1737_v25, 5  ;;  %v2603_v9 = vld [vmem:[%s3262_s16 + $0x20] sm:$0xf] }
  0x6f   : > { %2992 = vmatpush3.bf16.msra.mxu1 %v3137_v10  ;;  %2969 = vmatprep.subr.bf16.mxu0 %v3138_v48  ;;  %v2605_v10 = vld [vmem:[%s3262_s16 + $0x28] sm:$0xf]  ;;  %v1748_v43 = vshrl.u32 %v2603_v9, 16  ;;  %v1751_v44 = vshll.u32 %v2603_v9, 16  ;;  %v1782_v34 = vor.u32 %v1781_v20, %v1778_v4  ;;  %v3160_v20 = vld [vmem:[%s3777_s1 + $0x218] sm:$0xff]  }
  0x70   : > { %2993 = vmatprep.subr.bf16.mxu1 %v3139_v60  ;;  %2939 = vmatprep.mubr.bf16.mxu0 %v2509_v61  ;;  %v1740_v40 = vor.u32 %v1739_v33, %v1736_v32  ;;  %v1762_v23 = vshrl.u32 %v2605_v10, 16  ;;  %v1765_v47 = vshll.u32 %v2605_v10, 16  ;;  %v1773_v61 = vrot.slane %v1771_v50, 5  ;;  %v3153_v9 = vld [vmem:[%s3262_s16 + $0x20] ss:$8 sps:$4 sm:$0xff]  }
  0x71   : > { %2963 = vmatprep.mubr.bf16.mxu1 %v2553_v2  ;;  %v1750_v28 = vrot.slane %v1748_v43, 4  ;;  %v1753_v49 = vrot.slane %v1751_v44, 5  ;;  %v2609_v2 = vld [vmem:[%s3262_s16 + $0x38] sm:$0xf]  ;;  %v1813_v33 = vshll.u32 %v3670_v22, 16  ;;  %v1827_v44 = vshll.u32 %v3674_v30, 16 }
  0x72   : > { %2970 = vmatpush3.bf16.msra.mxu0 %v3138_v48  ;;  %v1741_v48 = vrot.slane %v1740_v40, 4  ;;  %v1764_v52 = vrot.slane %v1762_v23, 4  ;;  %v1767_v53 = vrot.slane %v1765_v47, 5 }
  0x73   : > { %2994 = vmatpush3.bf16.msra.mxu1 %v3139_v60  ;;  %2971 = vmatprep.subr.bf16.mxu0 %v3140_v0  ;;  %v1754_v56 = vor.u32 %v1753_v49, %v1750_v28  ;;  %v3156_v28 = vld [vmem:[%s3262_s16 + $0x30] ss:$8 sps:$4 sm:$0xff]  }
  0x74   : > { %2995 = vmatprep.subr.bf16.mxu1 %v3141_v8  ;;  %v1746_v55 = vsel %vm3305_vm2, %v1741_v48, %v1745_v42  ;;  %v1768_v15 = vor.u32 %v1767_v53, %v1764_v52  ;;  %v1783_v42 = vrot.slane %v1782_v34, 4  ;;  %v1829_v52 = vrot.slane %v1827_v44, 5 }
  0x75   : > { %2940 = vmatmul.mubr.bf16.gmra.mxu0 %v2510_v11  ;;  %v2631_v58 = vcombine.low %v1732_v51, %v1746_v55  ;;  %v1755_v60 = vrot.slane %v1754_v56, 4  ;;  %v1815_v51 = vrot.slane %v1813_v33, 5  ;;  %v2011_v56 = vrot.slane %v3608_v13, 5  ;;  %v3158_v13 = vld [vmem:[%s3777_s1 + $0x228] sm:$0xff]  }
  0x76   : > { %2972 = vmatpush3.bf16.msra.mxu0 %v3140_v0  ;;  %2964 = vmatmul.mubr.bf16.gmra.mxu1 %v2554_v12  ;;  %v1769_v62 = vrot.slane %v1768_v15, 4  ;;  %v3650_v0 = vld [vmem:[%s3262_s16 + $0x34] sm:$0x1]  ;;  %v1790_v12 = vshrl.u32 %v2609_v2, 16  ;;  %v2644_v15 = vld [vmem:[%s3262_s16 + $0x18] sm:$0xe] }
  0x77   : > { %2996 = vmatpush3.bf16.msra.mxu1 %v3141_v8  ;;  %2973 = vmatprep.subr.bf16.mxu0 %v3142_v14  ;;  %v1760_v8 = vsel %vm3305_vm2, %v1755_v60, %v1759_v59  ;;  %v1785_v11 = vshll.u32 %v3650_v0, 16  ;;  %v2643_v59 = vld [vmem:[%s3262_s16 + $0x10] sm:$0xe]  ;;  %v2015_v60 = vrot.slane %v3612_v19, 5  ;;  %v2652_v63 = vrot.slane %v2644_v15, 9 }
  0x78   : > { %2997 = vmatprep.subr.bf16.mxu1 %v3143_v16  ;;  %2983 = vmatprep.mubr.bf16.mxu0 %v3152_v17  ;;  %v3151_v17 = vld [vmem:[%s3777_s1 + $0x1c0] sm:$0xff]   ;;  %v1774_v18 = vsel %vm3305_vm2, %v1769_v62, %v1773_v61  ;;  %v1792_v25 = vrot.slane %v1790_v12, 4  ;;  %v2651_v62 = vrot.slane %v2643_v59, 9  ;;  %v2023_v33 = vrot.slane %v3631_v38, 5 }
  0x79   : > { %3007 = vmatprep.mubr.bf16.mxu1 %v2631_v58  ;;  %v1787_v24 = vrot.slane %v1785_v11, 5  ;;  %v2632_v45 = vcombine.low %v1760_v8, %v1774_v18  ;;  %v2656_v8 = vrot.slane %v2648_v5, 9  ;;  %v2031_v11 = vrot.slane %v3654_v3, 5  ;;  %v3157_v12 = vld [vmem:[%s3262_s16 + $0x40] ss:$8 sps:$4 sm:$0xff]  }
  0x7a   : > { %2974 = vmatpush3.bf16.msra.mxu0 %v3142_v14  ;;  %v1793_v14 = vshll.u32 %v2609_v2, 16  ;;  %v2647_v2 = vld [vmem:[%s3262_s16 + $0x30] sm:$0xe]  ;;  %v3159_v3 = vld [vmem:[%s3777_s1 + $0x220] sm:$0xff]  }
  0x7b   : > { %2998 = vmatpush3.bf16.msra.mxu1 %v3143_v16  ;;  %2975 = vmatprep.subr.bf16.mxu0 %v3144_v27  ;;  %v2611_v16 = vld [vmem:[%s3262_s16 + $0x40] sm:$0xf]  ;;  %v1788_v49 = vsel %vm3305_vm2, %v1783_v42, %v1787_v24  ;;  %v2655_v19 = vrot.slane %v2647_v2, 9  ;;  %v3162_v24 = vld [vmem:[%s3777_s1 + $0x208] sm:$0xff]  }
  0x7c   : > { %2999 = vmatprep.subr.bf16.mxu1 %v3145_v29  ;;  %v1795_v26 = vrot.slane %v1793_v14, 5  ;;  %v1804_v31 = vshrl.u32 %v2611_v16, 16  ;;  %v1807_v32 = vshll.u32 %v2611_v16, 16  ;;  %v2012_v14 = vsel %vm3388_vm5, %v2651_v62, %v2011_v56 }
  0x7d   : > { %v2016_v16 = vsel %vm3388_vm5, %v2652_v63, %v2015_v60 }
  0x7e   : > { %2976 = vmatpush3.bf16.msra.mxu0 %v3144_v27  ;;  %v2613_v27 = vld [vmem:[%s3262_s16 + $0x48] sm:$0xf]  ;;  %v1796_v36 = vor.u32 %v1795_v26, %v1792_v25  ;;  %v1806_v10 = vrot.slane %v1804_v31, 4  ;;  %v1809_v43 = vrot.slane %v1807_v32, 5  ;;  %v2675_v18 = vcombine.low %v2012_v14, %v2016_v16  ;;  %v2645_v25 = vld [vmem:[%s3262_s16 + $0x20] sm:$0xe] }
  0x7f   : > { %3000 = vmatpush3.bf16.msra.mxu1 %v3145_v29  ;;  %2977 = vmatprep.subr.bf16.mxu0 %v3146_v35  ;;  %v1801_v29 = vrot.slane %v1799_v21, 5  ;;  %v1821_v40 = vshll.u32 %v2613_v27, 16  ;;  %v3161_v21 = vld [vmem:[%s3777_s1 + $0x210] sm:$0xff]   ;;  %v2646_v26 = vld [vmem:[%s3262_s16 + $0x28] sm:$0xe]  ;;  %v2653_v34 = vrot.slane %v2645_v25, 9 }
  0x80   : > { %3001 = vmatprep.subr.bf16.mxu1 %v3147_v39  ;;  %v1797_v23 = vrot.slane %v1796_v36, 4  ;;  %v1810_v50 = vor.u32 %v1809_v43, %v1806_v10  ;;  %v2650_v31 = vld [vmem:[%s3262_s16 + $0x48] sm:$0xe]  ;;  %v2654_v32 = vrot.slane %v2646_v26, 9  ;;  %v3163_v36 = vld [vmem:[%s3777_s1 + $0x200] sm:$0xff]  }
  0x81   : > { %v1823_v48 = vrot.slane %v1821_v40, 5 }
  0x82   : > { %2978 = vmatpush3.bf16.msra.mxu0 %v3146_v35  ;;  %v3154_v35 = vld [vmem:[%s3777_s1 + $0x238] sm:$0xff]   ;;  %v1802_v53 = vsel %vm3305_vm2, %v1797_v23, %v1801_v29  ;;  %v1811_v55 = vrot.slane %v1810_v50, 4  ;;  %v2019_v29 = vrot.slane %v3627_v37, 5  ;;  %v2024_v38 = vsel %vm3388_vm5, %v2654_v32, %v2023_v33 }
  0x83   : > { %3002 = vmatpush3.bf16.msra.mxu1 %v3147_v39  ;;  %2979 = vmatprep.subr.bf16.mxu0 %v3148_v54  ;;  %v1818_v39 = vshrl.u32 %v2613_v27, 16  ;;  %v2649_v27 = vld [vmem:[%s3262_s16 + $0x40] sm:$0xe] }
  0x84   : > { %3003 = vmatprep.subr.bf16.mxu1 %v3149_v57  ;;  %v1816_v61 = vsel %vm3305_vm2, %v1811_v55, %v1815_v51  ;;  %v2657_v10 = vrot.slane %v2649_v27, 9  ;;  %v2020_v37 = vsel %vm3388_vm5, %v2653_v34, %v2019_v29 }
  0x85   : > { %v1820_v47 = vrot.slane %v1818_v39, 4  ;;  %v2658_v39 = vrot.slane %v2650_v31, 9  ;;  %v2676_v40 = vcombine.low %v2020_v37, %v2024_v38 }
  0x86   : > { %2980 = vmatpush3.bf16.msra.mxu0 %v3148_v54 }
  0x87   : > { %3004 = vmatpush3.bf16.msra.mxu1 %v3149_v57  ;;  %2981 = vmatprep.subr.bf16.mxu0 %v3150_v7  ;;  %v1824_v54 = vor.u32 %v1823_v48, %v1820_v47  ;;  %v2633_v57 = vcombine.low %v1788_v49, %v1802_v53 }
  0x88   : > { %3005 = vmatprep.subr.bf16.mxu1 %v3151_v17 }
  0x89   : > { %v1825_v58 = vrot.slane %v1824_v54, 4 }
  0x8a   : > { %2982 = vmatpush3.bf16.msra.mxu0 %v3150_v7  ;;  %v2027_v7 = vrot.slane %v3650_v0, 5  ;;  %v2032_v0 = vsel %vm3388_vm5, %v2656_v8, %v2031_v11 }
  0x8b   : > { %3006 = vmatpush3.bf16.msra.mxu1 %v3151_v17  ;;  %3015 = vmatprep.subr.bf16.mxu0 %v3154_v35  ;;  %v1830_v6 = vsel %vm3305_vm2, %v1825_v58, %v1829_v52 }
  0x8c   : > { %3039 = vmatprep.subr.bf16.mxu1 %v3154_v35  ;;  %v2634_v17 = vcombine.low %v1816_v61, %v1830_v6  ;;  %v2028_v41 = vsel %vm3388_vm5, %v2655_v19, %v2027_v7 }
  0x8d   : > { %2984 = vmatmul.mubr.bf16.vlgmr.msra.gmra.mxu0 %v3153_v9  ;;  %v2677_v4 = vcombine.low %v2028_v41, %v2032_v0  ;;  %v2035_v9 = vrot.slane %v3670_v22, 5 }
  0x8e   : > { %3008 = vmatmul.mubr.bf16.vlgmr.msra.gmra.mxu1 %v2632_v45  ;;  %3016 = vmatpush3.bf16.msra.mxu0 %v3154_v35 }
  0x8f   : > { %3047 = vmatpush3.bf16.msra.mxu1 %v3154_v35  ;;  %3017 = vmatprep.subr.bf16.mxu0 %v3155_v46  ;;  %v2039_v35 = vrot.slane %v3674_v30, 5  ;;  %v2036_v22 = vsel %vm3388_vm5, %v2657_v10, %v2035_v9 }
  0x90   : > { %3040 = vmatprep.subr.bf16.mxu1 %v3155_v46  ;;  %2987 = vmatprep.mubr.bf16.mxu0 %v3156_v28 }
  0x91   : > { %3011 = vmatprep.mubr.bf16.mxu1 %v2633_v57  ;;  %v2040_v30 = vsel %vm3388_vm5, %v2658_v39, %v2039_v35 }
  0x92   : > { %3018 = vmatpush3.bf16.msra.mxu0 %v3155_v46  ;;  %v2678_v42 = vcombine.low %v2036_v22, %v2040_v30 }
  0x93   : > { %3048 = vmatpush3.bf16.msra.mxu1 %v3155_v46  ;;  %3019 = vmatprep.subr.bf16.mxu0 %v3158_v13 }
  0x94   : > { %3041 = vmatprep.subr.bf16.mxu1 %v3158_v13 }
  0x95   : > { %2988 = vmatmul.mubr.bf16.gmra.mxu0 %v3157_v12 }
  0x96   : > { %3020 = vmatpush3.bf16.msra.mxu0 %v3158_v13  ;;  %3012 = vmatmul.mubr.bf16.gmra.mxu1 %v2634_v17 }
  0x97   : > { %3049 = vmatpush3.bf16.msra.mxu1 %v3158_v13  ;;  %3021 = vmatprep.subr.bf16.mxu0 %v3159_v3 }
  0x98   : > { %3042 = vmatprep.subr.bf16.mxu1 %v3159_v3  ;;  %3031 = vmatprep.mubr.bf16.mxu0 %v2675_v18 }
  0x99   : > { %3035 = vmatprep.mubr.bf16.mxu1 %v2677_v4 }
  0x9a   : > { %3022 = vmatpush3.bf16.msra.mxu0 %v3159_v3 }
  0x9b   : > { %3050 = vmatpush3.bf16.msra.mxu1 %v3159_v3  ;;  %3023 = vmatprep.subr.bf16.mxu0 %v3160_v20 }
  0x9c   : > { %3043 = vmatprep.subr.bf16.mxu1 %v3160_v20 }
  0x9e   : > { %3024 = vmatpush3.bf16.msra.mxu0 %v3160_v20 }
  0x9f   : > { %3051 = vmatpush3.bf16.msra.mxu1 %v3160_v20  ;;  %3025 = vmatprep.subr.bf16.mxu0 %v3161_v21 }
  0xa0   : > { %3044 = vmatprep.subr.bf16.mxu1 %v3161_v21 }
  0xa2   : > { %3026 = vmatpush3.bf16.msra.mxu0 %v3161_v21 }
  0xa3   : > { %3052 = vmatpush3.bf16.msra.mxu1 %v3161_v21  ;;  %3027 = vmatprep.subr.bf16.mxu0 %v3162_v24 }
  0xa4   : > { %3045 = vmatprep.subr.bf16.mxu1 %v3162_v24 }
  0xa6   : > { %3028 = vmatpush3.bf16.msra.mxu0 %v3162_v24 }
  0xa7   : > { %3053 = vmatpush3.bf16.msra.mxu1 %v3162_v24  ;;  %3029 = vmatprep.subr.bf16.mxu0 %v3163_v36 }
  0xa8   : > { %3046 = vmatprep.subr.bf16.mxu1 %v3163_v36 }
  0xaa   : > { %3030 = vmatpush3.bf16.msra.mxu0 %v3163_v36 }
  0xab   : > { %3054 = vmatpush3.bf16.msra.mxu1 %v3163_v36 }
  0xad   : > { %3032 = vmatmul.mubr.bf16.vlgmr.msra.gmra.mxu0 %v2676_v40 }
  0xae   : > { %3036 = vmatmul.mubr.bf16.vlgmr.msra.gmra.mxu1 %v2678_v42 }
  0xed   : > { %v2841_v43 = vpop.f32.mrf.mxu0 }
  0xee   : > { %v2865_v45 = vpop.f32.mrf.mxu1 }
  0xef   : > { %v488_v44 = vpop.f32.mrf.mxu0  ;;  %v634_v9 = vadd.f32 %v2865_v45, %v2841_v43 }
  0xf0   : > { %v625_v23 = vpop.f32.mrf.mxu1 }
  0xf1   : > { %v2842_v46 = vpop.f32.mrf.mxu0  ;;  %v626_v39 = vadd.f32 %v625_v23, %v488_v44 }
  0xf2   : > { %v2866_v28 = vpop.f32.mrf.mxu1 }
  0xf3   : > { %v491_v47 = vpop.f32.mrf.mxu0  ;;  %v637_v30 = vadd.f32 %v2866_v28, %v2842_v46 }
  0xf4   : > { %v628_v50 = vpop.f32.mrf.mxu1 }
  0xf5   : > { %v2845_v48 = vpop.f32.mrf.mxu0  ;;  %v629_v45 = vadd.f32 %v628_v50, %v491_v47 }
  0xf6   : > { %v2869_v51 = vpop.f32.mrf.mxu1 }
  0xf7   : > { %v504_v49 = vpop.f32.mrf.mxu0  ;;  %v650_v36 = vadd.f32 %v2869_v51, %v2845_v48 }
  0xf8   : > { %v641_v52 = vpop.f32.mrf.mxu1 }
  0xf9   : > { %v2846_v1 = vpop.f32.mrf.mxu0  ;;  %v642_v38 = vadd.f32 %v641_v52, %v504_v49 }
  0xfa   : > { %v2870_v55 = vpop.f32.mrf.mxu1 }
  0xfb   : > { %v507_v53 = vpop.f32.mrf.mxu0 }
  0xfc   : > { %v644_v57 = vpop.f32.mrf.mxu1 }
  0xfd   : > { %v645_v23 = vadd.f32 %v644_v57, %v507_v53 }
 0x10d   : > { %v2889_v54 = vpop.f32.mrf.mxu0 }
 0x10e   : > { %v2913_v58 = vpop.f32.mrf.mxu1  ;;  %v863_v37 = vadd.f32 %v2889_v54, %v634_v9 }
 0x10f   : > { %v830_v56 = vpop.f32.mrf.mxu0 }
 0x110   : > { %v1001_v15 = vpop.f32.mrf.mxu1  ;;  %v861_v40 = vadd.f32 %v830_v56, %v626_v39 }
 0x111   : > { %v2890_v59 = vpop.f32.mrf.mxu0 }
 0x112   : > { %v2914_v61 = vpop.f32.mrf.mxu1  ;;  %v864_v48 = vadd.f32 %v2890_v59, %v637_v30  ;;  %v1032_v54 = vadd.f32 %v1001_v15, %v861_v40 }
 0x113   : > { %v833_v60 = vpop.f32.mrf.mxu0 }
 0x114   : > { %v1004_v63 = vpop.f32.mrf.mxu1  ;;  %v862_v49 = vadd.f32 %v833_v60, %v629_v45  ;;  %v1035_v56 = vadd.f32 %v2914_v61, %v864_v48 }
 0x115   : > { %v2893_v62 = vpop.f32.mrf.mxu0 }
 0x116   : > { %v2917_v5 = vpop.f32.mrf.mxu1  ;;  %v867_v22 = vadd.f32 %v2893_v62, %v650_v36 }
 0x117   : > { %v846_v2 = vpop.f32.mrf.mxu0 }
 0x118   : > { %v1017_v6 = vpop.f32.mrf.mxu1  ;;  %v1038_v44 = vadd.f32 %v2917_v5, %v867_v22 }
 0x119   : > { %v2894_v13 = vpop.f32.mrf.mxu0 }
 0x11a   : > { %v2918_v7 = vpop.f32.mrf.mxu1 }
 0x11b   : > { %v849_v19 = vpop.f32.mrf.mxu0 }
 0x11c   : > { %v1020_v11 = vpop.f32.mrf.mxu1  ;;  %v866_v62 = vadd.f32 %v849_v19, %v645_v23 }
 0x12d   : > { %v2937_v8 = vpop.f32.mrf.mxu0 }
 0x12e   : > { %v2961_v14 = vpop.f32.mrf.mxu1 }
 0x12f   : > { %v1283_v12 = vpop.f32.mrf.mxu0 }
 0x130   : > { %v1493_v17 = vpop.f32.mrf.mxu1  ;;  %v1314_v39 = vadd.f32 %v1283_v12, %v1032_v54 }
 0x131   : > { %v2938_v16 = vpop.f32.mrf.mxu0 }
 0x132   : > { %v2962_v0 = vpop.f32.mrf.mxu1  ;;  %v1317_v50 = vadd.f32 %v2938_v16, %v1035_v56  ;;  %v1524_v5 = vadd.f32 %v1493_v17, %v1314_v39 }
 0x133   : > { %v1286_v41 = vpop.f32.mrf.mxu0 }
 0x134   : > { %v3745_v18 = vpop.f32.mrf.mxu1 }
 0x135   : > { %v2941_v3 = vpop.f32.mrf.mxu0  ;;  %3784 = vst [vmem:[#allocation2_spill] sm:$0xff] %v3745_v18  ;;  %v653_v18 = vadd.f32 %v2870_v55, %v2846_v1 }
 0x136   : > { %v2965_v4 = vpop.f32.mrf.mxu1  ;;  %v1320_v28 = vadd.f32 %v2941_v3, %v1038_v44  ;;  %v1527_v3 = vadd.f32 %v2962_v0, %v1317_v50 }
 0x137   : > { %v1299_v20 = vpop.f32.mrf.mxu0  ;;  %v868_v9 = vadd.f32 %v2894_v13, %v653_v18 }
 0x138   : > { %v1509_v21 = vpop.f32.mrf.mxu1  ;;  %v1530_v59 = vadd.f32 %v2965_v4, %v1320_v28 }
 0x139   : > { %v2942_v24 = vpop.f32.mrf.mxu0  ;;  %v1039_v1 = vadd.f32 %v2918_v7, %v868_v9 }
 0x13a   : > { %v2966_v25 = vpop.f32.mrf.mxu1 }
 0x13b   : > { %v1302_v26 = vpop.f32.mrf.mxu0  ;;  %v1321_v53 = vadd.f32 %v2942_v24, %v1039_v1 }
 0x13c   : > { %v1512_v31 = vpop.f32.mrf.mxu1 }
 0x13d   : > { %v1531_v12 = vadd.f32 %v2966_v25, %v1321_v53 }
 0x14d   : > { %v2985_v27 = vpop.f32.mrf.mxu0 }
 0x14e   : > { %v3009_v34 = vpop.f32.mrf.mxu1 }
 0x14f   : > { %v1664_v29 = vpop.f32.mrf.mxu0 }
 0x150   : > { %v3747_v32 = vpop.f32.mrf.mxu1  ;;  %v1695_v61 = vadd.f32 %v1664_v29, %v1524_v5 }
 0x151   : > { %3785 = vst [vmem:[#allocation3_spill] sm:$0xff] %v3747_v32  ;;  %v2986_v33 = vpop.f32.mrf.mxu0  ;;  %v865_v32 = vadd.f32 %v846_v2, %v642_v38  ;;  %v1033_v2 = vadd.f32 %v1004_v63, %v862_v49 }
 0x152   : > { %v3749_v35 = vpop.f32.mrf.mxu1  ;;  %v1698_v16 = vadd.f32 %v2986_v33, %v1527_v3 }
 0x153   : > { %3786 = vst [vmem:[#allocation4_spill] sm:$0xff] %v3749_v35  ;;  %v1667_v10 = vpop.f32.mrf.mxu0  ;;  %v1034_v35 = vadd.f32 %v2913_v58, %v863_v37  ;;  %v1036_v36 = vadd.f32 %v1017_v6, %v865_v32  ;;  %v1037_v58 = vadd.f32 %v1020_v11, %v866_v62  ;;  %v1315_v15 = vadd.f32 %v1286_v41, %v1033_v2  ;;  %v2687_v41 = vld [vmem:[%s3778_s2] ss:$0 sm:$0xff] }
 0x154   : > { %v3751_v42 = vpop.f32.mrf.mxu1 }
 0x155   : > { %3787 = vst [vmem:[#allocation5_spill] sm:$0xff] %v3751_v42  ;;  %v2989_v43 = vpop.f32.mrf.mxu0  ;;  %v1316_v52 = vadd.f32 %v2937_v8, %v1034_v35  ;;  %v1318_v55 = vadd.f32 %v1299_v20, %v1036_v36  ;;  %v1319_v19 = vadd.f32 %v1302_v26, %v1037_v58  ;;  %v3788_v20 = vld [vmem:[#allocation2_spill] sm:$0xff] }
 0x156   : > { %v3013_v51 = vpop.f32.mrf.mxu1  ;;  %v1701_v8 = vadd.f32 %v2989_v43, %v1530_v59  ;;  %v1525_v63 = vadd.f32 %v3788_v20, %v1315_v15  ;;  %v2688_v43 = vld [vmem:[%s3778_s2 + $0x1] ss:$0 sm:$0xff] }
 0x157   : > { %v1680_v46 = vpop.f32.mrf.mxu0  ;;  %v1526_v47 = vadd.f32 %v2961_v14, %v1316_v52  ;;  %v1528_v6 = vadd.f32 %v1509_v21, %v1318_v55  ;;  %v1529_v4 = vadd.f32 %v1512_v31, %v1319_v19 }
 0x158   : > { %v1962_v42 = vpop.f32.mrf.mxu1  ;;  %v1983_v24 = vadd.f32 %v3013_v51, %v1701_v8  ;;  %v3789_v21 = vld [vmem:[#allocation3_spill] sm:$0xff]  ;;  %v1696_v0 = vadd.f32 %v1667_v10, %v1525_v63 }
 0x159   : > { %v2990_v57 = vpop.f32.mrf.mxu0  ;;  %v1697_v60 = vadd.f32 %v2985_v27, %v1526_v47  ;;  %v1699_v18 = vadd.f32 %v1680_v46, %v1528_v6  ;;  %v1977_v26 = vadd.f32 %v3789_v21, %v1695_v61 }
 0x15a   : > { %v3014_v13 = vpop.f32.mrf.mxu1  ;;  %v1702_v32 = vadd.f32 %v2990_v57, %v1531_v12 }
 0x15b   : > { %v1683_v7 = vpop.f32.mrf.mxu0  ;;  %v1979_v14 = vadd.f32 %v3009_v34, %v1697_v60  ;;  %v1981_v29 = vadd.f32 %v1962_v42, %v1699_v18  ;;  %v3790_v34 = vld [vmem:[#allocation4_spill] sm:$0xff] }
 0x15c   : > { %v1965_v11 = vpop.f32.mrf.mxu1  ;;  %v1700_v35 = vadd.f32 %v1683_v7, %v1529_v4  ;;  %v1980_v33 = vadd.f32 %v3790_v34, %v1698_v16  ;;  %v1984_v40 = vadd.f32 %v3014_v13, %v1702_v32  ;;  %v3791_v10 = vld [vmem:[#allocation5_spill] sm:$0xff] }
 0x15d   : > { %v1978_v23 = vadd.f32 %v3791_v10, %v1696_v0 }
 0x15e   : > { %v1982_v54 = vadd.f32 %v1965_v11, %v1700_v35 }
 0x16d   : > { %v3033_v17 = vpop.f32.mrf.mxu0 }
 0x16e   : > { %v2189_v27 = vadd.f32 %v3033_v17, %v1979_v14  ;;  %v3037_v25 = vpop.f32.mrf.mxu1 }
 0x16f   : > { %v2193_v37 = vadd.f32 %v3037_v25, %v1983_v24  ;;  %v2156_v38 = vpop.f32.mrf.mxu0 }
 0x170   : > { %v2202_v22 = vmul.f32 %v2687_v41, %v2189_v27  ;;  %v2187_v31 = vadd.f32 %v2156_v38, %v1977_v26  ;;  %v2172_v30 = vpop.f32.mrf.mxu1 }
 0x171   : > { %v2206_v45 = vmul.f32 %v2687_v41, %v2193_v37  ;;  %v2191_v48 = vadd.f32 %v2172_v30, %v1981_v29  ;;  %v3034_v51 = vpop.f32.mrf.mxu0 }
 0x172   : > { %v2200_v42 = vmul.f32 %v2687_v41, %v2187_v31  ;;  %v2190_v44 = vadd.f32 %v3034_v51, %v1980_v33  ;;  %v3038_v9 = vpop.f32.mrf.mxu1  ;;  %v2215_v62 = vadd.f32 %v2688_v43, %v2202_v22 }
 0x173   : > { %v2204_v49 = vmul.f32 %v2687_v41, %v2191_v48  ;;  %v2194_v52 = vadd.f32 %v3038_v9, %v1984_v40  ;;  %v2159_v36 = vpop.f32.mrf.mxu0  ;;  %v2219_v39 = vadd.f32 %v2688_v43, %v2206_v45 }
 0x174   : > { %v2203_v28 = vmul.f32 %v2687_v41, %v2190_v44  ;;  %v2188_v46 = vadd.f32 %v2159_v36, %v1978_v23  ;;  %v2175_v56 = vpop.f32.mrf.mxu1  ;;  %v2213_v2 = vadd.f32 %v2688_v43, %v2200_v42  ;;  %v2223_v57 = vmax.f32 %v2215_v62, 0.0 }
 0x175   : > { %v2207_v1 = vmul.f32 %v2687_v41, %v2194_v52  ;;  %v2192_v55 = vadd.f32 %v2175_v56, %v1982_v54  ;;  %v2217_v58 = vadd.f32 %v2688_v43, %v2204_v49  ;;  %v2227_v60 = vmax.f32 %v2219_v39, 0.0 }
 0x176   : > { %v2216_v47 = vadd.f32 %v2688_v43, %v2203_v28  ;;  %v2201_v50 = vmul.f32 %v2687_v41, %v2188_v46  ;;  %v2221_v19 = vmax.f32 %v2213_v2, 0.0 }
 0x177   : > { %v2220_v59 = vadd.f32 %v2688_v43, %v2207_v1  ;;  %v2205_v53 = vmul.f32 %v2687_v41, %v2192_v55  ;;  %v2225_v61 = vmax.f32 %v2217_v58, 0.0 }
 0x178   : > { %v2224_v5 = vmax.f32 %v2216_v47, 0.0  ;;  %v2214_v15 = vadd.f32 %v2688_v43, %v2201_v50 }
 0x179   : > { %v2228_v13 = vmax.f32 %v2220_v59, 0.0  ;;  %v2218_v6 = vadd.f32 %v2688_v43, %v2205_v53 }
 0x17a   : > { %v2700_v8 = vpack.c.bf16 %v2224_v5, %v2223_v57  ;;  %v2222_v3 = vmax.f32 %v2214_v15, 0.0 }
 0x17b   : > { %v2710_v12 = vpack.c.bf16 %v2228_v13, %v2227_v60  ;;  %v2226_v18 = vmax.f32 %v2218_v6, 0.0 }
 0x17c   : > { %2712 = vst [vmem:[%s224_s10 + $0x8] sm:$0xff] %v2700_v8   ;;  %v2695_v7 = vpack.c.bf16 %v2222_v3, %v2221_v19 }
 0x17d   : > { %2714 = vst [vmem:[%s224_s10 + $0x18] sm:$0xff] %v2710_v12   ;;  %v2705_v20 = vpack.c.bf16 %v2226_v18, %v2225_v61 }
 0x17e   : > { %2696 = vst [vmem:[%s224_s10] sm:$0xff] %v2695_v7  }
 0x17f   : > { %2713 = vst [vmem:[%s224_s10 + $0x10] sm:$0xff] %v2705_v20  }
 0x180 PF: > { %s13_s14 = sadd.s32 1, %s3186_s14   ;;  %s3792_s12 = smov %s3182_s13 }
 0x181   : > { %p10_p5 = scmp.ge.s32.totalorder %s13_s14, 4   ;;  %s3793_s13 = smov %s3795_s15 }
 0x183   :  { %12 = sbr.rel (!%p10_p5) target bundleno = 2 (0x2), region = 78 }

// kernel: _lambda_.7
= control target key start
LH: loop header
LB: loop body
LE: loop exit
PB: predicated region body
PF: predicated region fallthrough
CT: control target
= control target key end

     0   :  { %9 = vsyncpa [#allocation3], 0  ;;  %s4039_s0 = inlined_call_operand.vmem [shape: bf16[2,10,10,128], index: 0, kind: input, shape index: {}]   ;;  %s4040_s1 = inlined_call_operand.vmem [shape: bf16[9,128,128], index: 1, kind: input, shape index: {}]   ;;  %s4041_s2 = inlined_call_operand.vmem [shape: f32[2,128], index: 2, kind: input, shape index: {}]   ;;  %s4042_s3 = inlined_call_operand.vmem [shape: f32[2,8,8,128], index: 3, kind: input, shape index: {}]   ;;  %s4043_s4 = inlined_call_operand.hbm [shape: f32[2,8,8,128], index: 4, kind: output, shape index: {}]  }
   0x1   :  { %11 = vsyncpa [#allocation3 + $0x1], 0  ;;  %s3370_s15 = smov 0   ;;  %s3372_s16 = smov 0  }
   0x2   :  { %s3374_s17 = smov 0   ;;  %s3376_s18 = smov 0  }
   0x3   :  { %s3378_s19 = smov 0   ;;  %s3380_s20 = smov 0  }
   0x4 LB: > { %s2438_s21 = sadd.s32 4294967295, %s3340_s20   ;;  %s2439_s22 = sadd.s32 4294967294, %s3340_s20   ;;  %s3340_s20 = sphi %s3380_s20, %s17_s20   ;;  %s3336_s19 = sphi %s3378_s19, %s4062_s19   ;;  %s3332_s18 = sphi %s3376_s18, %s4061_s18   ;;  %s3328_s17 = sphi %s3374_s17, %s4060_s17   ;;  %s3324_s16 = sphi %s3372_s16, %s4059_s16   ;;  %s3320_s15 = sphi %s3370_s15, %s4058_s15  }
   0x5   : > { %s29_s23 = sadd.s32 1, %s3336_s19  ;;  %s144_s24 = sadd.s32 1, %s3328_s17 }
   0x6   : > { %p31_p0 = scmp.ge.s32.totalorder %s29_s23, 2  ;;  %p154_p1 = scmp.ne.s32.totalorder %s3328_s17, %s3324_s16 }
   0x7   : > { %p155_p2 = scmp.eq.s32.totalorder %s2438_s21, 1  ;;  %p160_p3 = scmp.ne.s32.totalorder %s3324_s16, %s3320_s15 }
   0x8   : > { %s4064_s23 = smov (%p31_p0, %s29_s23), 0  ;;  %p161_p5 = scmp.eq.s32.totalorder %s2439_s22, 1 }
   0x9   : > { %p3410_p4 = por %p155_p2, %p154_p1  ;;  %s139_s26 = ssub.s32 %s3336_s19, %s4064_s23 }
   0xa   : > { %p2444_p6 = scmp.ge.s32.totalorder %s3340_s20, 1  ;;  %p142_p7 = scmp.eq.s32.totalorder %s139_s26, 0 }
   0xb   : > { %p3417_p8 = por %p161_p5, %p160_p3  ;;  %p212_p9 = scmp.lt.s32.totalorder %s3340_s20, 3 }
   0xc   : > { %s3423_s28 = scalar_select %p142_p7, %s3328_s17, %s144_s24  }
   0xd   : > { %p213_p10 = pnand %p2444_p6, %p212_p9 }
   0xf   : > { %216 = sbr.rel (%p213_p10) target bundleno = 405 (0x195), region = 36 }
  0x14   : > { %v3180_v0 = vld [vmem:[%s4040_s1 + $0x78] sm:$0xff]   ;;  %p254_p11 = scmp.lt.s32.totalorder %s3332_s18, 1  ;;  %v3182_v2 = vld [vmem:[%s4040_s1 + $0x70] sm:$0xff]   ;;  %v3184_v4 = vld [vmem:[%s4040_s1 + $0x68] sm:$0xff]   ;;  %vm308_vm0 = vsmask.f32 3328 }
  0x15   : > { %v3181_v1 = vld [vmem:[%s4040_s1 + $0x38] sm:$0xff]   ;;  %2890 = vmatprep.subr.bf16.mxu0 %v3180_v0  ;;  %v3183_v3 = vld [vmem:[%s4040_s1 + $0x30] sm:$0xff]   ;;  %v3185_v5 = vld [vmem:[%s4040_s1 + $0x28] sm:$0xff]   ;;  %vm309_vm1 = vsmask.f32 7440  ;;  %vm730_vm3 = vcmask 1042432  }
  0x16   : > { %2914 = vmatprep.subr.bf16.mxu1 %v3181_v1  ;;  %2891 = vmatpush3.bf16.msra.mxu0 %v3180_v0  ;;  %s3445_s21 = scalar_select %p254_p11, %s3332_s18, 1  ;;  %v3186_v6 = vld [vmem:[%s4040_s1 + $0x60] sm:$0xff]   ;;  %v3188_v8 = vld [vmem:[%s4040_s1 + $0x58] sm:$0xff]   ;;  %v3190_v10 = vld [vmem:[%s4040_s1 + $0x50] sm:$0xff]   ;;  %vm731_vm4 = vcmask 1046532  }
  0x17   : > { %2915 = vmatpush3.bf16.msra.mxu1 %v3181_v1  ;;  %2892 = vmatprep.subr.bf16.mxu0 %v3182_v2  ;;  %v3187_v7 = vld [vmem:[%s4040_s1 + $0x20] sm:$0xff]   ;;  %v3189_v9 = vld [vmem:[%s4040_s1 + $0x18] sm:$0xff]   ;;  %v3191_v14 = vld [vmem:[%s4040_s1 + $0x10] sm:$0xff]   ;;  %s251_s14 = sand.u32 1, %s3324_s16   ;;  %s3342_s9 = smov [#allocation2]  }
  0x18   : > { %2916 = vmatprep.subr.bf16.mxu1 %v3183_v3  ;;  %s3122_s30 = smul.u32 80, %s3445_s21  ;;  %v3192_v17 = vld [vmem:[%s4040_s1 + $0x48] sm:$0xff]   ;;  %vm3506_vm2 = vmor %vm308_vm0, %vm309_vm1  ;;  %v3194_v46 = vld [vmem:[%s4040_s1 + $0x40] sm:$0xff]   ;;  %s3974_s26 = sshll.u32 %s251_s14, 6 }
  0x19   : > { %v3193_v23 = vld [vmem:[%s4040_s1 + $0x8] sm:$0xff]   ;;  %v3195_v50 = vld [vmem:[%s4040_s1] sm:$0xff]   ;;  %v3198_v59 = vld [vmem:[%s4040_s1 + $0xb8] sm:$0xff]   ;;  %s253_s29 = scalar_lea.vmem [#allocation2], %s3974_s26  ;;  %s3268_s10 = sshll.u32 %s3342_s9, 4  ;;  %s3269_s10 = int_to_ptr.vmem [resolvable:$false] %s3268_s10 }
  0x1a   : > { %2893 = vmatpush3.bf16.msra.mxu0 %v3182_v2  ;;  %s3463_s11 = scalar_lea.vmem %s4039_s0, %s3122_s30  ;;  %v3199_v62 = vld [vmem:[%s4040_s1 + $0xf8] sm:$0xff]   ;;  %vm3589_vm5 = vmor %vm730_vm3, %vm731_vm4  ;;  %s2781_s30 = sshll.u32 %s3332_s18, 10 }
  0x1b   : > { %2917 = vmatpush3.bf16.msra.mxu1 %v3183_v3  ;;  %2894 = vmatprep.subr.bf16.mxu0 %v3184_v4  ;;  %v276_v11 = vld [vmem:[%s3463_s11] sm:$0xf]  ;;  %v277_v12 = vld [vmem:[%s3463_s11 + $0x8] sm:$0xf]  ;;  %v3471_v13 = vld [vmem:[%s3463_s11 + $0x4] sm:$0x1]  ;;  %s3988_s8 = scalar_lea.hbm %s4043_s4, %s2781_s30 }
  0x1c   : > { %2918 = vmatprep.subr.bf16.mxu1 %v3185_v5  ;;  %v3477_v15 = vld [vmem:[%s3463_s11 + $0xc] sm:$0x1]  ;;  %v2477_v16 = vcombine.low %v276_v11, %v277_v12  ;;  %v312_v18 = vshrl.u32 %v276_v11, 16  ;;  %v315_v19 = vshll.u32 %v276_v11, 16  ;;  %v321_v20 = vshll.u32 %v3471_v13, 16  ;;  %v3200_v3 = vld [vmem:[%s4040_s1 + $0xb0] sm:$0xff]  }
  0x1d   : > { %v326_v21 = vshrl.u32 %v277_v12, 16  ;;  %v3484_v22 = vld [vmem:[%s3463_s11 + $0x10] sm:$0xf]  ;;  %v329_v24 = vshll.u32 %v277_v12, 16  ;;  %v335_v25 = vshll.u32 %v3477_v15, 16  ;;  %v3203_v11 = vld [vmem:[%s4040_s1 + $0xe8] sm:$0xff]  }
  0x1e   : > { %2895 = vmatpush3.bf16.msra.mxu0 %v3184_v4  ;;  %2930 = vmatprep.mubr.bf16.mxu1 %v2477_v16  ;;  %v3491_v26 = vld [vmem:[%s3463_s11 + $0x18] sm:$0xf]  ;;  %v314_v27 = vrot.slane %v312_v18, 4  ;;  %v317_v28 = vrot.slane %v315_v19, 5  ;;  %v323_v29 = vrot.slane %v321_v20, 5  ;;  %v340_v35 = vshrl.u32 %v3484_v22, 16 }
  0x1f   : > { %2919 = vmatpush3.bf16.msra.mxu1 %v3185_v5  ;;  %2896 = vmatprep.subr.bf16.mxu0 %v3186_v6  ;;  %v328_v30 = vrot.slane %v326_v21, 4  ;;  %v3494_v31 = vld [vmem:[%s3463_s11 + $0x14] sm:$0x1]  ;;  %v331_v32 = vrot.slane %v329_v24, 5  ;;  %v337_v33 = vrot.slane %v335_v25, 5  ;;  %v343_v36 = vshll.u32 %v3484_v22, 16 }
  0x20   : > { %2920 = vmatprep.subr.bf16.mxu1 %v3187_v7  ;;  %v3497_v34 = vld [vmem:[%s3463_s11 + $0x1c] sm:$0x1]  ;;  %v318_v37 = vor.u32 %v317_v28, %v314_v27  ;;  %v349_v38 = vshll.u32 %v3494_v31, 16  ;;  %v354_v39 = vshrl.u32 %v3491_v26, 16  ;;  %v357_v40 = vshll.u32 %v3491_v26, 16  ;;  %v3201_v5 = vld [vmem:[%s4040_s1 + $0xf0] sm:$0xff]  }
  0x21   : > { %v332_v42 = vor.u32 %v331_v32, %v328_v30  ;;  %v342_v43 = vrot.slane %v340_v35, 4  ;;  %v345_v44 = vrot.slane %v343_v36, 5  ;;  %v363_v45 = vshll.u32 %v3497_v34, 16  ;;  %v282_v18 = vld [vmem:[%s3463_s11 + $0x30] sm:$0xf]  ;;  %s2318_s5 = sshll.u32 %s253_s29, 4  ;;  %s3990_s5 = int_to_ptr.vmem [resolvable:$true] %s2318_s5 }
  0x22   : > { %2897 = vmatpush3.bf16.msra.mxu0 %v3186_v6  ;;  %v319_v47 = vrot.slane %v318_v37, 4  ;;  %v356_v48 = vrot.slane %v354_v39, 4  ;;  %v359_v49 = vrot.slane %v357_v40, 5  ;;  %v351_v53 = vrot.slane %v349_v38, 5  ;;  %v280_v6 = vld [vmem:[%s3463_s11 + $0x20] sm:$0xf]  ;;  %p3271_p1 = scmp.lt.s32.totalorder %s3990_s5, %s3269_s10 }
  0x23   : > { %2921 = vmatpush3.bf16.msra.mxu1 %v3187_v7  ;;  %2898 = vmatprep.subr.bf16.mxu0 %v3188_v8  ;;  %v333_v51 = vrot.slane %v332_v42, 4  ;;  %v346_v52 = vor.u32 %v345_v44, %v342_v43  ;;  %v365_v56 = vrot.slane %v363_v45, 5  ;;  %v2478_v2 = vcombine.low %v3484_v22, %v3491_v26  ;;  %v3202_v7 = vld [vmem:[%s4040_s1 + $0xa8] sm:$0xff]   ;;  %v283_v22 = vld [vmem:[%s3463_s11 + $0x38] sm:$0xf]  ;;  %v3204_v39 = vld [vmem:[%s4040_s1 + $0xa0] sm:$0xff]  }
  0x24   : > { %2922 = vmatprep.subr.bf16.mxu1 %v3189_v9  ;;  %v324_v54 = vsel %vm3506_vm2, %v319_v47, %v323_v29  ;;  %v360_v55 = vor.u32 %v359_v49, %v356_v48  ;;  %v735_v4 = vrot.slane %v3471_v13, 5  ;;  %v368_v12 = vshrl.u32 %v280_v6, 16  ;;  %v3562_v28 = vld [vmem:[%s3463_s11 + $0x3c] sm:$0x1]  ;;  %v3205_v45 = vld [vmem:[%s4040_s1 + $0xe0] sm:$0xff]   ;;  %s3994_s18 = scalar_lea.sflag [#allocation3], %s251_s14 }
  0x25   : > { %v338_v57 = vsel %vm3506_vm2, %v333_v51, %v337_v33  ;;  %v347_v58 = vrot.slane %v346_v52, 4  ;;  %v396_v32 = vshrl.u32 %v282_v18, 16  ;;  %v399_v33 = vshll.u32 %v282_v18, 16  ;;  %v709_v13 = vld [vmem:[%s3463_s11 + $0x18] sm:$0xe]  ;;  %s3270_s12 = scalar_lea.vmem %s3269_s10, 2048 }
  0x26   : > { %2899 = vmatpush3.bf16.msra.mxu0 %v3188_v8  ;;  %v2465_v60 = vcombine.low %v324_v54, %v338_v57  ;;  %v361_v61 = vrot.slane %v360_v55, 4  ;;  %v281_v8 = vld [vmem:[%s3463_s11 + $0x28] sm:$0xf]  ;;  %v370_v24 = vrot.slane %v368_v12, 4  ;;  %v410_v37 = vshrl.u32 %v283_v22, 16  ;;  %v3206_v57 = vld [vmem:[%s4040_s1 + $0x98] sm:$0xff]  }
  0x27   : > { %2923 = vmatpush3.bf16.msra.mxu1 %v3189_v9  ;;  %2900 = vmatprep.subr.bf16.mxu0 %v3190_v10  ;;  %v352_v63 = vsel %vm3506_vm2, %v347_v58, %v351_v53  ;;  %v3546_v9 = vld [vmem:[%s3463_s11 + $0x24] sm:$0x1]  ;;  %v385_v19 = vshll.u32 %v281_v8, 16  ;;  %v2479_v21 = vcombine.low %v280_v6, %v281_v8  ;;  %v413_v38 = vshll.u32 %v283_v22, 16 }
  0x28   : > { %2924 = vmatprep.subr.bf16.mxu1 %v3191_v14  ;;  %2906 = vmatprep.mubr.bf16.mxu0 %v2465_v60  ;;  %v366_v0 = vsel %vm3506_vm2, %v361_v61, %v365_v56  ;;  %v377_v16 = vshll.u32 %v3546_v9, 16  ;;  %v398_v42 = vrot.slane %v396_v32, 4  ;;  %v401_v43 = vrot.slane %v399_v33, 5 }
  0x29   : > { %v2466_v1 = vcombine.low %v352_v63, %v366_v0  ;;  %v387_v29 = vrot.slane %v385_v19, 5  ;;  %v419_v44 = vshll.u32 %v3562_v28, 16  ;;  %v412_v47 = vrot.slane %v410_v37, 4  ;;  %v706_v63 = vld [vmem:[%s3463_s11] sm:$0xe] }
  0x2a   : > { %2901 = vmatpush3.bf16.msra.mxu0 %v3190_v10  ;;  %v3549_v10 = vld [vmem:[%s3463_s11 + $0x2c] sm:$0x1]  ;;  %v379_v26 = vrot.slane %v377_v16, 5  ;;  %v415_v48 = vrot.slane %v413_v38, 5  ;;  %v2480_v52 = vcombine.low %v282_v18, %v283_v22  ;;  %v739_v53 = vrot.slane %v3477_v15, 5  ;;  %v3207_v15 = vld [vmem:[%s4040_s1 + $0xd8] sm:$0xff]  }
  0x2b   : > { %2925 = vmatpush3.bf16.msra.mxu1 %v3191_v14  ;;  %2902 = vmatprep.subr.bf16.mxu0 %v3192_v17  ;;  %v371_v14 = vshll.u32 %v280_v6, 16  ;;  %v391_v20 = vshll.u32 %v3549_v10, 16  ;;  %v421_v56 = vrot.slane %v419_v44, 5  ;;  %v707_v0 = vld [vmem:[%s3463_s11 + $0x8] sm:$0xe]  ;;  %v743_v19 = vrot.slane %v3494_v31, 5 }
  0x2c   : > { %2926 = vmatprep.subr.bf16.mxu1 %v3193_v23  ;;  %v416_v55 = vor.u32 %v415_v48, %v412_v47  ;;  %v3212_v16 = vld [vmem:[%s4040_s1 + $0x88] sm:$0xff]   ;;  %v708_v18 = vld [vmem:[%s3463_s11 + $0x10] sm:$0xe]  ;;  %v2492_v22 = vrot.slane %v709_v13, 9  ;;  %v3215_v31 = vld [vmem:[%s4040_s1 + $0xc0] sm:$0xff]  }
  0x2d   : > { %v373_v25 = vrot.slane %v371_v14, 5  ;;  %v393_v30 = vrot.slane %v391_v20, 5  ;;  %v747_v20 = vrot.slane %v3497_v34, 5  ;;  %v755_v34 = vrot.slane %v3549_v10, 5  ;;  %v3217_v37 = vld [vmem:[%s3463_s11 + $0x18] ss:$8 sps:$4 sm:$0xff]  }
  0x2e   : > { %2903 = vmatpush3.bf16.msra.mxu0 %v3192_v17  ;;  %v382_v17 = vshrl.u32 %v281_v8, 16  ;;  %v417_v61 = vrot.slane %v416_v55, 4  ;;  %v3216_v8 = vld [vmem:[%s3463_s11 + $0x8] ss:$8 sps:$4 sm:$0xff]   ;;  %v3219_v10 = vld [vmem:[%s4040_s1 + $0x178] sm:$0xff]  }
  0x2f   : > { %2927 = vmatpush3.bf16.msra.mxu1 %v3193_v23  ;;  %2904 = vmatprep.subr.bf16.mxu0 %v3194_v46  ;;  %v3559_v23 = vld [vmem:[%s3463_s11 + $0x34] sm:$0x1]  ;;  %v374_v35 = vor.u32 %v373_v25, %v370_v24  ;;  %v710_v24 = vld [vmem:[%s3463_s11 + $0x20] sm:$0xe]  ;;  %v711_v25 = vld [vmem:[%s3463_s11 + $0x28] sm:$0xe] }
  0x30   : > { %2928 = vmatprep.subr.bf16.mxu1 %v3195_v50  ;;  %v384_v27 = vrot.slane %v382_v17, 4  ;;  %v405_v36 = vshll.u32 %v3559_v23, 16  ;;  %v2494_v32 = vrot.slane %v711_v25, 9  ;;  %v759_v38 = vrot.slane %v3559_v23, 5  ;;  %v3221_v23 = vld [vmem:[%s4040_s1 + $0x170] sm:$0xff]  }
  0x31   : > { %v3224_v48 = vld [vmem:[%s3463_s11 + $0x28] ss:$8 sps:$4 sm:$0xff]   ;;  %v2568_v25 = vld [vmem:[%s3463_s11 + $0x24] sm:$0x1] }
  0x32   : > { %2905 = vmatpush3.bf16.msra.mxu0 %v3194_v46  ;;  %v388_v40 = vor.u32 %v387_v29, %v384_v27  ;;  %v375_v46 = vrot.slane %v374_v35, 4  ;;  %v407_v51 = vrot.slane %v405_v36, 5  ;;  %v751_v27 = vrot.slane %v3546_v9, 5  ;;  %v3218_v29 = vld [vmem:[%s4040_s1 + $0x138] sm:$0xff]   ;;  %v712_v35 = vld [vmem:[%s3463_s11 + $0x30] sm:$0xe] }
  0x33   : > { %2929 = vmatpush3.bf16.msra.mxu1 %v3195_v50  ;;  %2938 = vmatprep.subr.bf16.mxu0 %v3198_v59  ;;  %v402_v50 = vor.u32 %v401_v43, %v398_v42  ;;  %v748_v9 = vsel %vm3589_vm5, %v2492_v22, %v747_v20  ;;  %v713_v36 = vld [vmem:[%s3463_s11 + $0x38] sm:$0xe]  ;;  %v756_v42 = vsel %vm3589_vm5, %v2494_v32, %v755_v34  ;;  %v763_v43 = vrot.slane %v3562_v28, 5  ;;  %v2561_v55 = vld [vmem:[%s3463_s11 + $0x8] sm:$0xf] }
  0x34   : > { %2962 = vmatprep.subr.bf16.mxu1 %v3199_v62  ;;  %v389_v49 = vrot.slane %v388_v40, 4  ;;  %v380_v54 = vsel %vm3506_vm2, %v375_v46, %v379_v26  ;;  %v3214_v26 = vld [vmem:[%s4040_s1 + $0x80] sm:$0xff]   ;;  %v2495_v44 = vrot.slane %v712_v35, 9  ;;  %v3220_v46 = vld [vmem:[%s4040_s1 + $0x130] sm:$0xff]   ;;  %v2566_v20 = vld [vmem:[%s3463_s11 + $0x1c] sm:$0x1] }
  0x35   : > { %2907 = vmatmul.mubr.bf16.vlgmr.msra.gmra.mxu0 %v2466_v1  ;;  %v3228_v22 = vld [vmem:[%s4040_s1 + $0x118] sm:$0xff]   ;;  %v3230_v35 = vld [vmem:[%s4040_s1 + $0x110] sm:$0xff]  }
  0x36   : > { %2931 = vmatmul.mubr.bf16.vlgmr.msra.gmra.mxu1 %v2478_v2  ;;  %2939 = vmatpush3.bf16.msra.mxu0 %v3198_v59  ;;  %v394_v58 = vsel %vm3506_vm2, %v389_v49, %v393_v30  ;;  %v403_v59 = vrot.slane %v402_v50, 4  ;;  %v422_v2 = vsel %vm3506_vm2, %v417_v61, %v421_v56  ;;  %v2493_v30 = vrot.slane %v710_v24, 9  ;;  %v3222_v50 = vld [vmem:[%s4040_s1 + $0x128] sm:$0xff]   ;;  %v3229_v34 = vld [vmem:[%s4040_s1 + $0x158] sm:$0xff]  }
  0x37   : > { %2963 = vmatpush3.bf16.msra.mxu1 %v3199_v62  ;;  %2940 = vmatprep.subr.bf16.mxu0 %v3200_v3  ;;  %v2467_v60 = vcombine.low %v380_v54, %v394_v58  ;;  %v760_v28 = vsel %vm3589_vm5, %v2495_v44, %v759_v38  ;;  %v3226_v54 = vld [vmem:[%s4040_s1 + $0x120] sm:$0xff]   ;;  %v2562_v56 = vld [vmem:[%s3463_s11 + $0xc] sm:$0x1]  ;;  %v2563_v58 = vld [vmem:[%s3463_s11 + $0x10] sm:$0xf] }
  0x38   : > { %2964 = vmatprep.subr.bf16.mxu1 %v3201_v5  ;;  %2934 = vmatprep.mubr.bf16.mxu1 %v2479_v21  ;;  %v408_v62 = vsel %vm3506_vm2, %v403_v59, %v407_v51  ;;  %v2491_v21 = vrot.slane %v708_v18, 9  ;;  %v752_v40 = vsel %vm3589_vm5, %v2493_v30, %v751_v27  ;;  %v3223_v51 = vld [vmem:[%s4040_s1 + $0x168] sm:$0xff]   ;;  %v2564_v59 = vld [vmem:[%s3463_s11 + $0x14] sm:$0x1]  ;;  %v1116_v61 = vshll.u32 %v2562_v56, 16 }
  0x39   : > { %2910 = vmatprep.mubr.bf16.mxu0 %v2467_v60  ;;  %v2468_v6 = vcombine.low %v408_v62, %v422_v2  ;;  %v2515_v47 = vcombine.low %v752_v40, %v756_v42  ;;  %v1110_v60 = vshll.u32 %v2561_v55, 16  ;;  %v1121_v62 = vshrl.u32 %v2563_v58, 16  ;;  %v2605_v2 = vld [vmem:[%s3463_s11 + $0x8] sm:$0xe]  ;;  %v3231_v40 = vld [vmem:[%s4040_s1 + $0x150] sm:$0xff]  }
  0x3a   : > { %2941 = vmatpush3.bf16.msra.mxu0 %v3200_v3  ;;  %v2489_v3 = vrot.slane %v706_v63, 9  ;;  %v744_v33 = vsel %vm3589_vm5, %v2491_v21, %v743_v19  ;;  %v1124_v63 = vshll.u32 %v2563_v58, 16  ;;  %v1402_v19 = vrot.slane %v2564_v59, 5  ;;  %v2567_v21 = vld [vmem:[%s3463_s11 + $0x20] sm:$0xf] }
  0x3b   : > { %2965 = vmatpush3.bf16.msra.mxu1 %v3201_v5  ;;  %2942 = vmatprep.subr.bf16.mxu0 %v3202_v7  ;;  %v2490_v5 = vrot.slane %v707_v0, 9  ;;  %v1130_v0 = vshll.u32 %v2564_v59, 16  ;;  %v1149_v32 = vshrl.u32 %v2567_v21, 16  ;;  %v2569_v59 = vld [vmem:[%s3463_s11 + $0x28] sm:$0xf] }
  0x3c   : > { %2966 = vmatprep.subr.bf16.mxu1 %v3203_v11  ;;  %v736_v12 = vsel %vm3589_vm5, %v2489_v3, %v735_v4  ;;  %v3213_v4 = vld [vmem:[%s4040_s1 + $0xc8] sm:$0xff]  }
  0x3d   : > { %v740_v14 = vsel %vm3589_vm5, %v2490_v5, %v739_v53  ;;  %2911 = vmatmul.mubr.bf16.gmra.mxu0 %v2468_v6  ;;  %v1112_v5 = vrot.slane %v1110_v60, 5  ;;  %v2606_v6 = vld [vmem:[%s3463_s11 + $0x10] sm:$0xe]  ;;  %v1151_v44 = vrot.slane %v1149_v32, 4 }
  0x3e   : > { %2943 = vmatpush3.bf16.msra.mxu0 %v3202_v7  ;;  %2935 = vmatmul.mubr.bf16.gmra.mxu1 %v2480_v52  ;;  %v3210_v7 = vld [vmem:[%s4040_s1 + $0x90] sm:$0xff]   ;;  %v2513_v17 = vcombine.low %v736_v12, %v740_v14  ;;  %v3225_v52 = vld [vmem:[%s3463_s11 + $0x38] ss:$8 sps:$4 sm:$0xff]   ;;  %v1123_v12 = vrot.slane %v1121_v62, 4  ;;  %v1126_v14 = vrot.slane %v1124_v63, 5 }
  0x3f   : > { %2967 = vmatpush3.bf16.msra.mxu1 %v3203_v11  ;;  %2944 = vmatprep.subr.bf16.mxu0 %v3204_v39  ;;  %v3211_v11 = vld [vmem:[%s4040_s1 + $0xd0] sm:$0xff]  }
  0x40   : > { %2968 = vmatprep.subr.bf16.mxu1 %v3205_v45  ;;  %2978 = vmatprep.mubr.bf16.mxu1 %v3216_v8  ;;  %v1398_v8 = vrot.slane %v2562_v56, 5  ;;  %v1127_v24 = vor.u32 %v1126_v14, %v1123_v12  ;;  %v3233_v56 = vld [vmem:[%s4040_s1 + $0x148] sm:$0xff]   ;;  %v2571_v60 = vld [vmem:[%s3463_s11 + $0x30] sm:$0xf]  ;;  %v3733_v63 = vld [vmem:[%s3463_s11 + $0x34] sm:$0x1] }
  0x41   : > { %2954 = vmatprep.mubr.bf16.mxu0 %v2513_v17  ;;  %v2565_v17 = vld [vmem:[%s3463_s11 + $0x18] sm:$0xf]  ;;  %v3744_v12 = vld [vmem:[%s3463_s11 + $0x3c] sm:$0x1] }
  0x42   : > { %2945 = vmatpush3.bf16.msra.mxu0 %v3204_v39  ;;  %v2514_v39 = vcombine.low %v744_v33, %v748_v9  ;;  %v1138_v27 = vshll.u32 %v2565_v17, 16  ;;  %v1152_v33 = vshll.u32 %v2567_v21, 16  ;;  %v2607_v9 = vld [vmem:[%s3463_s11 + $0x18] sm:$0xe]  ;;  %v3749_v21 = vld [vmem:[%s3463_s11 + $0x44] sm:$0x1] }
  0x43   : > { %2969 = vmatpush3.bf16.msra.mxu1 %v3205_v45  ;;  %2946 = vmatprep.subr.bf16.mxu0 %v3206_v57  ;;  %v2496_v45 = vrot.slane %v713_v36, 9  ;;  %v1128_v36 = vrot.slane %v1127_v24, 4  ;;  %v3235_v24 = vld [vmem:[%s4040_s1 + $0x140] sm:$0xff]  }
  0x44   : > { %2970 = vmatprep.subr.bf16.mxu1 %v3207_v15  ;;  %v1140_v38 = vrot.slane %v1138_v27, 5 }
  0x45   : > { %v764_v49 = vsel %vm3589_vm5, %v2496_v45, %v763_v43  ;;  %v1154_v45 = vrot.slane %v1152_v33, 5 }
  0x46   : > { %2947 = vmatpush3.bf16.msra.mxu0 %v3206_v57  ;;  %v2516_v53 = vcombine.low %v760_v28, %v764_v49  ;;  %v3227_v57 = vld [vmem:[%s4040_s1 + $0x160] sm:$0xff]  }
  0x47   : > { %2971 = vmatpush3.bf16.msra.mxu1 %v3207_v15  ;;  %2948 = vmatprep.subr.bf16.mxu0 %v3210_v7  ;;  %v1107_v15 = vshrl.u32 %v2561_v55, 16  ;;  %v1155_v49 = vor.u32 %v1154_v45, %v1151_v44  ;;  %v1410_v55 = vrot.slane %v2568_v25, 5 }
  0x48   : > { %2972 = vmatprep.subr.bf16.mxu1 %v3211_v11 }
  0x49   : > { %v1109_v3 = vrot.slane %v1107_v15, 4  ;;  %v3721_v15 = vld [vmem:[%s3463_s11 + $0x2c] sm:$0x1] }
  0x4a   : > { %2949 = vmatpush3.bf16.msra.mxu0 %v3210_v7  ;;  %v2613_v7 = vrot.slane %v2605_v2, 9  ;;  %v1166_v2 = vshll.u32 %v2569_v59, 16 }
  0x4b   : > { %2973 = vmatpush3.bf16.msra.mxu1 %v3211_v11  ;;  %2950 = vmatprep.subr.bf16.mxu0 %v3212_v16  ;;  %v1118_v11 = vrot.slane %v1116_v61, 5  ;;  %v1113_v18 = vor.u32 %v1112_v5, %v1109_v3  ;;  %v2573_v3 = vld [vmem:[%s3463_s11 + $0x38] sm:$0xf]  ;;  %v3234_v5 = vld [vmem:[%s4040_s1 + $0x100] sm:$0xff]  }
  0x4c   : > { %2974 = vmatprep.subr.bf16.mxu1 %v3213_v4  ;;  %v1399_v13 = vsel %vm3589_vm5, %v2613_v7, %v1398_v8  ;;  %v1172_v7 = vshll.u32 %v3721_v15, 16  ;;  %v1177_v8 = vshrl.u32 %v2571_v60, 16 }
  0x4e   : > { %2951 = vmatpush3.bf16.msra.mxu0 %v3212_v16  ;;  %v1132_v16 = vrot.slane %v1130_v0, 5  ;;  %v1163_v0 = vshrl.u32 %v2569_v59, 16 }
  0x4f   : > { %2975 = vmatpush3.bf16.msra.mxu1 %v3213_v4  ;;  %2952 = vmatprep.subr.bf16.mxu0 %v3214_v26  ;;  %v2614_v4 = vrot.slane %v2606_v6, 9 }
  0x50   : > { %2976 = vmatprep.subr.bf16.mxu1 %v3215_v31  ;;  %v1165_v14 = vrot.slane %v1163_v0, 4  ;;  %v3240_v0 = vld [vmem:[%s4040_s1 + $0x1a8] sm:$0xff]  }
  0x51   : > { %v1403_v30 = vsel %vm3589_vm5, %v2614_v4, %v1402_v19  ;;  %v1174_v4 = vrot.slane %v1172_v7, 5  ;;  %v1179_v19 = vrot.slane %v1177_v8, 4  ;;  %v3241_v8 = vld [vmem:[%s4040_s1 + $0x1e8] sm:$0xff]  }
  0x52   : > { %2953 = vmatpush3.bf16.msra.mxu0 %v3214_v26  ;;  %v1135_v26 = vshrl.u32 %v2565_v17, 16  ;;  %v1186_v17 = vshll.u32 %v3733_v63, 16 }
  0x53   : > { %2977 = vmatpush3.bf16.msra.mxu1 %v3215_v31  ;;  %2986 = vmatprep.subr.bf16.mxu0 %v3218_v29  ;;  %v1144_v31 = vshll.u32 %v2566_v20, 16 }
  0x54   : > { %3010 = vmatprep.subr.bf16.mxu1 %v3219_v10 }
  0x55   : > { %2955 = vmatmul.mubr.bf16.vlgmr.msra.gmra.mxu0 %v2514_v39  ;;  %v2608_v39 = vld [vmem:[%s3463_s11 + $0x20] sm:$0xe]  ;;  %v3701_v43 = vrot.slane %v1144_v31, 5  ;;  %v1200_v31 = vshll.u32 %v3744_v12, 16 }
  0x56   : > { %2979 = vmatmul.mubr.bf16.vlgmr.msra.gmra.mxu1 %v3217_v37  ;;  %2987 = vmatpush3.bf16.msra.mxu0 %v3218_v29  ;;  %v1114_v29 = vrot.slane %v1113_v18, 4  ;;  %v2637_v37 = vcombine.low %v1399_v13, %v1403_v30  ;;  %v2575_v18 = vld [vmem:[%s3463_s11 + $0x40] sm:$0xf]  ;;  %v1191_v13 = vshrl.u32 %v2573_v3, 16 }
  0x57   : > { %3011 = vmatpush3.bf16.msra.mxu1 %v3219_v10  ;;  %2988 = vmatprep.subr.bf16.mxu0 %v3220_v46  ;;  %v1137_v10 = vrot.slane %v1135_v26, 4  ;;  %v1188_v26 = vrot.slane %v1186_v17, 5  ;;  %v1205_v30 = vshrl.u32 %v2575_v18, 16  ;;  %v1208_v32 = vshll.u32 %v2575_v18, 16  ;;  %v3252_v17 = vld [vmem:[%s3463_s11 + $0x10] ss:$8 sps:$4 sm:$0xff]  }
  0x58   : > { %3012 = vmatprep.subr.bf16.mxu1 %v3221_v23  ;;  %2958 = vmatprep.mubr.bf16.mxu0 %v2515_v47  ;;  %v1119_v42 = vsel %vm3506_vm2, %v1114_v29, %v1118_v11  ;;  %v1158_v47 = vshll.u32 %v2568_v25, 16  ;;  %v1180_v11 = vshll.u32 %v2571_v60, 16  ;;  %v1193_v27 = vrot.slane %v1191_v13, 4  ;;  %v3239_v60 = vld [vmem:[%s4040_s1 + $0x1f0] sm:$0xff]  }
  0x59   : > { %2982 = vmatprep.mubr.bf16.mxu1 %v3224_v48  ;;  %v2615_v48 = vrot.slane %v2607_v9, 9  ;;  %v3236_v9 = vld [vmem:[%s4040_s1 + $0x1b8] sm:$0xff]   ;;  %v1202_v45 = vrot.slane %v1200_v31, 5  ;;  %v2685_v18 = vld [vmem:[%s3463_s11 + $0x10] sm:$0xf] }
  0x5a   : > { %2989 = vmatpush3.bf16.msra.mxu0 %v3220_v46  ;;  %v1133_v46 = vsel %vm3506_vm2, %v1128_v36, %v1132_v16  ;;  %v1168_v16 = vrot.slane %v1166_v2, 5  ;;  %v1214_v36 = vshll.u32 %v3749_v21, 16  ;;  %v3809_v13 = vld [vmem:[%s3463_s11 + $0x14] sm:$0x1] }
  0x5b   : > { %3013 = vmatpush3.bf16.msra.mxu1 %v3221_v23  ;;  %2990 = vmatprep.subr.bf16.mxu0 %v3222_v50  ;;  %v1141_v23 = vor.u32 %v1140_v38, %v1137_v10  ;;  %v2593_v28 = vcombine.low %v1119_v42, %v1133_v46  ;;  %v3237_v10 = vld [vmem:[%s4040_s1 + $0x1f8] sm:$0xff]   ;;  %v1210_v42 = vrot.slane %v1208_v32, 5  ;;  %v2609_v46 = vld [vmem:[%s3463_s11 + $0x28] sm:$0xe] }
  0x5c   : > { %3014 = vmatprep.subr.bf16.mxu1 %v3223_v51  ;;  %v1169_v25 = vor.u32 %v1168_v16, %v1165_v14  ;;  %v3242_v14 = vld [vmem:[%s4040_s1 + $0x1a0] sm:$0xff]  }
  0x5d   : > { %2959 = vmatmul.mubr.bf16.gmra.mxu0 %v2516_v53  ;;  %v3708_v53 = vrot.slane %v1141_v23, 4  ;;  %v2610_v23 = vld [vmem:[%s3463_s11 + $0x30] sm:$0xe]  ;;  %v3243_v16 = vld [vmem:[%s4040_s1 + $0x1e0] sm:$0xff]  }
  0x5e   : > { %2991 = vmatpush3.bf16.msra.mxu0 %v3222_v50  ;;  %2983 = vmatmul.mubr.bf16.gmra.mxu1 %v3225_v52  ;;  %v1406_v50 = vrot.slane %v2566_v20, 5  ;;  %v3232_v52 = vld [vmem:[%s4040_s1 + $0x108] sm:$0xff]   ;;  %v1182_v20 = vrot.slane %v1180_v11, 5 }
  0x5f   : > { %3015 = vmatpush3.bf16.msra.mxu1 %v3223_v51  ;;  %2992 = vmatprep.subr.bf16.mxu0 %v3226_v54  ;;  %v2616_v51 = vrot.slane %v2608_v39, 9  ;;  %v1147_v61 = vsel %vm3506_vm2, %v3708_v53, %v3701_v43  ;;  %v2612_v53 = vld [vmem:[%s3463_s11 + $0x40] sm:$0xe] }
  0x60   : > { %3016 = vmatprep.subr.bf16.mxu1 %v3227_v57  ;;  %3026 = vmatprep.mubr.bf16.mxu1 %v2637_v37  ;;  %v3717_v58 = vsel %vm3589_vm5, %v2615_v48, %v1406_v50  ;;  %v1414_v37 = vrot.slane %v3721_v15, 5  ;;  %v3238_v48 = vld [vmem:[%s4040_s1 + $0x1b0] sm:$0xff]   ;;  %v1216_v50 = vrot.slane %v1214_v36, 5  ;;  %v2620_v15 = vrot.slane %v2612_v53, 9 }
  0x61   : > { %3002 = vmatprep.mubr.bf16.mxu0 %v2593_v28  ;;  %v3730_v62 = vsel %vm3589_vm5, %v2616_v51, %v1410_v55  ;;  %v2617_v51 = vrot.slane %v2609_v46, 9  ;;  %v2618_v55 = vrot.slane %v2610_v23, 9 }
  0x62   : > { %2993 = vmatpush3.bf16.msra.mxu0 %v3226_v54  ;;  %v3710_v54 = vrot.slane %v1158_v47, 5  ;;  %v2638_v33 = vcombine.low %v3717_v58, %v3730_v62  ;;  %v1418_v47 = vrot.slane %v3733_v63, 5  ;;  %v1426_v63 = vrot.slane %v3749_v21, 5 }
  0x63   : > { %3017 = vmatpush3.bf16.msra.mxu1 %v3227_v57  ;;  %2994 = vmatprep.subr.bf16.mxu0 %v3228_v22  ;;  %v1156_v57 = vrot.slane %v1155_v49, 4  ;;  %v1415_v59 = vsel %vm3589_vm5, %v2617_v51, %v1414_v37  ;;  %v1773_v21 = vshll.u32 %v2685_v18, 16  ;;  %v3828_v37 = vld [vmem:[%s3463_s11 + $0x24] sm:$0x1] }
  0x64   : > { %3018 = vmatprep.subr.bf16.mxu1 %v3229_v34  ;;  %v1419_v62 = vsel %vm3589_vm5, %v2618_v55, %v1418_v47  ;;  %v1427_v7 = vsel %vm3589_vm5, %v2620_v15, %v1426_v63  ;;  %v1807_v46 = vshll.u32 %v3828_v37, 16  ;;  %v2693_v63 = vld [vmem:[%s3463_s11 + $0x30] sm:$0xf] }
  0x65   : > { %v1161_v6 = vsel %vm3506_vm2, %v1156_v57, %v3710_v54  ;;  %v1422_v57 = vrot.slane %v3744_v12, 5  ;;  %v2639_v2 = vcombine.low %v1415_v59, %v1419_v62 }
  0x66   : > { %2995 = vmatpush3.bf16.msra.mxu0 %v3228_v22  ;;  %v1194_v22 = vshll.u32 %v2573_v3, 16  ;;  %v2594_v43 = vcombine.low %v1147_v61, %v1161_v6  ;;  %v1809_v59 = vrot.slane %v1807_v46, 5  ;;  %v3255_v46 = vld [vmem:[%s4040_s1 + $0x230] sm:$0xff]  }
  0x67   : > { %3019 = vmatpush3.bf16.msra.mxu1 %v3229_v34  ;;  %2996 = vmatprep.subr.bf16.mxu0 %v3230_v35  ;;  %v1183_v34 = vor.u32 %v1182_v20, %v1179_v19  ;;  %v3813_v19 = vld [vmem:[%s3463_s11 + $0x1c] sm:$0x1]  ;;  %v1770_v20 = vshrl.u32 %v2685_v18, 16 }
  0x68   : > { %3020 = vmatprep.subr.bf16.mxu1 %v3231_v40  ;;  %v1196_v29 = vrot.slane %v1194_v22, 5  ;;  %v1779_v22 = vshll.u32 %v3809_v13, 16 }
  0x69   : > { %v1184_v38 = vrot.slane %v1183_v34, 4  ;;  %v1772_v31 = vrot.slane %v1770_v20, 4  ;;  %v1775_v34 = vrot.slane %v1773_v21, 5 }
  0x6a   : > { %2997 = vmatpush3.bf16.msra.mxu0 %v3230_v35  ;;  %v1170_v35 = vrot.slane %v1169_v25, 4  ;;  %v1197_v39 = vor.u32 %v1196_v29, %v1193_v27  ;;  %v3244_v27 = vld [vmem:[%s4040_s1 + $0x198] sm:$0xff]  }
  0x6b   : > { %3021 = vmatpush3.bf16.msra.mxu1 %v3231_v40  ;;  %2998 = vmatprep.subr.bf16.mxu0 %v3232_v52  ;;  %v1207_v40 = vrot.slane %v1205_v30, 4  ;;  %v1189_v28 = vsel %vm3506_vm2, %v1184_v38, %v1188_v26  ;;  %v1793_v26 = vshll.u32 %v3813_v19, 16  ;;  %v3245_v29 = vld [vmem:[%s4040_s1 + $0x1d8] sm:$0xff]   ;;  %v1781_v30 = vrot.slane %v1779_v22, 5  ;;  %v3832_v38 = vld [vmem:[%s3463_s11 + $0x2c] sm:$0x1] }
  0x6c   : > { %3022 = vmatprep.subr.bf16.mxu1 %v3233_v56  ;;  %v1175_v44 = vsel %vm3506_vm2, %v1170_v35, %v1174_v4  ;;  %v1198_v54 = vrot.slane %v1197_v39, 4  ;;  %v2687_v4 = vld [vmem:[%s3463_s11 + $0x18] sm:$0xf]  ;;  %v3246_v35 = vld [vmem:[%s4040_s1 + $0x190] sm:$0xff]   ;;  %v1776_v36 = vor.u32 %v1775_v34, %v1772_v31  ;;  %v3871_v22 = vld [vmem:[%s3463_s11 + $0x44] sm:$0x1] }
  0x6d   : > { %v1211_v49 = vor.u32 %v1210_v42, %v1207_v40  ;;  %v2595_v61 = vcombine.low %v1175_v44, %v1189_v28  ;;  %v1787_v25 = vshll.u32 %v2687_v4, 16  ;;  %v3247_v39 = vld [vmem:[%s4040_s1 + $0x1d0] sm:$0xff]   ;;  %v1795_v42 = vrot.slane %v1793_v26, 5 }
  0x6e   : > { %2999 = vmatpush3.bf16.msra.mxu0 %v3232_v52  ;;  %v2611_v52 = vld [vmem:[%s3463_s11 + $0x38] sm:$0xe]  ;;  %v1203_v3 = vsel %vm3506_vm2, %v1198_v54, %v1202_v45  ;;  %v1777_v45 = vrot.slane %v1776_v36, 4  ;;  %v3248_v54 = vld [vmem:[%s4040_s1 + $0x188] sm:$0xff]  }
  0x6f   : > { %3023 = vmatpush3.bf16.msra.mxu1 %v3233_v56  ;;  %3000 = vmatprep.subr.bf16.mxu0 %v3234_v5  ;;  %v2619_v56 = vrot.slane %v2611_v52, 9  ;;  %v1212_v58 = vrot.slane %v1211_v49, 4 }
  0x70   : > { %3024 = vmatprep.subr.bf16.mxu1 %v3235_v24  ;;  %v1782_v51 = vsel %vm3506_vm2, %v1777_v45, %v1781_v30  ;;  %v3875_v30 = vld [vmem:[%s3463_s11 + $0x4c] sm:$0x1] }
  0x71   : > { %v1423_v6 = vsel %vm3589_vm5, %v2619_v56, %v1422_v57  ;;  %v3249_v57 = vld [vmem:[%s4040_s1 + $0x1c8] sm:$0xff]  }
  0x72   : > { %3001 = vmatpush3.bf16.msra.mxu0 %v3234_v5  ;;  %v1217_v5 = vsel %vm3506_vm2, %v1212_v58, %v1216_v50  ;;  %v2640_v12 = vcombine.low %v1423_v6, %v1427_v7  ;;  %v1821_v50 = vshll.u32 %v3832_v38, 16  ;;  %v1829_v6 = vshll.u32 %v2693_v63, 16  ;;  %v3250_v7 = vld [vmem:[%s4040_s1 + $0x180] sm:$0xff]  }
  0x73   : > { %3025 = vmatpush3.bf16.msra.mxu1 %v3235_v24  ;;  %3034 = vmatprep.subr.bf16.mxu0 %v3236_v9  ;;  %v2596_v11 = vcombine.low %v1203_v3, %v1217_v5  ;;  %v1784_v24 = vshrl.u32 %v2687_v4, 16  ;;  %v3855_v3 = vld [vmem:[%s3463_s11 + $0x3c] sm:$0x1]  ;;  %v1826_v5 = vshrl.u32 %v2693_v63, 16 }
  0x74   : > { %3058 = vmatprep.subr.bf16.mxu1 %v3237_v10  ;;  %v1831_v20 = vrot.slane %v1829_v6, 5  ;;  %v1849_v21 = vshll.u32 %v3855_v3, 16 }
  0x75   : > { %3003 = vmatmul.mubr.bf16.vlgmr.msra.gmra.mxu0 %v2594_v43  ;;  %v1786_v32 = vrot.slane %v1784_v24, 4  ;;  %v1828_v4 = vrot.slane %v1826_v5, 4  ;;  %v2734_v5 = vld [vmem:[%s3463_s11 + $0x38] sm:$0xe] }
  0x76   : > { %3027 = vmatmul.mubr.bf16.vlgmr.msra.gmra.mxu1 %v2638_v33  ;;  %3035 = vmatpush3.bf16.msra.mxu0 %v3236_v9  ;;  %v1789_v33 = vrot.slane %v1787_v25, 5  ;;  %v2689_v9 = vld [vmem:[%s3463_s11 + $0x20] sm:$0xf] }
  0x77   : > { %3059 = vmatpush3.bf16.msra.mxu1 %v3237_v10  ;;  %3036 = vmatprep.subr.bf16.mxu0 %v3238_v48  ;;  %v2691_v10 = vld [vmem:[%s3463_s11 + $0x28] sm:$0xf]  ;;  %v1798_v43 = vshrl.u32 %v2689_v9, 16  ;;  %v1801_v44 = vshll.u32 %v2689_v9, 16  ;;  %v1832_v34 = vor.u32 %v1831_v20, %v1828_v4  ;;  %v3260_v20 = vld [vmem:[%s4040_s1 + $0x218] sm:$0xff]  }
  0x78   : > { %3060 = vmatprep.subr.bf16.mxu1 %v3239_v60  ;;  %3006 = vmatprep.mubr.bf16.mxu0 %v2595_v61  ;;  %v1790_v40 = vor.u32 %v1789_v33, %v1786_v32  ;;  %v1812_v23 = vshrl.u32 %v2691_v10, 16  ;;  %v1815_v47 = vshll.u32 %v2691_v10, 16  ;;  %v1823_v61 = vrot.slane %v1821_v50, 5  ;;  %v3253_v9 = vld [vmem:[%s3463_s11 + $0x20] ss:$8 sps:$4 sm:$0xff]  }
  0x79   : > { %3030 = vmatprep.mubr.bf16.mxu1 %v2639_v2  ;;  %v1800_v28 = vrot.slane %v1798_v43, 4  ;;  %v1803_v49 = vrot.slane %v1801_v44, 5  ;;  %v2695_v2 = vld [vmem:[%s3463_s11 + $0x38] sm:$0xf]  ;;  %v1863_v33 = vshll.u32 %v3871_v22, 16  ;;  %v1877_v44 = vshll.u32 %v3875_v30, 16 }
  0x7a   : > { %3037 = vmatpush3.bf16.msra.mxu0 %v3238_v48  ;;  %v1791_v48 = vrot.slane %v1790_v40, 4  ;;  %v1814_v52 = vrot.slane %v1812_v23, 4  ;;  %v1817_v53 = vrot.slane %v1815_v47, 5 }
  0x7b   : > { %3061 = vmatpush3.bf16.msra.mxu1 %v3239_v60  ;;  %3038 = vmatprep.subr.bf16.mxu0 %v3240_v0  ;;  %v1804_v56 = vor.u32 %v1803_v49, %v1800_v28  ;;  %v3256_v28 = vld [vmem:[%s3463_s11 + $0x30] ss:$8 sps:$4 sm:$0xff]  }
  0x7c   : > { %3062 = vmatprep.subr.bf16.mxu1 %v3241_v8  ;;  %v1796_v55 = vsel %vm3506_vm2, %v1791_v48, %v1795_v42  ;;  %v1818_v15 = vor.u32 %v1817_v53, %v1814_v52  ;;  %v1833_v42 = vrot.slane %v1832_v34, 4  ;;  %v1879_v52 = vrot.slane %v1877_v44, 5 }
  0x7d   : > { %3007 = vmatmul.mubr.bf16.gmra.mxu0 %v2596_v11  ;;  %v2717_v58 = vcombine.low %v1782_v51, %v1796_v55  ;;  %v1805_v60 = vrot.slane %v1804_v56, 4  ;;  %v1865_v51 = vrot.slane %v1863_v33, 5  ;;  %v2061_v56 = vrot.slane %v3809_v13, 5  ;;  %v3258_v13 = vld [vmem:[%s4040_s1 + $0x228] sm:$0xff]  }
  0x7e   : > { %3039 = vmatpush3.bf16.msra.mxu0 %v3240_v0  ;;  %3031 = vmatmul.mubr.bf16.gmra.mxu1 %v2640_v12  ;;  %v1819_v62 = vrot.slane %v1818_v15, 4  ;;  %v3851_v0 = vld [vmem:[%s3463_s11 + $0x34] sm:$0x1]  ;;  %v1840_v12 = vshrl.u32 %v2695_v2, 16  ;;  %v2730_v15 = vld [vmem:[%s3463_s11 + $0x18] sm:$0xe] }
  0x7f   : > { %3063 = vmatpush3.bf16.msra.mxu1 %v3241_v8  ;;  %3040 = vmatprep.subr.bf16.mxu0 %v3242_v14  ;;  %v1810_v8 = vsel %vm3506_vm2, %v1805_v60, %v1809_v59  ;;  %v1835_v11 = vshll.u32 %v3851_v0, 16  ;;  %v2729_v59 = vld [vmem:[%s3463_s11 + $0x10] sm:$0xe]  ;;  %v2065_v60 = vrot.slane %v3813_v19, 5  ;;  %v2738_v63 = vrot.slane %v2730_v15, 9 }
  0x80   : > { %3064 = vmatprep.subr.bf16.mxu1 %v3243_v16  ;;  %3050 = vmatprep.mubr.bf16.mxu0 %v3252_v17  ;;  %v3251_v17 = vld [vmem:[%s4040_s1 + $0x1c0] sm:$0xff]   ;;  %v1824_v18 = vsel %vm3506_vm2, %v1819_v62, %v1823_v61  ;;  %v1842_v25 = vrot.slane %v1840_v12, 4  ;;  %v2737_v62 = vrot.slane %v2729_v59, 9  ;;  %v2073_v33 = vrot.slane %v3832_v38, 5 }
  0x81   : > { %3074 = vmatprep.mubr.bf16.mxu1 %v2717_v58  ;;  %v1837_v24 = vrot.slane %v1835_v11, 5  ;;  %v2718_v45 = vcombine.low %v1810_v8, %v1824_v18  ;;  %v2742_v8 = vrot.slane %v2734_v5, 9  ;;  %v2081_v11 = vrot.slane %v3855_v3, 5  ;;  %v3257_v12 = vld [vmem:[%s3463_s11 + $0x40] ss:$8 sps:$4 sm:$0xff]  }
  0x82   : > { %3041 = vmatpush3.bf16.msra.mxu0 %v3242_v14  ;;  %v1843_v14 = vshll.u32 %v2695_v2, 16  ;;  %v2733_v2 = vld [vmem:[%s3463_s11 + $0x30] sm:$0xe]  ;;  %v3259_v3 = vld [vmem:[%s4040_s1 + $0x220] sm:$0xff]  }
  0x83   : > { %3065 = vmatpush3.bf16.msra.mxu1 %v3243_v16  ;;  %3042 = vmatprep.subr.bf16.mxu0 %v3244_v27  ;;  %v2697_v16 = vld [vmem:[%s3463_s11 + $0x40] sm:$0xf]  ;;  %v1838_v49 = vsel %vm3506_vm2, %v1833_v42, %v1837_v24  ;;  %v2741_v19 = vrot.slane %v2733_v2, 9  ;;  %v3262_v24 = vld [vmem:[%s4040_s1 + $0x208] sm:$0xff]  }
  0x84   : > { %3066 = vmatprep.subr.bf16.mxu1 %v3245_v29  ;;  %v1845_v26 = vrot.slane %v1843_v14, 5  ;;  %v1854_v31 = vshrl.u32 %v2697_v16, 16  ;;  %v1857_v32 = vshll.u32 %v2697_v16, 16  ;;  %v2062_v14 = vsel %vm3589_vm5, %v2737_v62, %v2061_v56 }
  0x85   : > { %v2066_v16 = vsel %vm3589_vm5, %v2738_v63, %v2065_v60 }
  0x86   : > { %3043 = vmatpush3.bf16.msra.mxu0 %v3244_v27  ;;  %v2699_v27 = vld [vmem:[%s3463_s11 + $0x48] sm:$0xf]  ;;  %v1846_v36 = vor.u32 %v1845_v26, %v1842_v25  ;;  %v1856_v10 = vrot.slane %v1854_v31, 4  ;;  %v1859_v43 = vrot.slane %v1857_v32, 5  ;;  %v2761_v18 = vcombine.low %v2062_v14, %v2066_v16  ;;  %v2731_v25 = vld [vmem:[%s3463_s11 + $0x20] sm:$0xe] }
  0x87   : > { %3067 = vmatpush3.bf16.msra.mxu1 %v3245_v29  ;;  %3044 = vmatprep.subr.bf16.mxu0 %v3246_v35  ;;  %v1851_v29 = vrot.slane %v1849_v21, 5  ;;  %v1871_v40 = vshll.u32 %v2699_v27, 16  ;;  %v3261_v21 = vld [vmem:[%s4040_s1 + $0x210] sm:$0xff]   ;;  %v2732_v26 = vld [vmem:[%s3463_s11 + $0x28] sm:$0xe]  ;;  %v2739_v34 = vrot.slane %v2731_v25, 9 }
  0x88   : > { %3068 = vmatprep.subr.bf16.mxu1 %v3247_v39  ;;  %v1847_v23 = vrot.slane %v1846_v36, 4  ;;  %v1860_v50 = vor.u32 %v1859_v43, %v1856_v10  ;;  %v2736_v31 = vld [vmem:[%s3463_s11 + $0x48] sm:$0xe]  ;;  %v2740_v32 = vrot.slane %v2732_v26, 9  ;;  %v3263_v36 = vld [vmem:[%s4040_s1 + $0x200] sm:$0xff]  }
  0x89   : > { %v1873_v48 = vrot.slane %v1871_v40, 5 }
  0x8a   : > { %3045 = vmatpush3.bf16.msra.mxu0 %v3246_v35  ;;  %v3254_v35 = vld [vmem:[%s4040_s1 + $0x238] sm:$0xff]   ;;  %v1852_v53 = vsel %vm3506_vm2, %v1847_v23, %v1851_v29  ;;  %v1861_v55 = vrot.slane %v1860_v50, 4  ;;  %v2069_v29 = vrot.slane %v3828_v37, 5  ;;  %v2074_v38 = vsel %vm3589_vm5, %v2740_v32, %v2073_v33 }
  0x8b   : > { %3069 = vmatpush3.bf16.msra.mxu1 %v3247_v39  ;;  %3046 = vmatprep.subr.bf16.mxu0 %v3248_v54  ;;  %v1868_v39 = vshrl.u32 %v2699_v27, 16  ;;  %v2735_v27 = vld [vmem:[%s3463_s11 + $0x40] sm:$0xe]  ;;  %s2780_s11 = sshll.u32 %s3445_s21, 6 }
  0x8c   : > { %3070 = vmatprep.subr.bf16.mxu1 %v3249_v57  ;;  %v1866_v61 = vsel %vm3506_vm2, %v1861_v55, %v1865_v51  ;;  %v2743_v10 = vrot.slane %v2735_v27, 9  ;;  %v2070_v37 = vsel %vm3589_vm5, %v2739_v34, %v2069_v29  ;;  %s3963_s21 = scalar_lea.vmem %s4042_s3, %s2780_s11  ;;  %s3264_s11 = scalar_lea.vmem %s3990_s5, 1024 }
  0x8d   : > { %v1870_v47 = vrot.slane %v1868_v39, 4  ;;  %v2744_v39 = vrot.slane %v2736_v31, 9  ;;  %v2762_v40 = vcombine.low %v2070_v37, %v2074_v38  ;;  %p3265_p12 = scmp.ne.s32.totalorder %s3990_s5, %s3264_s11  ;;  %p3272_p2 = scmp.lt.s32.totalorder %s3270_s12, %s3264_s11 }
  0x8e   : > { %3047 = vmatpush3.bf16.msra.mxu0 %v3248_v54 }
  0x8f   : > { %3071 = vmatpush3.bf16.msra.mxu1 %v3249_v57  ;;  %3048 = vmatprep.subr.bf16.mxu0 %v3250_v7  ;;  %v1874_v54 = vor.u32 %v1873_v48, %v1870_v47  ;;  %v2719_v57 = vcombine.low %v1838_v49, %v1852_v53  ;;  %p3266_p13 = pnand %p3265_p12, %p3410_p4  ;;  %p3273_p3 = por %p3272_p2, %p3271_p1 }
  0x90   : > { %3072 = vmatprep.subr.bf16.mxu1 %v3251_v17 }
  0x91   : > { %v1875_v58 = vrot.slane %v1874_v54, 4  ;;  %p3267_p0 = pneg %p3266_p13 }
  0x92   : > { %3049 = vmatpush3.bf16.msra.mxu0 %v3250_v7  ;;  %v2077_v7 = vrot.slane %v3851_v0, 5  ;;  %v2082_v0 = vsel %vm3589_vm5, %v2742_v8, %v2081_v11 }
  0x93   : > { %3073 = vmatpush3.bf16.msra.mxu1 %v3251_v17  ;;  %3082 = vmatprep.subr.bf16.mxu0 %v3254_v35  ;;  %v1880_v6 = vsel %vm3506_vm2, %v1875_v58, %v1879_v52  ;;  %p3274_p5 = pnand %p3273_p3, %p3267_p0 }
  0x94   : > { %3106 = vmatprep.subr.bf16.mxu1 %v3254_v35  ;;  %v2720_v17 = vcombine.low %v1866_v61, %v1880_v6  ;;  %v2078_v41 = vsel %vm3589_vm5, %v2741_v19, %v2077_v7 }
  0x95   : > { %3051 = vmatmul.mubr.bf16.vlgmr.msra.gmra.mxu0 %v3253_v9  ;;  %v2763_v4 = vcombine.low %v2078_v41, %v2082_v0  ;;  %v2085_v9 = vrot.slane %v3871_v22, 5 }
  0x96   : > { %3075 = vmatmul.mubr.bf16.vlgmr.msra.gmra.mxu1 %v2718_v45  ;;  %3083 = vmatpush3.bf16.msra.mxu0 %v3254_v35 }
  0x97   : > { %3114 = vmatpush3.bf16.msra.mxu1 %v3254_v35  ;;  %3084 = vmatprep.subr.bf16.mxu0 %v3255_v46  ;;  %v2089_v35 = vrot.slane %v3875_v30, 5  ;;  %v2086_v22 = vsel %vm3589_vm5, %v2743_v10, %v2085_v9 }
  0x98   : > { %3107 = vmatprep.subr.bf16.mxu1 %v3255_v46  ;;  %3054 = vmatprep.mubr.bf16.mxu0 %v3256_v28 }
  0x99   : > { %3078 = vmatprep.mubr.bf16.mxu1 %v2719_v57  ;;  %v2090_v30 = vsel %vm3589_vm5, %v2744_v39, %v2089_v35 }
  0x9a   : > { %3085 = vmatpush3.bf16.msra.mxu0 %v3255_v46  ;;  %v2764_v42 = vcombine.low %v2086_v22, %v2090_v30 }
  0x9b   : > { %3115 = vmatpush3.bf16.msra.mxu1 %v3255_v46  ;;  %3086 = vmatprep.subr.bf16.mxu0 %v3258_v13 }
  0x9c   : > { %3108 = vmatprep.subr.bf16.mxu1 %v3258_v13 }
  0x9d   : > { %3055 = vmatmul.mubr.bf16.gmra.mxu0 %v3257_v12 }
  0x9e   : > { %3087 = vmatpush3.bf16.msra.mxu0 %v3258_v13  ;;  %3079 = vmatmul.mubr.bf16.gmra.mxu1 %v2720_v17 }
  0x9f   : > { %3116 = vmatpush3.bf16.msra.mxu1 %v3258_v13  ;;  %3088 = vmatprep.subr.bf16.mxu0 %v3259_v3 }
  0xa0   : > { %3109 = vmatprep.subr.bf16.mxu1 %v3259_v3  ;;  %3098 = vmatprep.mubr.bf16.mxu0 %v2761_v18 }
  0xa1   : > { %3102 = vmatprep.mubr.bf16.mxu1 %v2763_v4 }
  0xa2   : > { %3089 = vmatpush3.bf16.msra.mxu0 %v3259_v3 }
  0xa3   : > { %3117 = vmatpush3.bf16.msra.mxu1 %v3259_v3  ;;  %3090 = vmatprep.subr.bf16.mxu0 %v3260_v20 }
  0xa4   : > { %3110 = vmatprep.subr.bf16.mxu1 %v3260_v20 }
  0xa6   : > { %3091 = vmatpush3.bf16.msra.mxu0 %v3260_v20 }
  0xa7   : > { %3118 = vmatpush3.bf16.msra.mxu1 %v3260_v20  ;;  %3092 = vmatprep.subr.bf16.mxu0 %v3261_v21 }
  0xa8   : > { %3111 = vmatprep.subr.bf16.mxu1 %v3261_v21 }
  0xaa   : > { %3093 = vmatpush3.bf16.msra.mxu0 %v3261_v21 }
  0xab   : > { %3119 = vmatpush3.bf16.msra.mxu1 %v3261_v21  ;;  %3094 = vmatprep.subr.bf16.mxu0 %v3262_v24 }
  0xac   : > { %3112 = vmatprep.subr.bf16.mxu1 %v3262_v24 }
  0xae   : > { %3095 = vmatpush3.bf16.msra.mxu0 %v3262_v24 }
  0xaf   : > { %3120 = vmatpush3.bf16.msra.mxu1 %v3262_v24  ;;  %3096 = vmatprep.subr.bf16.mxu0 %v3263_v36 }
  0xb0   : > { %3113 = vmatprep.subr.bf16.mxu1 %v3263_v36 }
  0xb2   : > { %3097 = vmatpush3.bf16.msra.mxu0 %v3263_v36 }
  0xb3   : > { %3121 = vmatpush3.bf16.msra.mxu1 %v3263_v36 }
  0xb5   : > { %3099 = vmatmul.mubr.bf16.vlgmr.msra.gmra.mxu0 %v2762_v40 }
  0xb6   : > { %3103 = vmatmul.mubr.bf16.vlgmr.msra.gmra.mxu1 %v2764_v42 }
  0xf5   : > { %v2908_v43 = vpop.f32.mrf.mxu0 }
  0xf6   : > { %v2932_v45 = vpop.f32.mrf.mxu1 }
  0xf7   : > { %v538_v44 = vpop.f32.mrf.mxu0  ;;  %v684_v9 = vadd.f32 %v2932_v45, %v2908_v43 }
  0xf8   : > { %v675_v23 = vpop.f32.mrf.mxu1 }
  0xf9   : > { %v2909_v46 = vpop.f32.mrf.mxu0  ;;  %v676_v39 = vadd.f32 %v675_v23, %v538_v44 }
  0xfa   : > { %v2933_v28 = vpop.f32.mrf.mxu1 }
  0xfb   : > { %v541_v47 = vpop.f32.mrf.mxu0  ;;  %v687_v30 = vadd.f32 %v2933_v28, %v2909_v46 }
  0xfc   : > { %v678_v50 = vpop.f32.mrf.mxu1 }
  0xfd   : > { %v2912_v48 = vpop.f32.mrf.mxu0  ;;  %v679_v45 = vadd.f32 %v678_v50, %v541_v47 }
  0xfe   : > { %v2936_v51 = vpop.f32.mrf.mxu1 }
  0xff   : > { %v554_v49 = vpop.f32.mrf.mxu0  ;;  %v700_v36 = vadd.f32 %v2936_v51, %v2912_v48 }
 0x100   : > { %v691_v52 = vpop.f32.mrf.mxu1 }
 0x101   : > { %v2913_v1 = vpop.f32.mrf.mxu0  ;;  %v692_v38 = vadd.f32 %v691_v52, %v554_v49 }
 0x102   : > { %v2937_v55 = vpop.f32.mrf.mxu1 }
 0x103   : > { %v557_v53 = vpop.f32.mrf.mxu0 }
 0x104   : > { %v694_v57 = vpop.f32.mrf.mxu1 }
 0x105   : > { %v695_v23 = vadd.f32 %v694_v57, %v557_v53 }
 0x115   : > { %v2956_v54 = vpop.f32.mrf.mxu0 }
 0x116   : > { %v2980_v58 = vpop.f32.mrf.mxu1  ;;  %v913_v37 = vadd.f32 %v2956_v54, %v684_v9 }
 0x117   : > { %v880_v56 = vpop.f32.mrf.mxu0 }
 0x118   : > { %v1051_v15 = vpop.f32.mrf.mxu1  ;;  %v911_v40 = vadd.f32 %v880_v56, %v676_v39 }
 0x119   : > { %v2957_v59 = vpop.f32.mrf.mxu0 }
 0x11a   : > { %v2981_v61 = vpop.f32.mrf.mxu1  ;;  %v914_v48 = vadd.f32 %v2957_v59, %v687_v30  ;;  %v1082_v54 = vadd.f32 %v1051_v15, %v911_v40 }
 0x11b   : > { %v883_v60 = vpop.f32.mrf.mxu0 }
 0x11c   : > { %v1054_v63 = vpop.f32.mrf.mxu1  ;;  %v912_v49 = vadd.f32 %v883_v60, %v679_v45  ;;  %v1085_v56 = vadd.f32 %v2981_v61, %v914_v48 }
 0x11d   : > { %v2960_v62 = vpop.f32.mrf.mxu0 }
 0x11e   : > { %v2984_v5 = vpop.f32.mrf.mxu1  ;;  %v917_v22 = vadd.f32 %v2960_v62, %v700_v36 }
 0x11f   : > { %v896_v2 = vpop.f32.mrf.mxu0 }
 0x120   : > { %v1067_v6 = vpop.f32.mrf.mxu1  ;;  %v1088_v44 = vadd.f32 %v2984_v5, %v917_v22 }
 0x121   : > { %v2961_v13 = vpop.f32.mrf.mxu0 }
 0x122   : > { %v2985_v7 = vpop.f32.mrf.mxu1 }
 0x123   : > { %v899_v19 = vpop.f32.mrf.mxu0 }
 0x124   : > { %v1070_v11 = vpop.f32.mrf.mxu1  ;;  %v916_v62 = vadd.f32 %v899_v19, %v695_v23 }
 0x135   : > { %v3004_v8 = vpop.f32.mrf.mxu0 }
 0x136   : > { %v3028_v14 = vpop.f32.mrf.mxu1 }
 0x137   : > { %v1333_v12 = vpop.f32.mrf.mxu0 }
 0x138   : > { %v1543_v17 = vpop.f32.mrf.mxu1  ;;  %v1364_v39 = vadd.f32 %v1333_v12, %v1082_v54 }
 0x139   : > { %v3005_v16 = vpop.f32.mrf.mxu0 }
 0x13a   : > { %v3029_v0 = vpop.f32.mrf.mxu1  ;;  %v1367_v50 = vadd.f32 %v3005_v16, %v1085_v56  ;;  %v1574_v15 = vadd.f32 %v1543_v17, %v1364_v39 }
 0x13b   : > { %v1336_v41 = vpop.f32.mrf.mxu0 }
 0x13c   : > { %v3946_v18 = vpop.f32.mrf.mxu1  ;;  %v1577_v61 = vadd.f32 %v3029_v0, %v1367_v50 }
 0x13d   : > { %v3008_v3 = vpop.f32.mrf.mxu0  ;;  %4050 = vst [vmem:[#allocation5_spill] sm:$0xff] %v3946_v18  ;;  %v703_v18 = vadd.f32 %v2937_v55, %v2913_v1 }
 0x13e   : > { %v3032_v4 = vpop.f32.mrf.mxu1  ;;  %v1370_v28 = vadd.f32 %v3008_v3, %v1088_v44 }
 0x13f   : > { %v1349_v20 = vpop.f32.mrf.mxu0  ;;  %v918_v9 = vadd.f32 %v2961_v13, %v703_v18 }
 0x140   : > { %v1559_v21 = vpop.f32.mrf.mxu1  ;;  %v1580_v53 = vadd.f32 %v3032_v4, %v1370_v28  ;;  %v2271_v28 = vld [vmem:[%s3963_s21] sm:$0xff] }
 0x141   : > { %v3009_v24 = vpop.f32.mrf.mxu0  ;;  %v1089_v1 = vadd.f32 %v2985_v7, %v918_v9  ;;  %v2277_v9 = vld [vmem:[%s3963_s21 + $0x30] sm:$0xff] }
 0x142   : > { %v3033_v25 = vpop.f32.mrf.mxu1 }
 0x143   : > { %v1352_v26 = vpop.f32.mrf.mxu0  ;;  %v1371_v57 = vadd.f32 %v3009_v24, %v1089_v1 }
 0x144   : > { %v1562_v31 = vpop.f32.mrf.mxu1 }
 0x145   : > { %v1581_v3 = vadd.f32 %v3033_v25, %v1371_v57 }
 0x155   : > { %v3052_v27 = vpop.f32.mrf.mxu0 }
 0x156   : > { %v3076_v34 = vpop.f32.mrf.mxu1 }
 0x157   : > { %v1714_v29 = vpop.f32.mrf.mxu0 }
 0x158   : > { %v3948_v32 = vpop.f32.mrf.mxu1  ;;  %v1745_v12 = vadd.f32 %v1714_v29, %v1574_v15 }
 0x159   : > { %4051 = vst [vmem:[#allocation6_spill] sm:$0xff] %v3948_v32  ;;  %v3053_v33 = vpop.f32.mrf.mxu0  ;;  %v915_v32 = vadd.f32 %v896_v2, %v692_v38  ;;  %v1083_v2 = vadd.f32 %v1054_v63, %v912_v49  ;;  %v4054_v63 = vld [vmem:[#allocation5_spill] sm:$0xff] }
 0x15a   : > { %v3950_v35 = vpop.f32.mrf.mxu1  ;;  %v1748_v16 = vadd.f32 %v3053_v33, %v1577_v61 }
 0x15b   : > { %4052 = vst [vmem:[#allocation7_spill] sm:$0xff] %v3950_v35  ;;  %v1717_v10 = vpop.f32.mrf.mxu0  ;;  %v1084_v35 = vadd.f32 %v2980_v58, %v913_v37  ;;  %v1086_v36 = vadd.f32 %v1067_v6, %v915_v32  ;;  %v1087_v58 = vadd.f32 %v1070_v11, %v916_v62  ;;  %v1365_v60 = vadd.f32 %v1336_v41, %v1083_v2  ;;  %v2774_v32 = vld [vmem:[%s4041_s2 + $0x1] ss:$0 sm:$0xff] }
 0x15c   : > { %v3952_v42 = vpop.f32.mrf.mxu1  ;;  %v2275_v2 = vld [vmem:[%s3963_s21 + $0x20] sm:$0xff] }
 0x15d   : > { %4053 = vst [vmem:[#allocation8_spill] sm:$0xff] %v3952_v42  ;;  %v3056_v43 = vpop.f32.mrf.mxu0  ;;  %v1366_v52 = vadd.f32 %v3004_v8, %v1084_v35  ;;  %v1368_v55 = vadd.f32 %v1349_v20, %v1086_v36  ;;  %v1369_v19 = vadd.f32 %v1352_v26, %v1087_v58 }
 0x15e   : > { %v3080_v51 = vpop.f32.mrf.mxu1  ;;  %v1751_v8 = vadd.f32 %v3056_v43, %v1580_v53  ;;  %v2273_v43 = vld [vmem:[%s3963_s21 + $0x10] sm:$0xff] }
 0x15f   : > { %v1730_v46 = vpop.f32.mrf.mxu0  ;;  %v1576_v47 = vadd.f32 %v3028_v14, %v1366_v52  ;;  %v1578_v6 = vadd.f32 %v1559_v21, %v1368_v55  ;;  %v1575_v14 = vadd.f32 %v4054_v63, %v1365_v60  ;;  %v1579_v20 = vadd.f32 %v1562_v31, %v1369_v19  ;;  %v2773_v21 = vld [vmem:[%s4041_s2] ss:$0 sm:$0xff]  ;;  %v2278_v19 = vld [vmem:[%s3963_s21 + $0x38] sm:$0xff] }
 0x160   : > { %v2012_v42 = vpop.f32.mrf.mxu1  ;;  %v2033_v17 = vadd.f32 %v3080_v51, %v1751_v8  ;;  %v4055_v0 = vld [vmem:[#allocation6_spill] sm:$0xff] }
 0x161   : > { %v3057_v59 = vpop.f32.mrf.mxu0  ;;  %v1747_v5 = vadd.f32 %v3052_v27, %v1576_v47  ;;  %v1749_v7 = vadd.f32 %v1730_v46, %v1578_v6  ;;  %v2027_v26 = vadd.f32 %v4055_v0, %v1745_v12  ;;  %v1746_v25 = vadd.f32 %v1717_v10, %v1575_v14 }
 0x162   : > { %v3081_v13 = vpop.f32.mrf.mxu1  ;;  %v1752_v41 = vadd.f32 %v3057_v59, %v1581_v3  ;;  %v4056_v10 = vld [vmem:[#allocation7_spill] sm:$0xff]  ;;  %v2274_v59 = vld [vmem:[%s3963_s21 + $0x18] sm:$0xff] }
 0x163   : > { %v1733_v18 = vpop.f32.mrf.mxu0  ;;  %v2029_v11 = vadd.f32 %v3076_v34, %v1747_v5  ;;  %v2031_v29 = vadd.f32 %v2012_v42, %v1749_v7  ;;  %v2030_v37 = vadd.f32 %v4056_v10, %v1748_v16  ;;  %v2272_v7 = vld [vmem:[%s3963_s21 + $0x8] sm:$0xff] }
 0x164   : > { %v2015_v4 = vpop.f32.mrf.mxu1  ;;  %v1750_v31 = vadd.f32 %v1733_v18, %v1579_v20  ;;  %v2034_v40 = vadd.f32 %v3081_v13, %v1752_v41  ;;  %v4057_v51 = vld [vmem:[#allocation8_spill] sm:$0xff]  ;;  %v2276_v16 = vld [vmem:[%s3963_s21 + $0x28] sm:$0xff] }
 0x165   : > { %v2028_v23 = vadd.f32 %v4057_v51, %v1746_v25 }
 0x166   : > { %v2032_v36 = vadd.f32 %v2015_v4, %v1750_v31 }
 0x175   : > { %v3100_v24 = vpop.f32.mrf.mxu0 }
 0x176   : > { %v2239_v27 = vadd.f32 %v3100_v24, %v2029_v11  ;;  %v3104_v34 = vpop.f32.mrf.mxu1 }
 0x177   : > { %v2243_v33 = vadd.f32 %v3104_v34, %v2033_v17  ;;  %v2206_v35 = vpop.f32.mrf.mxu0 }
 0x178   : > { %v2252_v38 = vmul.f32 %v2773_v21, %v2239_v27  ;;  %v2237_v22 = vadd.f32 %v2206_v35, %v2027_v26  ;;  %v2222_v30 = vpop.f32.mrf.mxu1 }
 0x179   : > { %v2256_v45 = vmul.f32 %v2773_v21, %v2243_v33  ;;  %v2241_v42 = vadd.f32 %v2222_v30, %v2031_v29  ;;  %v3101_v48 = vpop.f32.mrf.mxu0 }
 0x17a   : > { %v2265_v44 = vadd.f32 %v2774_v32, %v2252_v38  ;;  %v2250_v54 = vmul.f32 %v2773_v21, %v2237_v22  ;;  %v2240_v49 = vadd.f32 %v3101_v48, %v2030_v37  ;;  %v3105_v52 = vpop.f32.mrf.mxu1 }
 0x17b   : > { %v2269_v62 = vadd.f32 %v2774_v32, %v2256_v45  ;;  %v2254_v46 = vmul.f32 %v2773_v21, %v2241_v42  ;;  %v2244_v56 = vadd.f32 %v3105_v52, %v2034_v40  ;;  %v2209_v39 = vpop.f32.mrf.mxu0 }
 0x17c   : > { %v2281_v1 = vadd.f32 %v2273_v43, %v2265_v44  ;;  %v2263_v55 = vadd.f32 %v2774_v32, %v2250_v54  ;;  %v2253_v47 = vmul.f32 %v2773_v21, %v2240_v49  ;;  %v2238_v50 = vadd.f32 %v2209_v39, %v2028_v23  ;;  %v2225_v58 = vpop.f32.mrf.mxu1 }
 0x17d   : > { %v2285_v53 = vadd.f32 %v2277_v9, %v2269_v62  ;;  %v2267_v57 = vadd.f32 %v2774_v32, %v2254_v46  ;;  %v2257_v15 = vmul.f32 %v2773_v21, %v2244_v56  ;;  %v2242_v60 = vadd.f32 %v2225_v58, %v2032_v36 }
 0x17e   : > { %v2289_v5 = vmax.f32 %v2281_v1, 0.0  ;;  %v2279_v13 = vadd.f32 %v2271_v28, %v2263_v55  ;;  %v2266_v6 = vadd.f32 %v2774_v32, %v2253_v47  ;;  %v2251_v8 = vmul.f32 %v2773_v21, %v2238_v50 }
 0x17f   : > { %v2293_v61 = vmax.f32 %v2285_v53, 0.0  ;;  %v2283_v12 = vadd.f32 %v2275_v2, %v2267_v57  ;;  %v2270_v3 = vadd.f32 %v2774_v32, %v2257_v15  ;;  %v2255_v18 = vmul.f32 %v2773_v21, %v2242_v60 }
 0x180   : > { %2297 = vst [vmem:[%s253_s29 + $0x10] sm:$0xff] %v2289_v5  ;;  %v2287_v63 = vmax.f32 %v2279_v13, 0.0  ;;  %v2282_v14 = vadd.f32 %v2274_v59, %v2266_v6  ;;  %v2264_v11 = vadd.f32 %v2774_v32, %v2251_v8 }
 0x181   : > { %2301 = vst [vmem:[%s253_s29 + $0x30] sm:$0xff] %v2293_v61  ;;  %v2291_v4 = vmax.f32 %v2283_v12, 0.0  ;;  %v2286_v20 = vadd.f32 %v2278_v19, %v2270_v3  ;;  %v2268_v17 = vadd.f32 %v2774_v32, %v2255_v18 }
 0x182   : > { %2295 = vst [vmem:[%s253_s29] sm:$0xff] %v2287_v63  ;;  %v2290_v41 = vmax.f32 %v2282_v14, 0.0  ;;  %v2280_v24 = vadd.f32 %v2272_v7, %v2264_v11 }
 0x183   : > { %2299 = vst [vmem:[%s253_s29 + $0x20] sm:$0xff] %v2291_v4  ;;  %v2294_v0 = vmax.f32 %v2286_v20, 0.0  ;;  %v2284_v21 = vadd.f32 %v2276_v16, %v2268_v17 }
 0x184   : > { %2298 = vst [vmem:[%s253_s29 + $0x18] sm:$0xff] %v2290_v41  ;;  %v2288_v26 = vmax.f32 %v2280_v24, 0.0 }
 0x185   : > { %2302 = vst [vmem:[%s253_s29 + $0x38] sm:$0xff] %v2294_v0  ;;  %v2292_v25 = vmax.f32 %v2284_v21, 0.0 }
 0x186   : > { %2296 = vst [vmem:[%s253_s29 + $0x8] sm:$0xff] %v2288_v26 }
 0x187   : > { %2300 = vst [vmem:[%s253_s29 + $0x28] sm:$0xff] %v2292_v25 }
 0x188   : > { %3277 = shalt.err (!%p3274_p5)
}
 0x189   : > { %s3278_s13 = scalar_lea.hbm %s3988_s8, 1024  ;;  %s3282_s22 = scalar_lea.hbm %s4043_s4, 2048 }
 0x18a   : > { %p3279_p6 = scmp.ne.s32.totalorder %s3988_s8, %s3278_s13  ;;  %p3283_p10 = scmp.lt.s32.totalorder %s3988_s8, %s4043_s4 }
 0x18b   : > { %p3284_p11 = scmp.lt.s32.totalorder %s3282_s22, %s3278_s13 }
 0x18c   : > { %p3280_p7 = pnand %p3279_p6, %p3410_p4 }
 0x18d   : > { %p3285_p12 = por %p3284_p11, %p3283_p10 }
 0x18e   : > { %p3281_p9 = pneg %p3280_p7 }
 0x190   : > { %p3286_p13 = pnand %p3285_p12, %p3281_p9 }
 0x192   : > { %3289 = shalt.err (!%p3286_p13)
}
 0x193   : > { %s3343_s29 = smov 128   ;;  %s3344_s30 = smov 8  }
 0x194   : > { %3123 = dma.vmem_to_hbm [thread:$0]  (%p3410_p4), %s3990_s5, 1024, %s3988_s8, %s3994_s18, %s3343_s29, %s3343_s29, %s3344_s30  }
 0x195 PF: > { %p3129_p0 = scmp.ge.s32.totalorder %s3340_s20, 2  ;;  %s2333_s6 = sand.u32 1, %s3320_s15  }
 0x196   : > { %s2334_s7 = scalar_lea.sflag [#allocation3], %s2333_s6 }
 0x197   : > { %p3126_p1 = pnand %p3129_p0, %p3417_p8 }
 0x199   : > { %p3127_p2 = pneg %p3126_p1 }
 0x19b   : > { %3315 = dma.done.wait (%p3127_p2), %s2334_s7, 1024  }
 0x19c   : > { %3317 = vsyncadd (%p3127_p2), %s2334_s7, 4294966272  ;;  %s17_s20 = sadd.s32 1, %s3340_s20   ;;  %s4058_s15 = smov %s3324_s16 }
 0x19d   : > { %p14_p3 = scmp.ge.s32.totalorder %s17_s20, 4   ;;  %s4059_s16 = smov %s3328_s17 }
 0x19e   : > { %s4060_s17 = smov %s3423_s28  ;;  %s4061_s18 = smov %s3336_s19 }
 0x19f   : > { %s4062_s19 = smov %s4064_s23  ;;  %16 = sbr.rel (!%p14_p3) target bundleno = 4 (0x4), region = 90 }
 0x1a4   :  { %2339 = vsyncpa [#allocation3], 1 }
 0x1a5   :  { %2341 = vsyncpa [#allocation3 + $0x1], 1 }

// kernel: _lambda_.5
= control target key start
LH: loop header
LB: loop body
LE: loop exit
PB: predicated region body
PF: predicated region fallthrough
CT: control target
= control target key end

     0   :  { %s3576_s21 = smov 0   ;;  %s3578_s22 = smov 0   ;;  %s4302_s0 = inlined_call_operand.vmem [shape: bf16[2,10,10,128], index: 0, kind: input, shape index: {}]   ;;  %s4303_s1 = inlined_call_operand.vmem [shape: bf16[9,128,128], index: 1, kind: input, shape index: {}]   ;;  %s4304_s2 = inlined_call_operand.vmem [shape: f32[2,128], index: 2, kind: input, shape index: {}]   ;;  %s4305_s3 = inlined_call_operand.vmem [shape: bf16[2,8,8,64], index: 3, kind: input, shape index: {}]   ;;  %s4306_s4 = inlined_call_operand.vmem [shape: bf16[64,128], index: 4, kind: input, shape index: {}]   ;;  %s4307_s5 = inlined_call_operand.vmem [shape: f32[2,128], index: 5, kind: input, shape index: {}]   ;;  %s4308_s6 = inlined_call_operand.vmem [shape: f32[2,8,8,128], index: 6, kind: output, shape index: {}]  }
   0x1   :  { %s3580_s23 = smov 0  }
   0x2 LB: > { %s28_s24 = sadd.s32 1, %s3535_s22  ;;  %p2702_p0 = scmp.ge.s32.totalorder %s3539_s23, 1  ;;  %s3539_s23 = sphi %s3580_s23, %s16_s23   ;;  %s3535_s22 = sphi %s3578_s22, %s4336_s22   ;;  %s3531_s21 = sphi %s3576_s21, %s4335_s21  }
   0x3   : > { %p30_p1 = scmp.ge.s32.totalorder %s28_s24, 2  ;;  %p272_p2 = scmp.lt.s32.totalorder %s3539_s23, 3 }
   0x5   : > { %s4338_s24 = smov (%p30_p1, %s28_s24), 0  ;;  %p273_p3 = pnand %p2702_p0, %p272_p2 }
   0x7   : > { %276 = sbr.rel (%p273_p3) target bundleno = 393 (0x189), region = 44 }
   0xc   : > { %v3425_v0 = vld [vmem:[%s4303_s1 + $0x78] sm:$0xff]   ;;  %p326_p4 = scmp.lt.s32.totalorder %s3531_s21, 1  ;;  %v3427_v2 = vld [vmem:[%s4303_s1 + $0x70] sm:$0xff]   ;;  %v3429_v4 = vld [vmem:[%s4303_s1 + $0x68] sm:$0xff]   ;;  %vm393_vm0 = vsmask.f32 3328 }
   0xd   : > { %v3426_v1 = vld [vmem:[%s4303_s1 + $0x38] sm:$0xff]   ;;  %3168 = vmatprep.subr.bf16.mxu0 %v3425_v0  ;;  %v3428_v3 = vld [vmem:[%s4303_s1 + $0x30] sm:$0xff]   ;;  %v3430_v5 = vld [vmem:[%s4303_s1 + $0x28] sm:$0xff]   ;;  %vm394_vm1 = vsmask.f32 7440  ;;  %vm815_vm3 = vcmask 1042432  }
   0xe   : > { %3192 = vmatprep.subr.bf16.mxu1 %v3426_v1  ;;  %3169 = vmatpush3.bf16.msra.mxu0 %v3425_v0  ;;  %s4340_s21 = smov (!%p326_p4, %s3531_s21), 1  ;;  %v3431_v6 = vld [vmem:[%s4303_s1 + $0x60] sm:$0xff]   ;;  %v3433_v8 = vld [vmem:[%s4303_s1 + $0x58] sm:$0xff]   ;;  %v3435_v10 = vld [vmem:[%s4303_s1 + $0x50] sm:$0xff]   ;;  %vm816_vm4 = vcmask 1046532   ;;  %vm2416_vm6 = vcmask 523264  }
   0xf   : > { %3193 = vmatpush3.bf16.msra.mxu1 %v3426_v1  ;;  %3170 = vmatprep.subr.bf16.mxu0 %v3427_v2  ;;  %v3432_v7 = vld [vmem:[%s4303_s1 + $0x20] sm:$0xff]   ;;  %s3400_s17 = smul.u32 80, %s4340_s21  ;;  %v3434_v9 = vld [vmem:[%s4303_s1 + $0x18] sm:$0xff]   ;;  %v3436_v14 = vld [vmem:[%s4303_s1 + $0x10] sm:$0xff]   ;;  %s3050_s29 = sshll.u32 %s4340_s21, 5 }
  0x10   : > { %3194 = vmatprep.subr.bf16.mxu1 %v3428_v3  ;;  %v3437_v17 = vld [vmem:[%s4303_s1 + $0x48] sm:$0xff]   ;;  %vm3673_vm2 = vmor %vm393_vm0, %vm394_vm1  ;;  %v3439_v46 = vld [vmem:[%s4303_s1 + $0x40] sm:$0xff]   ;;  %s4095_s12 = scalar_lea.vmem %s4305_s3, %s3050_s29  ;;  %s3051_s15 = sshll.u32 %s4340_s21, 6 }
  0x11   : > { %s3630_s28 = scalar_lea.vmem %s4302_s0, %s3400_s17  ;;  %v3438_v23 = vld [vmem:[%s4303_s1 + $0x8] sm:$0xff]   ;;  %v3440_v50 = vld [vmem:[%s4303_s1] sm:$0xff]   ;;  %v3443_v59 = vld [vmem:[%s4303_s1 + $0xb8] sm:$0xff]   ;;  %s4261_s17 = scalar_lea.vmem %s4308_s6, %s3051_s15 }
  0x12   : > { %3171 = vmatpush3.bf16.msra.mxu0 %v3427_v2  ;;  %v361_v11 = vld [vmem:[%s3630_s28] sm:$0xf]  ;;  %v362_v12 = vld [vmem:[%s3630_s28 + $0x8] sm:$0xf]  ;;  %v3638_v13 = vld [vmem:[%s3630_s28 + $0x4] sm:$0x1] }
  0x13   : > { %3195 = vmatpush3.bf16.msra.mxu1 %v3428_v3  ;;  %3172 = vmatprep.subr.bf16.mxu0 %v3429_v4  ;;  %v3644_v15 = vld [vmem:[%s3630_s28 + $0xc] sm:$0x1]  ;;  %v2736_v16 = vcombine.low %v361_v11, %v362_v12  ;;  %v397_v18 = vshrl.u32 %v361_v11, 16  ;;  %v400_v19 = vshll.u32 %v361_v11, 16  ;;  %v406_v20 = vshll.u32 %v3638_v13, 16  ;;  %v3444_v62 = vld [vmem:[%s4303_s1 + $0xf8] sm:$0xff]   ;;  %vm3756_vm5 = vmor %vm815_vm3, %vm816_vm4 }
  0x14   : > { %3196 = vmatprep.subr.bf16.mxu1 %v3430_v5  ;;  %v411_v21 = vshrl.u32 %v362_v12, 16  ;;  %v3651_v22 = vld [vmem:[%s3630_s28 + $0x10] sm:$0xf]  ;;  %v414_v24 = vshll.u32 %v362_v12, 16  ;;  %v420_v25 = vshll.u32 %v3644_v15, 16 }
  0x15   : > { %3208 = vmatprep.mubr.bf16.mxu1 %v2736_v16  ;;  %v3658_v26 = vld [vmem:[%s3630_s28 + $0x18] sm:$0xf]  ;;  %v399_v27 = vrot.slane %v397_v18, 4  ;;  %v402_v28 = vrot.slane %v400_v19, 5  ;;  %v408_v29 = vrot.slane %v406_v20, 5  ;;  %v425_v35 = vshrl.u32 %v3651_v22, 16 }
  0x16   : > { %3173 = vmatpush3.bf16.msra.mxu0 %v3429_v4  ;;  %v413_v30 = vrot.slane %v411_v21, 4  ;;  %v3661_v31 = vld [vmem:[%s3630_s28 + $0x14] sm:$0x1]  ;;  %v416_v32 = vrot.slane %v414_v24, 5  ;;  %v422_v33 = vrot.slane %v420_v25, 5  ;;  %v428_v36 = vshll.u32 %v3651_v22, 16 }
  0x17   : > { %3197 = vmatpush3.bf16.msra.mxu1 %v3430_v5  ;;  %3174 = vmatprep.subr.bf16.mxu0 %v3431_v6  ;;  %v3664_v34 = vld [vmem:[%s3630_s28 + $0x1c] sm:$0x1]  ;;  %v403_v37 = vor.u32 %v402_v28, %v399_v27  ;;  %v434_v38 = vshll.u32 %v3661_v31, 16  ;;  %v439_v39 = vshrl.u32 %v3658_v26, 16  ;;  %v442_v40 = vshll.u32 %v3658_v26, 16  ;;  %v3445_v3 = vld [vmem:[%s4303_s1 + $0xb0] sm:$0xff]  }
  0x18   : > { %3198 = vmatprep.subr.bf16.mxu1 %v3432_v7  ;;  %v417_v42 = vor.u32 %v416_v32, %v413_v30  ;;  %v427_v43 = vrot.slane %v425_v35, 4  ;;  %v430_v44 = vrot.slane %v428_v36, 5  ;;  %v448_v45 = vshll.u32 %v3664_v34, 16  ;;  %v3446_v5 = vld [vmem:[%s4303_s1 + $0xf0] sm:$0xff]   ;;  %v3447_v16 = vld [vmem:[%s4303_s1 + $0xa8] sm:$0xff]  }
  0x19   : > { %v404_v47 = vrot.slane %v403_v37, 4  ;;  %v441_v48 = vrot.slane %v439_v39, 4  ;;  %v444_v49 = vrot.slane %v442_v40, 5  ;;  %v436_v53 = vrot.slane %v434_v38, 5  ;;  %v367_v25 = vld [vmem:[%s3630_s28 + $0x30] sm:$0xf] }
  0x1a   : > { %3175 = vmatpush3.bf16.msra.mxu0 %v3431_v6  ;;  %v418_v51 = vrot.slane %v417_v42, 4  ;;  %v431_v52 = vor.u32 %v430_v44, %v427_v43  ;;  %v450_v56 = vrot.slane %v448_v45, 5  ;;  %v2737_v2 = vcombine.low %v3651_v22, %v3658_v26  ;;  %v365_v6 = vld [vmem:[%s3630_s28 + $0x20] sm:$0xf]  ;;  %v368_v28 = vld [vmem:[%s3630_s28 + $0x38] sm:$0xf] }
  0x1b   : > { %3199 = vmatpush3.bf16.msra.mxu1 %v3432_v7  ;;  %3176 = vmatprep.subr.bf16.mxu0 %v3433_v8  ;;  %v409_v54 = vsel %vm3673_vm2, %v404_v47, %v408_v29  ;;  %v445_v55 = vor.u32 %v444_v49, %v441_v48  ;;  %v820_v4 = vrot.slane %v3638_v13, 5  ;;  %v366_v7 = vld [vmem:[%s3630_s28 + $0x28] sm:$0xf]  ;;  %v456_v11 = vshll.u32 %v365_v6, 16  ;;  %v3726_v29 = vld [vmem:[%s3630_s28 + $0x34] sm:$0x1] }
  0x1c   : > { %3200 = vmatprep.subr.bf16.mxu1 %v3434_v9  ;;  %v423_v57 = vsel %vm3673_vm2, %v418_v51, %v422_v33  ;;  %v432_v58 = vrot.slane %v431_v52, 4  ;;  %v470_v18 = vshll.u32 %v366_v7, 16  ;;  %v2738_v20 = vcombine.low %v365_v6, %v366_v7  ;;  %v3729_v32 = vld [vmem:[%s3630_s28 + $0x3c] sm:$0x1]  ;;  %v3449_v37 = vld [vmem:[%s4303_s1 + $0xa0] sm:$0xff]   ;;  %v3457_v13 = vld [vmem:[%s4303_s1 + $0x88] sm:$0xff]  }
  0x1d   : > { %v2724_v60 = vcombine.low %v409_v54, %v423_v57  ;;  %v446_v61 = vrot.slane %v445_v55, 4  ;;  %v458_v22 = vrot.slane %v456_v11, 5  ;;  %v481_v33 = vshrl.u32 %v367_v25, 16  ;;  %v3450_v43 = vld [vmem:[%s4303_s1 + $0xe0] sm:$0xff]   ;;  %v2989_v41 = vld [vmem:[%s3630_s28 + $0x18] sm:$0xe] }
  0x1e   : > { %3177 = vmatpush3.bf16.msra.mxu0 %v3433_v8  ;;  %v437_v63 = vsel %vm3673_vm2, %v432_v58, %v436_v53  ;;  %v3710_v8 = vld [vmem:[%s3630_s28 + $0x24] sm:$0x1]  ;;  %v472_v26 = vrot.slane %v470_v18, 5  ;;  %v484_v35 = vshll.u32 %v367_v25, 16  ;;  %v490_v36 = vshll.u32 %v3726_v29, 16  ;;  %v3451_v58 = vld [vmem:[%s4303_s1 + $0x98] sm:$0xff]  }
  0x1f   : > { %3201 = vmatpush3.bf16.msra.mxu1 %v3434_v9  ;;  %3178 = vmatprep.subr.bf16.mxu0 %v3435_v10  ;;  %v451_v0 = vsel %vm3673_vm2, %v446_v61, %v450_v56  ;;  %v3713_v9 = vld [vmem:[%s3630_s28 + $0x2c] sm:$0x1]  ;;  %v462_v12 = vshll.u32 %v3710_v8, 16  ;;  %v495_v39 = vshrl.u32 %v368_v28, 16  ;;  %v498_v40 = vshll.u32 %v368_v28, 16 }
  0x20   : > { %3202 = vmatprep.subr.bf16.mxu1 %v3436_v14  ;;  %3184 = vmatprep.mubr.bf16.mxu0 %v2724_v60  ;;  %v2725_v1 = vcombine.low %v437_v63, %v451_v0  ;;  %v476_v19 = vshll.u32 %v3713_v9, 16  ;;  %v504_v42 = vshll.u32 %v3729_v32, 16  ;;  %v483_v45 = vrot.slane %v481_v33, 4  ;;  %v791_v63 = vld [vmem:[%s3630_s28] sm:$0xe] }
  0x21   : > { %v492_v48 = vrot.slane %v490_v36, 5  ;;  %v497_v49 = vrot.slane %v495_v39, 4  ;;  %v2739_v53 = vcombine.low %v367_v25, %v368_v28  ;;  %v824_v54 = vrot.slane %v3644_v15, 5  ;;  %v3453_v15 = vld [vmem:[%s4303_s1 + $0xd8] sm:$0xff]   ;;  %v792_v0 = vld [vmem:[%s3630_s28 + $0x8] sm:$0xe] }
  0x22   : > { %3179 = vmatpush3.bf16.msra.mxu0 %v3435_v10  ;;  %v453_v10 = vshrl.u32 %v365_v6, 16  ;;  %v478_v27 = vrot.slane %v476_v19, 5  ;;  %v506_v57 = vrot.slane %v504_v42, 5  ;;  %v2749_v6 = vrot.slane %v792_v0, 9  ;;  %v794_v18 = vld [vmem:[%s3630_s28 + $0x18] sm:$0xe] }
  0x23   : > { %3203 = vmatpush3.bf16.msra.mxu1 %v3436_v14  ;;  %3180 = vmatprep.subr.bf16.mxu0 %v3437_v17  ;;  %v467_v14 = vshrl.u32 %v366_v7, 16  ;;  %v828_v19 = vrot.slane %v3661_v31, 5  ;;  %v3459_v25 = vld [vmem:[%s4303_s1 + $0x80] sm:$0xff]   ;;  %v797_v36 = vld [vmem:[%s3630_s28 + $0x30] sm:$0xe]  ;;  %v844_v42 = vrot.slane %v3726_v29, 5 }
  0x24   : > { %3204 = vmatprep.subr.bf16.mxu1 %v3438_v23  ;;  %v455_v21 = vrot.slane %v453_v10, 4  ;;  %v3456_v10 = vld [vmem:[%s4303_s1 + $0xd0] sm:$0xff]   ;;  %v3460_v31 = vld [vmem:[%s4303_s1 + $0xc0] sm:$0xff]  }
  0x25   : > { %v469_v24 = vrot.slane %v467_v14, 4  ;;  %v793_v14 = vld [vmem:[%s3630_s28 + $0x10] sm:$0xe] }
  0x26   : > { %3181 = vmatpush3.bf16.msra.mxu0 %v3437_v17  ;;  %v3448_v17 = vld [vmem:[%s4303_s1 + $0xe8] sm:$0xff]   ;;  %v459_v30 = vor.u32 %v458_v22, %v455_v21  ;;  %v2750_v21 = vrot.slane %v793_v14, 9  ;;  %v2751_v22 = vrot.slane %v794_v18, 9 }
  0x27   : > { %3205 = vmatpush3.bf16.msra.mxu1 %v3438_v23  ;;  %3182 = vmatprep.subr.bf16.mxu0 %v3439_v46  ;;  %v464_v23 = vrot.slane %v462_v12, 5  ;;  %v473_v38 = vor.u32 %v472_v26, %v469_v24  ;;  %v825_v12 = vsel %vm3756_vm5, %v2749_v6, %v824_v54  ;;  %v796_v24 = vld [vmem:[%s3630_s28 + $0x28] sm:$0xe]  ;;  %v836_v26 = vrot.slane %v3710_v8, 5 }
  0x28   : > { %3206 = vmatprep.subr.bf16.mxu1 %v3440_v50  ;;  %v460_v44 = vrot.slane %v459_v30, 4  ;;  %v3461_v30 = vld [vmem:[%s4303_s1 + $0x138] sm:$0xff]   ;;  %v2753_v8 = vrot.slane %v796_v24, 9  ;;  %v3468_v29 = vld [vmem:[%s3630_s28 + $0x28] ss:$8 sps:$4 sm:$0xff]  }
  0x29   : > { %v474_v47 = vrot.slane %v473_v38, 4  ;;  %v3463_v38 = vld [vmem:[%s3630_s28 + $0x18] ss:$8 sps:$4 sm:$0xff]  }
  0x2a   : > { %3183 = vmatpush3.bf16.msra.mxu0 %v3439_v46  ;;  %v486_v46 = vrot.slane %v484_v35, 5  ;;  %v465_v51 = vsel %vm3673_vm2, %v460_v44, %v464_v23  ;;  %v795_v23 = vld [vmem:[%s3630_s28 + $0x20] sm:$0xe]  ;;  %v3464_v35 = vld [vmem:[%s4303_s1 + $0x178] sm:$0xff]   ;;  %v2754_v44 = vrot.slane %v797_v36, 9 }
  0x2b   : > { %3207 = vmatpush3.bf16.msra.mxu1 %v3440_v50  ;;  %3216 = vmatprep.subr.bf16.mxu0 %v3443_v59  ;;  %v500_v50 = vrot.slane %v498_v40, 5  ;;  %v479_v55 = vsel %vm3673_vm2, %v474_v47, %v478_v27  ;;  %v829_v27 = vsel %vm3756_vm5, %v2750_v21, %v828_v19  ;;  %v2752_v33 = vrot.slane %v795_v23, 9  ;;  %v3466_v47 = vld [vmem:[%s4303_s1 + $0x170] sm:$0xff]  }
  0x2c   : > { %3240 = vmatprep.subr.bf16.mxu1 %v3444_v62  ;;  %v487_v52 = vor.u32 %v486_v46, %v483_v45  ;;  %v3465_v46 = vld [vmem:[%s4303_s1 + $0x130] sm:$0xff]  }
  0x2d   : > { %3185 = vmatmul.mubr.bf16.vlgmr.msra.gmra.mxu0 %v2725_v1  ;;  %v501_v56 = vor.u32 %v500_v50, %v497_v49  ;;  %v837_v39 = vsel %vm3756_vm5, %v2752_v33, %v836_v26  ;;  %v3467_v50 = vld [vmem:[%s4303_s1 + $0x128] sm:$0xff]   ;;  %v2865_v33 = vld [vmem:[%s3630_s28 + $0x10] sm:$0xe] }
  0x2e   : > { %3209 = vmatmul.mubr.bf16.vlgmr.msra.gmra.mxu1 %v2737_v2  ;;  %3217 = vmatpush3.bf16.msra.mxu0 %v3443_v59  ;;  %v2726_v59 = vcombine.low %v465_v51, %v479_v55  ;;  %v488_v60 = vrot.slane %v487_v52, 4  ;;  %v3469_v51 = vld [vmem:[%s3630_s28 + $0x38] ss:$8 sps:$4 sm:$0xff]   ;;  %v3470_v52 = vld [vmem:[%s4303_s1 + $0x168] sm:$0xff]  }
  0x2f   : > { %3241 = vmatpush3.bf16.msra.mxu1 %v3444_v62  ;;  %3218 = vmatprep.subr.bf16.mxu0 %v3445_v3  ;;  %v502_v61 = vrot.slane %v501_v56, 4  ;;  %v3471_v55 = vld [vmem:[%s4303_s1 + $0x120] sm:$0xff]   ;;  %v3837_v56 = vld [vmem:[%s3630_s28 + $0xc] sm:$0x1] }
  0x30   : > { %3242 = vmatprep.subr.bf16.mxu1 %v3446_v5  ;;  %3212 = vmatprep.mubr.bf16.mxu1 %v2738_v20  ;;  %v493_v62 = vsel %vm3673_vm2, %v488_v60, %v492_v48  ;;  %v832_v20 = vrot.slane %v3664_v34, 5  ;;  %v840_v34 = vrot.slane %v3713_v9, 5  ;;  %v798_v9 = vld [vmem:[%s3630_s28 + $0x38] sm:$0xe] }
  0x31   : > { %3188 = vmatprep.mubr.bf16.mxu0 %v2726_v59  ;;  %v507_v2 = vsel %vm3673_vm2, %v502_v61, %v506_v57  ;;  %v2755_v45 = vrot.slane %v798_v9, 9  ;;  %v2822_v57 = vld [vmem:[%s3630_s28 + $0x10] sm:$0xf]  ;;  %v3472_v59 = vld [vmem:[%s4303_s1 + $0x160] sm:$0xff]   ;;  %v1201_v61 = vshll.u32 %v3837_v56, 16 }
  0x32   : > { %3219 = vmatpush3.bf16.msra.mxu0 %v3445_v3  ;;  %v3455_v3 = vld [vmem:[%s4303_s1 + $0x90] sm:$0xff]   ;;  %v2727_v7 = vcombine.low %v493_v62, %v507_v2  ;;  %v833_v28 = vsel %vm3756_vm5, %v2751_v22, %v832_v20  ;;  %v841_v40 = vsel %vm3756_vm5, %v2753_v8, %v840_v34  ;;  %v1206_v62 = vshrl.u32 %v2822_v57, 16  ;;  %v3474_v22 = vld [vmem:[%s4303_s1 + $0x158] sm:$0xff]  }
  0x33   : > { %3243 = vmatpush3.bf16.msra.mxu1 %v3446_v5  ;;  %3220 = vmatprep.subr.bf16.mxu0 %v3447_v16  ;;  %v2748_v5 = vrot.slane %v791_v63, 9  ;;  %v2774_v48 = vcombine.low %v837_v39, %v841_v40  ;;  %v2824_v63 = vld [vmem:[%s3630_s28 + $0x18] sm:$0xf]  ;;  %v1209_v0 = vshll.u32 %v2822_v57, 16  ;;  %v3475_v8 = vld [vmem:[%s4303_s1 + $0x110] sm:$0xff]  }
  0x34   : > { %3244 = vmatprep.subr.bf16.mxu1 %v3448_v17  ;;  %v1223_v18 = vshll.u32 %v2824_v63, 16  ;;  %v2828_v57 = vld [vmem:[%s3630_s28 + $0x28] sm:$0xf] }
  0x35   : > { %v821_v11 = vsel %vm3756_vm5, %v2748_v5, %v820_v4  ;;  %3189 = vmatmul.mubr.bf16.gmra.mxu0 %v2727_v7  ;;  %v3458_v4 = vld [vmem:[%s4303_s1 + $0xc8] sm:$0xff]   ;;  %v2826_v5 = vld [vmem:[%s3630_s28 + $0x20] sm:$0xf]  ;;  %v1211_v14 = vrot.slane %v1209_v0, 5  ;;  %v2832_v0 = vld [vmem:[%s3630_s28 + $0x38] sm:$0xf] }
  0x36   : > { %3221 = vmatpush3.bf16.msra.mxu0 %v3447_v16  ;;  %3213 = vmatmul.mubr.bf16.gmra.mxu1 %v2739_v53  ;;  %v3462_v16 = vld [vmem:[%s3630_s28 + $0x8] ss:$8 sps:$4 sm:$0xff]   ;;  %v1234_v20 = vshrl.u32 %v2826_v5, 16  ;;  %v1237_v21 = vshll.u32 %v2826_v5, 16 }
  0x37   : > { %3245 = vmatpush3.bf16.msra.mxu1 %v3448_v17  ;;  %3222 = vmatprep.subr.bf16.mxu0 %v3449_v37  ;;  %v2772_v17 = vcombine.low %v821_v11, %v825_v12  ;;  %v2820_v53 = vld [vmem:[%s3630_s28 + $0x8] sm:$0xf]  ;;  %v1208_v11 = vrot.slane %v1206_v62, 4  ;;  %v3854_v12 = vld [vmem:[%s3630_s28 + $0x24] sm:$0x1]  ;;  %v1248_v62 = vshrl.u32 %v2828_v57, 16 }
  0x38   : > { %3246 = vmatprep.subr.bf16.mxu1 %v3450_v43  ;;  %3256 = vmatprep.mubr.bf16.mxu1 %v3462_v16  ;;  %v1192_v60 = vshrl.u32 %v2820_v53, 16  ;;  %v1243_v26 = vshll.u32 %v3854_v12, 16 }
  0x39   : > { %3232 = vmatprep.mubr.bf16.mxu0 %v2772_v17  ;;  %v1220_v17 = vshrl.u32 %v2824_v63, 16  ;;  %v1212_v23 = vor.u32 %v1211_v14, %v1208_v11  ;;  %v1251_v63 = vshll.u32 %v2828_v57, 16  ;;  %v1250_v11 = vrot.slane %v1248_v62, 4  ;;  %v3484_v57 = vld [vmem:[%s4303_s1 + $0x1f0] sm:$0xff]  }
  0x3a   : > { %3223 = vmatpush3.bf16.msra.mxu0 %v3449_v37  ;;  %v2773_v37 = vcombine.low %v829_v27, %v833_v28  ;;  %v1194_v6 = vrot.slane %v1192_v60, 4  ;;  %v1236_v28 = vrot.slane %v1234_v20, 4  ;;  %v3871_v9 = vrot.slane %v1243_v26, 5  ;;  %v3480_v26 = vld [vmem:[%s4303_s1 + $0x140] sm:$0xff]  }
  0x3b   : > { %3247 = vmatpush3.bf16.msra.mxu1 %v3450_v43  ;;  %3224 = vmatprep.subr.bf16.mxu0 %v3451_v58  ;;  %v848_v43 = vrot.slane %v3729_v32, 5  ;;  %v845_v32 = vsel %vm3756_vm5, %v2754_v44, %v844_v42  ;;  %v1222_v24 = vrot.slane %v1220_v17, 4  ;;  %v1483_v42 = vrot.slane %v3837_v56, 5  ;;  %v2867_v44 = vld [vmem:[%s3630_s28 + $0x20] sm:$0xe] }
  0x3c   : > { %3248 = vmatprep.subr.bf16.mxu1 %v3453_v15  ;;  %v1276_v17 = vshrl.u32 %v2832_v0, 16  ;;  %v1279_v20 = vshll.u32 %v2832_v0, 16 }
  0x3d   : > { %v849_v49 = vsel %vm3756_vm5, %v2755_v45, %v848_v43  ;;  %v2873_v43 = vrot.slane %v2865_v33, 9  ;;  %v3476_v45 = vld [vmem:[%s4303_s1 + $0x150] sm:$0xff]  }
  0x3e   : > { %3225 = vmatpush3.bf16.msra.mxu0 %v3451_v58  ;;  %v2775_v54 = vcombine.low %v845_v32, %v849_v49  ;;  %v3841_v58 = vld [vmem:[%s3630_s28 + $0x14] sm:$0x1] }
  0x3f   : > { %3249 = vmatpush3.bf16.msra.mxu1 %v3453_v15  ;;  %3226 = vmatprep.subr.bf16.mxu0 %v3455_v3  ;;  %v1195_v15 = vshll.u32 %v2820_v53, 16  ;;  %v1215_v2 = vshll.u32 %v3841_v58, 16 }
  0x40   : > { %3250 = vmatprep.subr.bf16.mxu1 %v3456_v10 }
  0x41   : > { %v1197_v7 = vrot.slane %v1195_v15, 5  ;;  %v1217_v16 = vrot.slane %v1215_v2, 5  ;;  %v3478_v2 = vld [vmem:[%s4303_s1 + $0x148] sm:$0xff]  }
  0x42   : > { %3227 = vmatpush3.bf16.msra.mxu0 %v3455_v3  ;;  %v3850_v3 = vld [vmem:[%s3630_s28 + $0x1c] sm:$0x1] }
  0x43   : > { %3251 = vmatpush3.bf16.msra.mxu1 %v3456_v10  ;;  %3228 = vmatprep.subr.bf16.mxu0 %v3457_v13  ;;  %v1203_v10 = vrot.slane %v1201_v61, 5  ;;  %v1229_v19 = vshll.u32 %v3850_v3, 16  ;;  %v3911_v61 = vld [vmem:[%s3630_s28 + $0x34] sm:$0x1] }
  0x44   : > { %3252 = vmatprep.subr.bf16.mxu1 %v3458_v4  ;;  %v1271_v14 = vshll.u32 %v3911_v61, 16 }
  0x45   : > { %v3865_v27 = vrot.slane %v1229_v19, 5  ;;  %v3932_v19 = vld [vmem:[%s3630_s28 + $0x44] sm:$0x1] }
  0x46   : > { %3229 = vmatpush3.bf16.msra.mxu0 %v3457_v13  ;;  %v3473_v13 = vld [vmem:[%s4303_s1 + $0x118] sm:$0xff]   ;;  %v1273_v33 = vrot.slane %v1271_v14, 5  ;;  %v1511_v62 = vrot.slane %v3932_v19, 5  ;;  %v3487_v14 = vld [vmem:[%s4303_s1 + $0x1a0] sm:$0xff]  }
  0x47   : > { %3253 = vmatpush3.bf16.msra.mxu1 %v3458_v4  ;;  %3230 = vmatprep.subr.bf16.mxu0 %v3459_v25  ;;  %v1198_v4 = vor.u32 %v1197_v7, %v1194_v6 }
  0x48   : > { %3254 = vmatprep.subr.bf16.mxu1 %v3460_v31 }
  0x49   : > { %v1199_v34 = vrot.slane %v1198_v4, 4 }
  0x4a   : > { %3231 = vmatpush3.bf16.msra.mxu0 %v3459_v25  ;;  %v1225_v25 = vrot.slane %v1223_v18, 5 }
  0x4b   : > { %3255 = vmatpush3.bf16.msra.mxu1 %v3460_v31  ;;  %3264 = vmatprep.subr.bf16.mxu0 %v3461_v30  ;;  %v2864_v31 = vld [vmem:[%s3630_s28 + $0x8] sm:$0xe]  ;;  %v1204_v39 = vsel %vm3673_vm2, %v1199_v34, %v1203_v10  ;;  %v3923_v10 = vld [vmem:[%s3630_s28 + $0x3c] sm:$0x1]  ;;  %v1281_v34 = vrot.slane %v1279_v20, 5 }
  0x4c   : > { %3288 = vmatprep.subr.bf16.mxu1 %v3464_v35  ;;  %v1226_v36 = vor.u32 %v1225_v25, %v1222_v24  ;;  %v1278_v24 = vrot.slane %v1276_v17, 4  ;;  %v1285_v25 = vshll.u32 %v3923_v10, 16  ;;  %v3497_v17 = vld [vmem:[%s3630_s28 + $0x10] ss:$8 sps:$4 sm:$0xff]  }
  0x4d   : > { %3233 = vmatmul.mubr.bf16.vlgmr.msra.gmra.mxu0 %v2773_v37  ;;  %v2872_v37 = vrot.slane %v2864_v31, 9  ;;  %v2946_v20 = vld [vmem:[%s3630_s28 + $0x18] sm:$0xf] }
  0x4e   : > { %3265 = vmatpush3.bf16.msra.mxu0 %v3461_v30  ;;  %3257 = vmatmul.mubr.bf16.vlgmr.msra.gmra.mxu1 %v3463_v38  ;;  %v1239_v30 = vrot.slane %v1237_v21, 5  ;;  %v2866_v38 = vld [vmem:[%s3630_s28 + $0x18] sm:$0xe]  ;;  %v3479_v21 = vld [vmem:[%s4303_s1 + $0x100] sm:$0xff]  }
  0x4f   : > { %3289 = vmatpush3.bf16.msra.mxu1 %v3464_v35  ;;  %3266 = vmatprep.subr.bf16.mxu0 %v3465_v46  ;;  %v1213_v35 = vrot.slane %v1212_v23, 4 }
  0x50   : > { %3290 = vmatprep.subr.bf16.mxu1 %v3466_v47  ;;  %3236 = vmatprep.mubr.bf16.mxu0 %v2774_v48  ;;  %v1240_v40 = vor.u32 %v1239_v30, %v1236_v28  ;;  %v1487_v48 = vrot.slane %v3841_v58, 5  ;;  %v3899_v58 = vld [vmem:[%s3630_s28 + $0x2c] sm:$0x1] }
  0x51   : > { %3260 = vmatprep.mubr.bf16.mxu1 %v3468_v29  ;;  %v2874_v29 = vrot.slane %v2866_v38, 9  ;;  %v1257_v5 = vshll.u32 %v3899_v58, 16  ;;  %v1282_v38 = vor.u32 %v1281_v34, %v1278_v24  ;;  %v2948_v34 = vld [vmem:[%s3630_s28 + $0x20] sm:$0xf] }
  0x52   : > { %3267 = vmatpush3.bf16.msra.mxu0 %v3465_v46  ;;  %v1218_v46 = vsel %vm3673_vm2, %v1213_v35, %v1217_v16  ;;  %v3886_v49 = vrot.slane %v1240_v40, 4  ;;  %v1488_v53 = vsel %vm3756_vm5, %v2873_v43, %v1487_v48  ;;  %v2834_v16 = vld [vmem:[%s3630_s28 + $0x40] sm:$0xf]  ;;  %v2868_v35 = vld [vmem:[%s3630_s28 + $0x28] sm:$0xe] }
  0x53   : > { %3291 = vmatpush3.bf16.msra.mxu1 %v3466_v47  ;;  %3268 = vmatprep.subr.bf16.mxu0 %v3467_v50  ;;  %v3883_v47 = vrot.slane %v1226_v36, 4  ;;  %v2852_v32 = vcombine.low %v1204_v39, %v1218_v46  ;;  %v1259_v23 = vrot.slane %v1257_v5, 5  ;;  %v1293_v28 = vshll.u32 %v2834_v16, 16  ;;  %v2870_v48 = vld [vmem:[%s3630_s28 + $0x38] sm:$0xe]  ;;  %v3485_v5 = vld [vmem:[%s4303_s1 + $0x1a8] sm:$0xff]  }
  0x54   : > { %3292 = vmatprep.subr.bf16.mxu1 %v3470_v52  ;;  %v1246_v15 = vsel %vm3673_vm2, %v3886_v49, %v3871_v9  ;;  %v1499_v36 = vrot.slane %v3899_v58, 5  ;;  %v3481_v9 = vld [vmem:[%s4303_s1 + $0x1b8] sm:$0xff]   ;;  %v2876_v46 = vrot.slane %v2868_v35, 9  ;;  %v2950_v35 = vld [vmem:[%s3630_s28 + $0x28] sm:$0xf] }
  0x55   : > { %3237 = vmatmul.mubr.bf16.gmra.mxu0 %v2775_v54  ;;  %v2875_v54 = vrot.slane %v2867_v44, 9  ;;  %v1232_v60 = vsel %vm3673_vm2, %v3883_v47, %v3865_v27  ;;  %v1290_v27 = vshrl.u32 %v2834_v16, 16  ;;  %v1295_v40 = vrot.slane %v1293_v28, 5  ;;  %v3482_v44 = vld [vmem:[%s4303_s1 + $0x1f8] sm:$0xff]   ;;  %v3488_v16 = vld [vmem:[%s4303_s1 + $0x1e0] sm:$0xff]  }
  0x56   : > { %3269 = vmatpush3.bf16.msra.mxu0 %v3467_v50  ;;  %3261 = vmatmul.mubr.bf16.gmra.mxu1 %v3469_v51  ;;  %v1484_v50 = vsel %vm3756_vm5, %v2872_v37, %v1483_v42  ;;  %v1491_v51 = vrot.slane %v3850_v3, 5  ;;  %v2869_v42 = vld [vmem:[%s3630_s28 + $0x30] sm:$0xe]  ;;  %v2853_v43 = vcombine.low %v1232_v60, %v1246_v15  ;;  %v1507_v15 = vrot.slane %v3923_v10, 5  ;;  %v3486_v10 = vld [vmem:[%s4303_s1 + $0x1e8] sm:$0xff]  }
  0x57   : > { %3293 = vmatpush3.bf16.msra.mxu1 %v3470_v52  ;;  %3270 = vmatprep.subr.bf16.mxu0 %v3471_v55  ;;  %v3477_v52 = vld [vmem:[%s4303_s1 + $0x108] sm:$0xff]   ;;  %v2896_v56 = vcombine.low %v1484_v50, %v1488_v53  ;;  %v1292_v39 = vrot.slane %v1290_v27, 4  ;;  %v2877_v47 = vrot.slane %v2869_v42, 9  ;;  %v1503_v50 = vrot.slane %v3911_v61, 5  ;;  %v4011_v27 = vld [vmem:[%s3630_s28 + $0x24] sm:$0x1] }
  0x58   : > { %3294 = vmatprep.subr.bf16.mxu1 %v3472_v59  ;;  %3280 = vmatprep.mubr.bf16.mxu0 %v2852_v32  ;;  %v3919_v3 = vsel %vm3756_vm5, %v2874_v29, %v1491_v51  ;;  %v2871_v51 = vld [vmem:[%s3630_s28 + $0x40] sm:$0xe] }
  0x59   : > { %3304 = vmatprep.mubr.bf16.mxu1 %v2896_v56  ;;  %v1296_v32 = vor.u32 %v1295_v40, %v1292_v39  ;;  %v2878_v56 = vrot.slane %v2870_v48, 9  ;;  %v1504_v60 = vsel %vm3756_vm5, %v2877_v47, %v1503_v50  ;;  %v2879_v61 = vrot.slane %v2871_v51, 9  ;;  %v3491_v40 = vld [vmem:[%s4303_s1 + $0x190] sm:$0xff]  }
  0x5a   : > { %3271 = vmatpush3.bf16.msra.mxu0 %v3471_v55  ;;  %v1495_v55 = vrot.slane %v3854_v12, 5  ;;  %v1253_v12 = vrot.slane %v1251_v63, 5  ;;  %v1886_v39 = vshll.u32 %v2948_v34, 16 }
  0x5b   : > { %3295 = vmatpush3.bf16.msra.mxu1 %v3472_v59  ;;  %3272 = vmatprep.subr.bf16.mxu0 %v3473_v13  ;;  %v2830_v59 = vld [vmem:[%s3630_s28 + $0x30] sm:$0xf]  ;;  %v1297_v58 = vrot.slane %v1296_v32, 4 }
  0x5c   : > { %3296 = vmatprep.subr.bf16.mxu1 %v3474_v22  ;;  %v1262_v6 = vshrl.u32 %v2830_v59, 16  ;;  %v1265_v7 = vshll.u32 %v2830_v59, 16  ;;  %v3929_v18 = vsel %vm3756_vm5, %v2875_v54, %v1495_v55  ;;  %v1283_v55 = vrot.slane %v1282_v38, 4 }
  0x5d   : > { %v2897_v29 = vcombine.low %v3919_v3, %v3929_v18  ;;  %v1500_v59 = vsel %vm3756_vm5, %v2876_v46, %v1499_v36  ;;  %v3489_v18 = vld [vmem:[%s4303_s1 + $0x198] sm:$0xff]   ;;  %v1883_v38 = vshrl.u32 %v2948_v34, 16  ;;  %v3492_v46 = vld [vmem:[%s4303_s1 + $0x1d0] sm:$0xff]  }
  0x5e   : > { %3273 = vmatpush3.bf16.msra.mxu0 %v3473_v13  ;;  %v1264_v13 = vrot.slane %v1262_v6, 4  ;;  %v1267_v4 = vrot.slane %v1265_v7, 5  ;;  %v2898_v0 = vcombine.low %v1500_v59, %v1504_v60  ;;  %v1508_v6 = vsel %vm3756_vm5, %v2878_v56, %v1507_v15 }
  0x5f   : > { %3297 = vmatpush3.bf16.msra.mxu1 %v3474_v22  ;;  %3274 = vmatprep.subr.bf16.mxu0 %v3475_v8  ;;  %v1254_v22 = vor.u32 %v1253_v12, %v1250_v11  ;;  %v1512_v7 = vsel %vm3756_vm5, %v2879_v61, %v1511_v62  ;;  %v1885_v48 = vrot.slane %v1883_v38, 4 }
  0x60   : > { %3298 = vmatprep.subr.bf16.mxu1 %v3476_v45  ;;  %v1268_v31 = vor.u32 %v1267_v4, %v1264_v13  ;;  %v2899_v12 = vcombine.low %v1508_v6, %v1512_v7  ;;  %v3490_v13 = vld [vmem:[%s4303_s1 + $0x1d8] sm:$0xff]   ;;  %v2944_v4 = vld [vmem:[%s3630_s28 + $0x10] sm:$0xf]  ;;  %v3495_v7 = vld [vmem:[%s4303_s1 + $0x180] sm:$0xff]  }
  0x61   : > { %v1255_v30 = vrot.slane %v1254_v22, 4  ;;  %v1855_v22 = vshrl.u32 %v2944_v4, 16 }
  0x62   : > { %3275 = vmatpush3.bf16.msra.mxu0 %v3475_v8  ;;  %v1299_v8 = vshll.u32 %v3932_v19, 16  ;;  %v1269_v37 = vrot.slane %v1268_v31, 4  ;;  %v4001_v19 = vld [vmem:[%s3630_s28 + $0x14] sm:$0x1] }
  0x63   : > { %3299 = vmatpush3.bf16.msra.mxu1 %v3476_v45  ;;  %3276 = vmatprep.subr.bf16.mxu0 %v3477_v52  ;;  %v1287_v45 = vrot.slane %v1285_v25, 5  ;;  %v1260_v53 = vsel %vm3673_vm2, %v1255_v30, %v1259_v23  ;;  %v1858_v23 = vshll.u32 %v2944_v4, 16  ;;  %v1864_v24 = vshll.u32 %v4001_v19, 16 }
  0x64   : > { %3300 = vmatprep.subr.bf16.mxu1 %v3478_v2  ;;  %v1301_v49 = vrot.slane %v1299_v8, 5  ;;  %v1274_v54 = vsel %vm3673_vm2, %v1269_v37, %v1273_v33  ;;  %v1869_v25 = vshrl.u32 %v2946_v20, 16  ;;  %v1857_v28 = vrot.slane %v1855_v22, 4  ;;  %v4015_v37 = vld [vmem:[%s3630_s28 + $0x2c] sm:$0x1] }
  0x65   : > { %v2854_v63 = vcombine.low %v1260_v53, %v1274_v54  ;;  %v1860_v30 = vrot.slane %v1858_v23, 5  ;;  %v1866_v33 = vrot.slane %v1864_v24, 5  ;;  %v1906_v32 = vshll.u32 %v4015_v37, 16  ;;  %v4057_v22 = vld [vmem:[%s3630_s28 + $0x44] sm:$0x1] }
  0x66   : > { %3277 = vmatpush3.bf16.msra.mxu0 %v3477_v52  ;;  %v3483_v52 = vld [vmem:[%s4303_s1 + $0x1b0] sm:$0xff]   ;;  %v1302_v3 = vsel %vm3673_vm2, %v1297_v58, %v1301_v49  ;;  %v1871_v8 = vrot.slane %v1869_v25, 4 }
  0x67   : > { %3301 = vmatpush3.bf16.msra.mxu1 %v3478_v2  ;;  %3278 = vmatprep.subr.bf16.mxu0 %v3479_v21  ;;  %v1288_v2 = vsel %vm3673_vm2, %v1283_v55, %v1287_v45  ;;  %v1861_v42 = vor.u32 %v1860_v30, %v1857_v28  ;;  %v1900_v45 = vshll.u32 %v2950_v35, 16  ;;  %v3494_v55 = vld [vmem:[%s4303_s1 + $0x1c8] sm:$0xff]   ;;  %v1908_v15 = vrot.slane %v1906_v32, 5 }
  0x68   : > { %3302 = vmatprep.subr.bf16.mxu1 %v3480_v26  ;;  %v2855_v11 = vcombine.low %v1288_v2, %v1302_v3  ;;  %v2954_v2 = vld [vmem:[%s3630_s28 + $0x38] sm:$0xf]  ;;  %v4041_v3 = vld [vmem:[%s3630_s28 + $0x3c] sm:$0x1]  ;;  %v4061_v30 = vld [vmem:[%s3630_s28 + $0x4c] sm:$0x1] }
  0x69   : > { %v1862_v49 = vrot.slane %v1861_v42, 4  ;;  %v1902_v51 = vrot.slane %v1900_v45, 5  ;;  %v3505_v45 = vld [vmem:[%s4306_s4 + $0x18] sm:$0xff]  }
  0x6a   : > { %3279 = vmatpush3.bf16.msra.mxu0 %v3479_v21  ;;  %v4005_v21 = vld [vmem:[%s3630_s28 + $0x1c] sm:$0x1] }
  0x6b   : > { %3303 = vmatpush3.bf16.msra.mxu1 %v3480_v26  ;;  %3312 = vmatprep.subr.bf16.mxu0 %v3481_v9  ;;  %v1872_v26 = vshll.u32 %v2946_v20, 16  ;;  %v1878_v31 = vshll.u32 %v4005_v21, 16  ;;  %v1867_v56 = vsel %vm3673_vm2, %v1862_v49, %v1866_v33  ;;  %v1934_v20 = vshll.u32 %v4041_v3, 16 }
  0x6c   : > { %3336 = vmatprep.subr.bf16.mxu1 %v3482_v44 }
  0x6d   : > { %3281 = vmatmul.mubr.bf16.vlgmr.msra.gmra.mxu0 %v2853_v43  ;;  %v1874_v36 = vrot.slane %v1872_v26, 5  ;;  %v1892_v43 = vshll.u32 %v4011_v27, 16  ;;  %v2958_v26 = vld [vmem:[%s3630_s28 + $0x48] sm:$0xf]  ;;  %v1936_v28 = vrot.slane %v1934_v20, 5  ;;  %v3515_v20 = vld [vmem:[%s4095_s12 + $0x10] sm:$0xff]  }
  0x6e   : > { %3313 = vmatpush3.bf16.msra.mxu0 %v3481_v9  ;;  %3305 = vmatmul.mubr.bf16.vlgmr.msra.gmra.mxu1 %v2897_v29  ;;  %v1880_v9 = vrot.slane %v1878_v31, 5  ;;  %v1888_v29 = vrot.slane %v1886_v39, 5  ;;  %v1953_v39 = vshrl.u32 %v2958_v26, 16 }
  0x6f   : > { %3337 = vmatpush3.bf16.msra.mxu1 %v3482_v44  ;;  %3314 = vmatprep.subr.bf16.mxu0 %v3483_v52  ;;  %v1897_v44 = vshrl.u32 %v2950_v35, 16  ;;  %v1875_v47 = vor.u32 %v1874_v36, %v1871_v8  ;;  %v1948_v8 = vshll.u32 %v4057_v22, 16  ;;  %v3498_v35 = vld [vmem:[%s3630_s28 + $0x20] ss:$8 sps:$4 sm:$0xff]   ;;  %v3499_v36 = vld [vmem:[%s4303_s1 + $0x238] sm:$0xff]  }
  0x70   : > { %3338 = vmatprep.subr.bf16.mxu1 %v3484_v57  ;;  %3284 = vmatprep.mubr.bf16.mxu0 %v2854_v63  ;;  %v1889_v54 = vor.u32 %v1888_v29, %v1885_v48  ;;  %v2952_v63 = vld [vmem:[%s3630_s28 + $0x30] sm:$0xf]  ;;  %v1955_v32 = vrot.slane %v1953_v39, 4 }
  0x71   : > { %3308 = vmatprep.mubr.bf16.mxu1 %v2898_v0  ;;  %v1899_v50 = vrot.slane %v1897_v44, 4  ;;  %v1876_v53 = vrot.slane %v1875_v47, 4  ;;  %v4037_v0 = vld [vmem:[%s3630_s28 + $0x34] sm:$0x1]  ;;  %v1914_v6 = vshll.u32 %v2952_v63, 16  ;;  %v1962_v44 = vshll.u32 %v4061_v30, 16 }
  0x72   : > { %3315 = vmatpush3.bf16.msra.mxu0 %v3483_v52  ;;  %v3493_v52 = vld [vmem:[%s4303_s1 + $0x188] sm:$0xff]   ;;  %v1890_v60 = vrot.slane %v1889_v54, 4  ;;  %v3500_v47 = vld [vmem:[%s4303_s1 + $0x230] sm:$0xff]  }
  0x73   : > { %3339 = vmatpush3.bf16.msra.mxu1 %v3484_v57  ;;  %3316 = vmatprep.subr.bf16.mxu0 %v3485_v5  ;;  %v1894_v57 = vrot.slane %v1892_v43, 5  ;;  %v1903_v58 = vor.u32 %v1902_v51, %v1899_v50  ;;  %v1881_v59 = vsel %vm3673_vm2, %v1876_v53, %v1880_v9  ;;  %v1916_v4 = vrot.slane %v1914_v6, 5  ;;  %v3501_v48 = vld [vmem:[%s3630_s28 + $0x30] ss:$8 sps:$4 sm:$0xff]  }
  0x74   : > { %3340 = vmatprep.subr.bf16.mxu1 %v3486_v10  ;;  %v2976_v61 = vcombine.low %v1867_v56, %v1881_v59  ;;  %v1964_v53 = vrot.slane %v1962_v44, 5  ;;  %v2995_v44 = vld [vmem:[%s3630_s28 + $0x48] sm:$0xe] }
  0x75   : > { %3285 = vmatmul.mubr.bf16.gmra.mxu0 %v2855_v11  ;;  %v1904_v62 = vrot.slane %v1903_v58, 4  ;;  %v1920_v11 = vshll.u32 %v4037_v0, 16  ;;  %v3503_v58 = vld [vmem:[%s4303_s1 + $0x228] sm:$0xff]  }
  0x76   : > { %3317 = vmatpush3.bf16.msra.mxu0 %v3485_v5  ;;  %3309 = vmatmul.mubr.bf16.gmra.mxu1 %v2899_v12  ;;  %v1911_v5 = vshrl.u32 %v2952_v63, 16  ;;  %v1925_v12 = vshrl.u32 %v2954_v2, 16  ;;  %v3509_v63 = vld [vmem:[%s4306_s4 + $0x8] sm:$0xff]  }
  0x77   : > { %3341 = vmatpush3.bf16.msra.mxu1 %v3486_v10  ;;  %3318 = vmatprep.subr.bf16.mxu0 %v3487_v14  ;;  %v1895_v10 = vsel %vm3673_vm2, %v1890_v60, %v1894_v57  ;;  %v1922_v23 = vrot.slane %v1920_v11, 5  ;;  %v3507_v60 = vld [vmem:[%s4306_s4 + $0x10] sm:$0xff]   ;;  %v3504_v11 = vld [vmem:[%s4303_s1 + $0x220] sm:$0xff]  }
  0x78   : > { %3342 = vmatprep.subr.bf16.mxu1 %v3488_v16  ;;  %3328 = vmatprep.mubr.bf16.mxu0 %v3497_v17  ;;  %v3496_v17 = vld [vmem:[%s4303_s1 + $0x1c0] sm:$0xff]   ;;  %v1927_v24 = vrot.slane %v1925_v12, 4 }
  0x79   : > { %3352 = vmatprep.mubr.bf16.mxu1 %v2976_v61  ;;  %v3513_v12 = vld [vmem:[%s4095_s12] sm:$0xff]  }
  0x7a   : > { %3319 = vmatpush3.bf16.msra.mxu0 %v3487_v14  ;;  %v1928_v14 = vshll.u32 %v2954_v2, 16  ;;  %v2988_v2 = vld [vmem:[%s3630_s28 + $0x10] sm:$0xe] }
  0x7b   : > { %3343 = vmatpush3.bf16.msra.mxu1 %v3488_v16  ;;  %3320 = vmatprep.subr.bf16.mxu0 %v3489_v18  ;;  %v2956_v16 = vld [vmem:[%s3630_s28 + $0x40] sm:$0xf] }
  0x7c   : > { %3344 = vmatprep.subr.bf16.mxu1 %v3490_v13  ;;  %v1930_v25 = vrot.slane %v1928_v14, 5  ;;  %v1939_v31 = vshrl.u32 %v2956_v16, 16  ;;  %v1942_v33 = vshll.u32 %v2956_v16, 16  ;;  %v2997_v14 = vrot.slane %v2989_v41, 9 }
  0x7e   : > { %3321 = vmatpush3.bf16.msra.mxu0 %v3489_v18  ;;  %v1909_v18 = vsel %vm3673_vm2, %v1904_v62, %v1908_v15  ;;  %v1931_v9 = vor.u32 %v1930_v25, %v1927_v24  ;;  %v1941_v38 = vrot.slane %v1939_v31, 4  ;;  %v1944_v43 = vrot.slane %v1942_v33, 5  ;;  %v3502_v15 = vld [vmem:[%s3630_s28 + $0x40] ss:$8 sps:$4 sm:$0xff]   ;;  %v2993_v31 = vld [vmem:[%s3630_s28 + $0x38] sm:$0xe] }
  0x7f   : > { %3345 = vmatpush3.bf16.msra.mxu1 %v3490_v13  ;;  %3322 = vmatprep.subr.bf16.mxu0 %v3491_v40  ;;  %v1913_v13 = vrot.slane %v1911_v5, 4  ;;  %v2146_v5 = vrot.slane %v4001_v19, 5  ;;  %v3511_v19 = vld [vmem:[%s4306_s4] sm:$0xff]   ;;  %v2991_v25 = vld [vmem:[%s3630_s28 + $0x28] sm:$0xe]  ;;  %v3001_v39 = vrot.slane %v2993_v31, 9 }
  0x80   : > { %3346 = vmatprep.subr.bf16.mxu1 %v3492_v46  ;;  %v1932_v29 = vrot.slane %v1931_v9, 4  ;;  %v1945_v51 = vor.u32 %v1944_v43, %v1941_v38  ;;  %v2990_v24 = vld [vmem:[%s3630_s28 + $0x20] sm:$0xe]  ;;  %v2999_v33 = vrot.slane %v2991_v25, 9  ;;  %v2162_v38 = vrot.slane %v4037_v0, 5 }
  0x81   : > { %v1917_v34 = vor.u32 %v1916_v4, %v1913_v13  ;;  %v3508_v13 = vld [vmem:[%s4303_s1 + $0x210] sm:$0xff]   ;;  %v3514_v4 = vld [vmem:[%s4095_s12 + $0x8] sm:$0xff]   ;;  %v2994_v0 = vld [vmem:[%s3630_s28 + $0x40] sm:$0xe] }
  0x82   : > { %3323 = vmatpush3.bf16.msra.mxu0 %v3491_v40  ;;  %v1956_v40 = vshll.u32 %v2958_v26, 16  ;;  %v1937_v54 = vsel %vm3673_vm2, %v1932_v29, %v1936_v28  ;;  %v1946_v57 = vrot.slane %v1945_v51, 4  ;;  %v2992_v26 = vld [vmem:[%s3630_s28 + $0x30] sm:$0xe]  ;;  %v2154_v28 = vrot.slane %v4011_v27, 5 }
  0x83   : > { %3347 = vmatpush3.bf16.msra.mxu1 %v3492_v46  ;;  %3324 = vmatprep.subr.bf16.mxu0 %v3493_v52  ;;  %v1918_v42 = vrot.slane %v1917_v34, 4  ;;  %v2977_v46 = vcombine.low %v1895_v10, %v1909_v18  ;;  %v2150_v10 = vrot.slane %v4005_v21, 5  ;;  %v3506_v18 = vld [vmem:[%s4303_s1 + $0x218] sm:$0xff]   ;;  %v2998_v34 = vrot.slane %v2990_v24, 9 }
  0x84   : > { %3348 = vmatprep.subr.bf16.mxu1 %v3494_v55  ;;  %v1958_v49 = vrot.slane %v1956_v40, 5  ;;  %v3000_v9 = vrot.slane %v2992_v26, 9  ;;  %v2166_v40 = vrot.slane %v4041_v3, 5  ;;  %v2170_v3 = vrot.slane %v4057_v22, 5 }
  0x85   : > { %v1923_v50 = vsel %vm3673_vm2, %v1918_v42, %v1922_v23  ;;  %v2151_v21 = vsel %vm3756_vm5, %v2997_v14, %v2150_v10  ;;  %v3510_v23 = vld [vmem:[%s4303_s1 + $0x208] sm:$0xff]   ;;  %v2155_v27 = vsel %vm3756_vm5, %v2998_v34, %v2154_v28  ;;  %v2174_v29 = vrot.slane %v4061_v30, 5 }
  0x86   : > { %3325 = vmatpush3.bf16.msra.mxu0 %v3493_v52  ;;  %v1950_v52 = vrot.slane %v1948_v8, 5  ;;  %v2978_v56 = vcombine.low %v1923_v50, %v1937_v54  ;;  %v2158_v8 = vrot.slane %v4015_v37, 5  ;;  %v2163_v42 = vsel %vm3756_vm5, %v3000_v9, %v2162_v38 }
  0x87   : > { %3349 = vmatpush3.bf16.msra.mxu1 %v3494_v55  ;;  %3326 = vmatprep.subr.bf16.mxu0 %v3495_v7  ;;  %v1959_v55 = vor.u32 %v1958_v49, %v1955_v32  ;;  %v2167_v43 = vsel %vm3756_vm5, %v3001_v39, %v2166_v40 }
  0x88   : > { %3350 = vmatprep.subr.bf16.mxu1 %v3496_v17  ;;  %v1951_v61 = vsel %vm3673_vm2, %v1946_v57, %v1950_v52  ;;  %v2159_v37 = vsel %vm3756_vm5, %v2999_v33, %v2158_v8 }
  0x89   : > { %v1960_v59 = vrot.slane %v1959_v55, 4 }
  0x8a   : > { %3327 = vmatpush3.bf16.msra.mxu0 %v3495_v7  ;;  %v2996_v7 = vrot.slane %v2988_v2, 9 }
  0x8b   : > { %3351 = vmatpush3.bf16.msra.mxu1 %v3496_v17  ;;  %3360 = vmatprep.subr.bf16.mxu0 %v3499_v36  ;;  %v1965_v62 = vsel %vm3673_vm2, %v1960_v59, %v1964_v53 }
  0x8c   : > { %3384 = vmatprep.subr.bf16.mxu1 %v3505_v45  ;;  %v2979_v6 = vcombine.low %v1951_v61, %v1965_v62  ;;  %v2147_v16 = vsel %vm3756_vm5, %v2996_v7, %v2146_v5 }
  0x8d   : > { %3329 = vmatmul.mubr.bf16.vlgmr.msra.gmra.mxu0 %v3498_v35  ;;  %v3020_v17 = vcombine.low %v2147_v16, %v2151_v21  ;;  %v3512_v35 = vld [vmem:[%s4303_s1 + $0x200] sm:$0xff]  }
  0x8e   : > { %3361 = vmatpush3.bf16.msra.mxu0 %v3499_v36  ;;  %3353 = vmatmul.mubr.bf16.vlgmr.msra.gmra.mxu1 %v2977_v46  ;;  %v3516_v36 = vld [vmem:[%s4095_s12 + $0x18] sm:$0xff]   ;;  %v3022_v46 = vcombine.low %v2163_v42, %v2167_v43 }
  0x8f   : > { %3362 = vmatprep.subr.bf16.mxu0 %v3500_v47  ;;  %3332 = vmatprep.mubr.bf16.mxu0 %v3501_v48  ;;  %v3003_v48 = vrot.slane %v2995_v44, 9 }
  0x90   : > { %3356 = vmatprep.mubr.bf16.mxu1 %v2978_v56  ;;  %3385 = vmatpush3.bf16.msra.mxu1 %v3505_v45  ;;  %v3021_v45 = vcombine.low %v2155_v27, %v2159_v37 }
  0x91   : > { %3386 = vmatprep.subr.bf16.mxu1 %v3507_v60  ;;  %v2175_v49 = vsel %vm3756_vm5, %v3003_v48, %v2174_v29 }
  0x92   : > { %3363 = vmatpush3.bf16.msra.mxu0 %v3500_v47  ;;  %v3002_v47 = vrot.slane %v2994_v0, 9 }
  0x93   : > { %3364 = vmatprep.subr.bf16.mxu0 %v3503_v58 }
  0x94   : > { %3387 = vmatpush3.bf16.msra.mxu1 %v3507_v60  ;;  %v2171_v32 = vsel %vm3756_vm5, %v3002_v47, %v2170_v3 }
  0x95   : > { %3333 = vmatmul.mubr.bf16.gmra.mxu0 %v3502_v15  ;;  %3388 = vmatprep.subr.bf16.mxu1 %v3509_v63  ;;  %v3023_v50 = vcombine.low %v2171_v32, %v2175_v49 }
  0x96   : > { %3365 = vmatpush3.bf16.msra.mxu0 %v3503_v58  ;;  %3357 = vmatmul.mubr.bf16.gmra.mxu1 %v2979_v6 }
  0x97   : > { %3366 = vmatprep.subr.bf16.mxu0 %v3504_v11  ;;  %3392 = vmatprep.mubr.msk.bf16.mxu1 %vm2416_vm6, %v3513_v12 }
  0x98   : > { %3389 = vmatpush3.bf16.msra.mxu1 %v3509_v63  ;;  %3376 = vmatprep.mubr.bf16.mxu0 %v3020_v17 }
  0x99   : > { %3390 = vmatprep.subr.bf16.mxu1 %v3511_v19 }
  0x9a   : > { %3367 = vmatpush3.bf16.msra.mxu0 %v3504_v11 }
  0x9b   : > { %3368 = vmatprep.subr.bf16.mxu0 %v3506_v18 }
  0x9c   : > { %3391 = vmatpush3.bf16.msra.mxu1 %v3511_v19 }
  0x9e   : > { %3369 = vmatpush3.bf16.msra.mxu0 %v3506_v18 }
  0x9f   : > { %3370 = vmatprep.subr.bf16.mxu0 %v3508_v13  ;;  %3393 = vmatmul.mubr.msk.bf16.vlgmr.msra.gmra.mxu1 %vm2416_vm6, %v3514_v4 }
  0xa0   : > { %3396 = vmatprep.mubr.msk.bf16.mxu1 %vm2416_vm6, %v3515_v20 }
  0xa2   : > { %3371 = vmatpush3.bf16.msra.mxu0 %v3508_v13 }
  0xa3   : > { %3372 = vmatprep.subr.bf16.mxu0 %v3510_v23 }
  0xa6   : > { %3373 = vmatpush3.bf16.msra.mxu0 %v3510_v23 }
  0xa7   : > { %3374 = vmatprep.subr.bf16.mxu0 %v3512_v35  ;;  %3397 = vmatmul.mubr.msk.bf16.gmra.mxu1 %vm2416_vm6, %v3516_v36 }
  0xaa   : > { %3375 = vmatpush3.bf16.msra.mxu0 %v3512_v35 }
  0xad   : > { %3377 = vmatmul.mubr.bf16.vlgmr.msra.gmra.mxu0 %v3021_v45 }
  0xae   : > { %3380 = vmatprep.mubr.bf16.mxu0 %v3022_v46 }
  0xb5   : > { %3381 = vmatmul.mubr.bf16.gmra.mxu0 %v3023_v50 }
  0xed   : > { %v3186_v52 = vpop.f32.mrf.mxu0 }
  0xee   : > { %v3210_v51 = vpop.f32.mrf.mxu1 }
  0xef   : > { %v623_v22 = vpop.f32.mrf.mxu0  ;;  %v769_v46 = vadd.f32 %v3210_v51, %v3186_v52 }
  0xf0   : > { %v760_v53 = vpop.f32.mrf.mxu1 }
  0xf1   : > { %v3187_v55 = vpop.f32.mrf.mxu0  ;;  %v761_v29 = vadd.f32 %v760_v53, %v623_v22 }
  0xf2   : > { %v3211_v54 = vpop.f32.mrf.mxu1 }
  0xf3   : > { %v626_v57 = vpop.f32.mrf.mxu0  ;;  %v772_v49 = vadd.f32 %v3211_v54, %v3187_v55 }
  0xf4   : > { %v763_v56 = vpop.f32.mrf.mxu1 }
  0xf5   : > { %v4160_v30 = vpop.f32.mrf.mxu0 }
  0xf6   : > { %v4158_v58 = vpop.f32.mrf.mxu1 }
  0xf7   : > { %v4164_v60 = vpop.f32.mrf.mxu0  ;;  %v785_v51 = vadd.f32 %v4158_v58, %v4160_v30 }
  0xf8   : > { %v4162_v59 = vpop.f32.mrf.mxu1 }
  0xf9   : > { %v4168_v15 = vpop.f32.mrf.mxu0  ;;  %v777_v53 = vadd.f32 %v4162_v59, %v4164_v60 }
  0xfa   : > { %v4166_v1 = vpop.f32.mrf.mxu1 }
  0xfb   : > { %v4172_v62 = vpop.f32.mrf.mxu0  ;;  %v788_v22 = vadd.f32 %v4166_v1, %v4168_v15 }
  0xfc   : > { %v4170_v61 = vpop.f32.mrf.mxu1 }
 0x10d   : > { %v3234_v2 = vpop.f32.mrf.mxu0 }
 0x10e   : > { %v3258_v63 = vpop.f32.mrf.mxu1  ;;  %v998_v32 = vadd.f32 %v3234_v2, %v769_v46  ;;  %v780_v2 = vadd.f32 %v4170_v61, %v4172_v62 }
 0x10f   : > { %v965_v6 = vpop.f32.mrf.mxu0 }
 0x110   : > { %v1136_v5 = vpop.f32.mrf.mxu1  ;;  %v996_v50 = vadd.f32 %v965_v6, %v761_v29 }
 0x111   : > { %v3235_v7 = vpop.f32.mrf.mxu0 }
 0x112   : > { %v3259_v41 = vpop.f32.mrf.mxu1 }
 0x113   : > { %v968_v11 = vpop.f32.mrf.mxu0 }
 0x114   : > { %v1139_v10 = vpop.f32.mrf.mxu1 }
 0x115   : > { %v3238_v14 = vpop.f32.mrf.mxu0 }
 0x116   : > { %v4174_v12 = vpop.f32.mrf.mxu1  ;;  %v1002_v54 = vadd.f32 %v3238_v14, %v785_v51 }
 0x117   : > { %v981_v19 = vpop.f32.mrf.mxu0 }
 0x118   : > { %v4176_v16 = vpop.f32.mrf.mxu1 }
 0x119   : > { %v3239_v17 = vpop.f32.mrf.mxu0 }
 0x11a   : > { %v4178_v21 = vpop.f32.mrf.mxu1  ;;  %v1003_v6 = vadd.f32 %v3239_v17, %v788_v22 }
 0x11b   : > { %v984_v13 = vpop.f32.mrf.mxu0 }
 0x11c   : > { %v4180_v18 = vpop.f32.mrf.mxu1  ;;  %v1001_v59 = vadd.f32 %v984_v13, %v780_v2 }
 0x11d   : > { %4313 = vst [vmem:[#allocation2_spill] sm:$0xff] %v4180_v18 }
 0x12d   : > { %v3282_v20 = vpop.f32.mrf.mxu0 }
 0x12e   : > { %v3306_v4 = vpop.f32.mrf.mxu1 }
 0x12f   : > { %v1418_v24 = vpop.f32.mrf.mxu0 }
 0x130   : > { %v1628_v23 = vpop.f32.mrf.mxu1 }
 0x131   : > { %v3283_v26 = vpop.f32.mrf.mxu0 }
 0x132   : > { %v3307_v25 = vpop.f32.mrf.mxu1 }
 0x133   : > { %v1421_v34 = vpop.f32.mrf.mxu0 }
 0x134   : > { %v1631_v31 = vpop.f32.mrf.mxu1 }
 0x135   : > { %v3286_v33 = vpop.f32.mrf.mxu0 }
 0x136   : > { %v4182_v28 = vpop.f32.mrf.mxu1 }
 0x137   : > { %4314 = vst [vmem:[#allocation3_spill] sm:$0xff] %v4182_v28  ;;  %v1434_v35 = vpop.f32.mrf.mxu0  ;;  %v1167_v28 = vadd.f32 %v1136_v5, %v996_v50  ;;  %v1000_v5 = vadd.f32 %v981_v19, %v777_v53  ;;  %v4324_v19 = vld [vmem:[#allocation2_spill] sm:$0xff] }
 0x138   : > { %v4184_v8 = vpop.f32.mrf.mxu1  ;;  %v1172_v17 = vadd.f32 %v4324_v19, %v1001_v59 }
 0x139   : > { %4315 = vst [vmem:[#allocation4_spill] sm:$0xff] %v4184_v8  ;;  %v3287_v9 = vpop.f32.mrf.mxu0  ;;  %v764_v8 = vadd.f32 %v763_v56, %v626_v57  ;;  %v1171_v15 = vadd.f32 %v4176_v16, %v1000_v5  ;;  %v4224_v16 = vld [vmem:[%s4304_s2] ss:$0 sm:$0xff] }
 0x13a   : > { %v4186_v36 = vpop.f32.mrf.mxu1 }
 0x13b   : > { %4316 = vst [vmem:[#allocation5_spill] sm:$0xff] %v4186_v36  ;;  %v4190_v39 = vpop.f32.mrf.mxu0 }
 0x13c   : > { %v4188_v38 = vpop.f32.mrf.mxu1  ;;  %4318 = vst [vmem:[#allocation7_spill] sm:$0xff] %v4190_v39  ;;  %v999_v39 = vadd.f32 %v3235_v7, %v772_v49 }
 0x13d   : > { %4317 = vst [vmem:[#allocation6_spill] sm:$0xff] %v4188_v38 }
 0x144   : > { %v4331_v53 = vld [vmem:[#allocation6_spill] sm:$0xff] }
 0x14d   : > { %v3330_v27 = vpop.f32.mrf.mxu0 }
 0x14e   : > { %v3354_v40 = vpop.f32.mrf.mxu1 }
 0x14f   : > { %v1799_v43 = vpop.f32.mrf.mxu0 }
 0x150   : > { %v2081_v37 = vpop.f32.mrf.mxu1 }
 0x151   : > { %v3331_v45 = vpop.f32.mrf.mxu0 }
 0x152   : > { %v4192_v42 = vpop.f32.mrf.mxu1 }
 0x153   : > { %4319 = vst [vmem:[#allocation8_spill] sm:$0xff] %v4192_v42  ;;  %v1802_v47 = vpop.f32.mrf.mxu0  ;;  %v1169_v42 = vadd.f32 %v3258_v63, %v998_v32 }
 0x154   : > { %v4194_v0 = vpop.f32.mrf.mxu1 }
 0x155   : > { %4320 = vst [vmem:[#allocation9_spill] sm:$0xff] %v4194_v0  ;;  %v3334_v38 = vpop.f32.mrf.mxu0  ;;  %v1451_v18 = vadd.f32 %v3282_v20, %v1169_v42 }
 0x156   : > { %v4196_v44 = vpop.f32.mrf.mxu1 }
 0x157   : > { %4321 = vst [vmem:[#allocation10_spill] sm:$0xff] %v4196_v44  ;;  %v997_v44 = vadd.f32 %v968_v11, %v764_v8  ;;  %v1815_v52 = vpop.f32.mrf.mxu0  ;;  %v1661_v57 = vadd.f32 %v3306_v4, %v1451_v18  ;;  %v1173_v11 = vadd.f32 %v4174_v12, %v1002_v54  ;;  %v4219_v12 = vld [vmem:[%s4307_s5] ss:$0 sm:$0xff] }
 0x158   : > { %v4198_v3 = vpop.f32.mrf.mxu1 }
 0x159   : > { %4322 = vst [vmem:[#allocation11_spill] sm:$0xff] %v4198_v3  ;;  %v1170_v3 = vadd.f32 %v3259_v41, %v999_v39  ;;  %v1168_v56 = vadd.f32 %v1139_v10, %v997_v44  ;;  %v3335_v58 = vpop.f32.mrf.mxu0  ;;  %v1832_v7 = vadd.f32 %v3330_v27, %v1661_v57  ;;  %v1174_v10 = vadd.f32 %v4178_v21, %v1003_v6 }
 0x15a   : > { %v4200_v48 = vpop.f32.mrf.mxu1  ;;  %v1455_v14 = vadd.f32 %v3286_v33, %v1173_v11  ;;  %v4326_v33 = vld [vmem:[#allocation7_spill] sm:$0xff]  ;;  %v4327_v39 = vld [vmem:[#allocation8_spill] sm:$0xff] }
 0x15b   : > { %4323 = vst [vmem:[#allocation12_spill] sm:$0xff] %v4200_v48  ;;  %v1449_v48 = vadd.f32 %v1418_v24, %v1167_v28  ;;  %v1452_v63 = vadd.f32 %v3283_v26, %v1170_v3  ;;  %v1450_v41 = vadd.f32 %v1421_v34, %v1168_v56  ;;  %v1818_v18 = vpop.f32.mrf.mxu0  ;;  %v2114_v61 = vadd.f32 %v3354_v40, %v1832_v7  ;;  %v4325_v34 = vld [vmem:[#allocation3_spill] sm:$0xff]  ;;  %v4245_v56 = vld [vmem:[%s4307_s5 + $0x1] ss:$0 sm:$0xff] }
 0x15c   : > { %v4202_v36 = vpop.f32.mrf.mxu1  ;;  %v1456_v24 = vadd.f32 %v3287_v9, %v1174_v10  ;;  %v1665_v28 = vadd.f32 %v4325_v34, %v1455_v14  ;;  %v1454_v8 = vadd.f32 %v4326_v33, %v1172_v17  ;;  %v4330_v29 = vld [vmem:[#allocation9_spill] sm:$0xff] }
 0x15d   : > { %v1659_v30 = vadd.f32 %v1628_v23, %v1449_v48  ;;  %v1662_v20 = vadd.f32 %v3307_v25, %v1452_v63  ;;  %v1660_v4 = vadd.f32 %v1631_v31, %v1450_v41  ;;  %v1453_v23 = vadd.f32 %v1434_v35, %v1171_v15  ;;  %v4231_v35 = vld [vmem:[%s4304_s2 + $0x1] ss:$0 sm:$0xff] }
 0x15e   : > { %v1836_v46 = vadd.f32 %v3334_v38, %v1665_v28 }
 0x15f   : > { %v3394_v0 = vpop.f32.mrf.mxu1  ;;  %v1830_v1 = vadd.f32 %v1799_v43, %v1659_v30  ;;  %v1833_v62 = vadd.f32 %v3331_v45, %v1662_v20  ;;  %v1831_v26 = vadd.f32 %v1802_v47, %v1660_v4  ;;  %v4329_v45 = vld [vmem:[#allocation5_spill] sm:$0xff]  ;;  %v4332_v30 = vld [vmem:[#allocation10_spill] sm:$0xff] }
 0x160   : > { %v2501_v27 = vmul.f32 %v3394_v0, %v4219_v12  ;;  %v1666_v3 = vadd.f32 %v4329_v45, %v1456_v24  ;;  %v1664_v0 = vadd.f32 %v4331_v53, %v1454_v8  ;;  %v2118_v41 = vadd.f32 %v4332_v30, %v1836_v46  ;;  %v4333_v15 = vld [vmem:[#allocation11_spill] sm:$0xff] }
 0x161   : > { %v2463_v55 = vpop.f32.mrf.mxu1  ;;  %v2112_v25 = vadd.f32 %v2081_v37, %v1830_v1  ;;  %v2115_v40 = vadd.f32 %v4327_v39, %v1833_v62  ;;  %v4328_v37 = vld [vmem:[#allocation4_spill] sm:$0xff]  ;;  %v2113_v32 = vadd.f32 %v4330_v29, %v1831_v26 }
 0x162   : > { %v1663_v44 = vadd.f32 %v4328_v37, %v1453_v23  ;;  %v1837_v54 = vadd.f32 %v3335_v58, %v1666_v3  ;;  %v2499_v38 = vmul.f32 %v4219_v12, %v2463_v55  ;;  %v1835_v7 = vadd.f32 %v1818_v18, %v1664_v0  ;;  %v4334_v14 = vld [vmem:[#allocation12_spill] sm:$0xff] }
 0x163   : > { %v3395_v60 = vpop.f32.mrf.mxu1 }
 0x164   : > { %v1834_v22 = vadd.f32 %v1815_v52, %v1663_v44  ;;  %v2502_v52 = vmul.f32 %v3395_v60, %v4219_v12  ;;  %v2119_v4 = vadd.f32 %v4334_v14, %v1837_v54  ;;  %v2117_v24 = vadd.f32 %v4202_v36, %v1835_v7 }
 0x165   : > { %v2466_v21 = vpop.f32.mrf.mxu1 }
 0x166   : > { %v2116_v10 = vadd.f32 %v4333_v15, %v1834_v22  ;;  %v2500_v60 = vmul.f32 %v4219_v12, %v2466_v21 }
 0x167   : > { %v3398_v48 = vpop.f32.mrf.mxu1 }
 0x169   : > { %v2479_v11 = vpop.f32.mrf.mxu1 }
 0x16a   : > { %v2503_v44 = vmul.f32 %v4219_v12, %v2479_v11 }
 0x16d   : > { %v3378_v13 = vpop.f32.mrf.mxu0 }
 0x16e   : > { %v2324_v31 = vadd.f32 %v3378_v13, %v2114_v61  ;;  %v2505_v13 = vmul.f32 %v3398_v48, %v4219_v12 }
 0x16f   : > { %v2291_v9 = vpop.f32.mrf.mxu0 }
 0x170   : > { %v2337_v42 = vmul.f32 %v4224_v16, %v2324_v31  ;;  %v2322_v43 = vadd.f32 %v2291_v9, %v2112_v25  ;;  %v3399_v31 = vpop.f32.mrf.mxu1 }
 0x171   : > { %v3379_v47 = vpop.f32.mrf.mxu0 }
 0x172   : > { %v2350_v49 = vadd.f32 %v4231_v35, %v2337_v42  ;;  %v2335_v50 = vmul.f32 %v4224_v16, %v2322_v43  ;;  %v2325_v51 = vadd.f32 %v3379_v47, %v2115_v40  ;;  %v2482_v3 = vpop.f32.mrf.mxu1  ;;  %v2506_v47 = vmul.f32 %v3399_v31, %v4219_v12 }
 0x173   : > { %v2294_v57 = vpop.f32.mrf.mxu0 }
 0x174   : > { %v2509_v63 = vadd.f32 %v2501_v27, %v2350_v49  ;;  %v2348_v2 = vadd.f32 %v4231_v35, %v2335_v50  ;;  %v2338_v5 = vmul.f32 %v4224_v16, %v2325_v51  ;;  %v2323_v6 = vadd.f32 %v2294_v57, %v2113_v32 }
 0x175   : > { %v3382_v58 = vpop.f32.mrf.mxu0  ;;  %v2504_v51 = vmul.f32 %v4219_v12, %v2482_v3 }
 0x176   : > { %v2522_v59 = vadd.f32 %v4245_v56, %v2509_v63  ;;  %v2507_v20 = vadd.f32 %v2499_v38, %v2348_v2  ;;  %v2351_v55 = vadd.f32 %v4231_v35, %v2338_v5  ;;  %v2336_v1 = vmul.f32 %v4224_v16, %v2323_v6 }
 0x177   : > { %v2328_v18 = vadd.f32 %v3382_v58, %v2118_v41  ;;  %v2307_v61 = vpop.f32.mrf.mxu0 }
 0x178   : > { %v2530_v62 = vmax.f32 %v2522_v59, 0.0  ;;  %v2520_v19 = vadd.f32 %v4245_v56, %v2507_v20  ;;  %v2510_v17 = vadd.f32 %v2502_v52, %v2351_v55  ;;  %v2349_v23 = vadd.f32 %v4231_v35, %v2336_v1 }
 0x179   : > { %v2341_v25 = vmul.f32 %v4224_v16, %v2328_v18  ;;  %v2326_v26 = vadd.f32 %v2307_v61, %v2116_v10  ;;  %v3383_v34 = vpop.f32.mrf.mxu0 }
 0x17a   : > { %2538 = vst [vmem:[%s4261_s17 + $0x10] sm:$0xff] %v2530_v62  ;;  %v2528_v21 = vmax.f32 %v2520_v19, 0.0  ;;  %v2523_v28 = vadd.f32 %v4245_v56, %v2510_v17  ;;  %v2508_v33 = vadd.f32 %v2500_v60, %v2349_v23  ;;  %v2329_v8 = vadd.f32 %v3383_v34, %v2119_v4 }
 0x17b   : > { %v2354_v9 = vadd.f32 %v4231_v35, %v2341_v25  ;;  %v2339_v39 = vmul.f32 %v4224_v16, %v2326_v26  ;;  %v2310_v40 = vpop.f32.mrf.mxu0 }
 0x17c   : > { %2536 = vst [vmem:[%s4261_s17] sm:$0xff] %v2528_v21  ;;  %v2531_v36 = vmax.f32 %v2523_v28, 0.0  ;;  %v2521_v27 = vadd.f32 %v4245_v56, %v2508_v33  ;;  %v2342_v42 = vmul.f32 %v4224_v16, %v2329_v8  ;;  %v2327_v43 = vadd.f32 %v2310_v40, %v2117_v24 }
 0x17d   : > { %v2513_v37 = vadd.f32 %v2505_v13, %v2354_v9  ;;  %v2352_v45 = vadd.f32 %v4231_v35, %v2339_v39 }
 0x17e   : > { %2539 = vst [vmem:[%s4261_s17 + $0x18] sm:$0xff] %v2531_v36  ;;  %v2529_v46 = vmax.f32 %v2521_v27, 0.0  ;;  %v2355_v48 = vadd.f32 %v4231_v35, %v2342_v42  ;;  %v2340_v29 = vmul.f32 %v4224_v16, %v2327_v43 }
 0x17f   : > { %v2526_v32 = vadd.f32 %v4245_v56, %v2513_v37  ;;  %v2511_v49 = vadd.f32 %v2503_v44, %v2352_v45 }
 0x180   : > { %2537 = vst [vmem:[%s4261_s17 + $0x8] sm:$0xff] %v2529_v46  ;;  %v2514_v50 = vadd.f32 %v2506_v47, %v2355_v48  ;;  %v2353_v53 = vadd.f32 %v4231_v35, %v2340_v29 }
 0x181   : > { %v2534_v0 = vmax.f32 %v2526_v32, 0.0  ;;  %v2524_v22 = vadd.f32 %v4245_v56, %v2511_v49 }
 0x182   : > { %v2527_v54 = vadd.f32 %v4245_v56, %v2514_v50  ;;  %v2512_v38 = vadd.f32 %v2504_v51, %v2353_v53 }
 0x183   : > { %2542 = vst [vmem:[%s4261_s17 + $0x30] sm:$0xff] %v2534_v0  ;;  %v2532_v57 = vmax.f32 %v2524_v22, 0.0 }
 0x184   : > { %v2535_v16 = vmax.f32 %v2527_v54, 0.0  ;;  %v2525_v63 = vadd.f32 %v4245_v56, %v2512_v38 }
 0x185   : > { %2540 = vst [vmem:[%s4261_s17 + $0x20] sm:$0xff] %v2532_v57 }
 0x186   : > { %2543 = vst [vmem:[%s4261_s17 + $0x38] sm:$0xff] %v2535_v16  ;;  %v2533_v2 = vmax.f32 %v2525_v63, 0.0 }
 0x188   : > { %2541 = vst [vmem:[%s4261_s17 + $0x28] sm:$0xff] %v2533_v2 }
 0x189 PF: > { %s16_s23 = sadd.s32 1, %s3539_s23   ;;  %s4335_s21 = smov %s3535_s22 }
 0x18a   : > { %p13_p5 = scmp.ge.s32.totalorder %s16_s23, 4   ;;  %s4336_s22 = smov %s4338_s24 }
 0x18c   :  { %15 = sbr.rel (!%p13_p5) target bundleno = 2 (0x2), region = 99 }

</bundles_post_ra>
